<compile_context>
chip_gen: v6e
topology: v6e:2x2x1
jax: 0.10.0
libtpu: 0.0.40
codegen_flags: <defaults>
</compile_context>

<pallas_src>
import jax
import jax.numpy as jnp
from jax.experimental import pallas as pl
from jax.experimental.pallas import tpu as pltpu


def upsample_kernel(x_ref, o_ref):
    x = x_ref[...]                         # (B, TH, W) in the input dtype
    y = jnp.repeat(x, 2, axis=1)           # sublane (row) duplication -> (B, 2*TH, W)
    o_ref[...] = jnp.repeat(y, 2, axis=2)  # lane (col)  duplication -> (B, 2*TH, 2*W)


def _choose_tiles(nc, h, w, itemsize):
    """Pick (planes-per-step B, rows-per-step TH).

    Targets ~1 MiB of input per grid step (output is 4x that; double buffering
    brings the total to ~10 MiB), keeps >= 2 grid steps when possible so both
    v7x TensorCores get work, and only tiles H (in multiples of 8 rows) when a
    single plane is too large to fit the budget.
    """
    in_budget = 1 << 20  # ~1 MiB of input bytes per grid step
    plane_bytes = h * w * itemsize

    if plane_bytes <= in_budget:
        cap = max(1, in_budget // max(1, plane_bytes))
        if nc >= 2:
            cap = min(cap, max(1, nc // 2))  # keep grid >= 2 for megacore
        cap = max(1, min(cap, nc))
        for b in range(cap, 0, -1):
            if nc % b == 0:
                return b, h
        return 1, h

    # Single plane exceeds the budget: tile rows (sublane axis). Row tile must
    # divide H and be a multiple of 8 to satisfy the (8, 128) layout rule.
    row_cap = max(8, in_budget // max(1, w * itemsize))
    start = (min(row_cap, h) // 8) * 8
    for t in range(start, 0, -8):
        if h % t == 0:
            return 1, t
    # Fallback: full plane per step (always correct, just more VMEM).
    return 1, h


def upsample_nearest_2x(x):
    """torch.nn.functional.interpolate(x, scale_factor=2, mode='nearest') for NCHW."""
    N, C, H, W = x.shape
    NC = N * C
    B, TH = _choose_tiles(NC, H, W, x.dtype.itemsize)

    in_block_bytes = B * TH * W * x.dtype.itemsize
    # 2 buffers x (input block + 4x-sized output block) ~= 10x, +20% margin.
    vmem_limit = min(128 * 1024 * 1024, max(32 * 1024 * 1024, 12 * in_block_bytes))

    xf = x.reshape(NC, H, W)
    out = pl.pallas_call(
        upsample_kernel,
        out_shape=jax.ShapeDtypeStruct((NC, 2 * H, 2 * W), x.dtype),
        grid_spec=pltpu.PrefetchScalarGridSpec(
            num_scalar_prefetch=0,
            grid=(NC // B, H // TH),
            in_specs=[pl.BlockSpec((B, TH, W), lambda i, j: (i, j, 0))],
            out_specs=pl.BlockSpec((B, 2 * TH, 2 * W), lambda i, j: (i, j, 0)),
        ),
        compiler_params=pltpu.CompilerParams(
            dimension_semantics=("parallel", "parallel"),
            vmem_limit_bytes=vmem_limit,
        ),
    )(xf)
    return out.reshape(N, C, 2 * H, 2 * W)


if __name__ == "__main__":
    key = jax.random.PRNGKey(0)
    x = jax.random.normal(key, (2, 4, 16, 16), dtype=jnp.float32)

    y = jax.block_until_ready(upsample_nearest_2x(x))

    # Reference (plain JAX) nearest-neighbor upsample, same semantics as PyTorch.
    ref = jnp.repeat(jnp.repeat(x, 2, axis=2), 2, axis=3)

    assert y.shape == (2, 4, 32, 32), y.shape
    assert y.dtype == x.dtype, y.dtype
    assert bool(jnp.array_equal(y, ref)), "mismatch vs reference nearest upsample"

    print("KERNEL_OK")
</pallas_src>

<mosaic_0001>
module attributes {stable_mosaic.version = 11 : i64} {
  func.func @upsample_kernel(%arg0: i32, %arg1: i32, %arg2: memref<4x16x16xf32, #tpu.memory_space<vmem>>, %arg3: memref<4x32x32xf32, #tpu.memory_space<vmem>>) attributes {dimension_semantics = [#tpu.dimension_semantics<parallel>, #tpu.dimension_semantics<parallel>], iteration_bounds = array<i64: 2, 1>, scalar_prefetch = 0 : i64, scratch_operands = 0 : i64, tpu.core_type = #tpu.core_type<tc>, window_params = [{transform_indices = @transform_0, window_bounds = array<i64: 4, 16, 16>}, {transform_indices = @transform_1, window_bounds = array<i64: 4, 32, 32>}]} {
    %c0 = arith.constant 0 : index
    %c0_0 = arith.constant 0 : index
    %c0_1 = arith.constant 0 : index
    %0 = vector.load %arg2[%c0, %c0_0, %c0_1] : memref<4x16x16xf32, #tpu.memory_space<vmem>>, vector<4x16x16xf32>
    %1 = vector.shape_cast %0 : vector<4x16x16xf32> to vector<4x16x1x16xf32>
    %2 = vector.broadcast %1 : vector<4x16x1x16xf32> to vector<4x16x2x16xf32>
    %3 = vector.shape_cast %2 : vector<4x16x2x16xf32> to vector<4x32x16xf32>
    %4 = vector.shape_cast %3 : vector<4x32x16xf32> to vector<4x32x16x1xf32>
    %5 = vector.broadcast %4 : vector<4x32x16x1xf32> to vector<4x32x16x2xf32>
    %6 = vector.shape_cast %5 : vector<4x32x16x2xf32> to vector<4x32x32xf32>
    %c0_2 = arith.constant 0 : index
    %c0_3 = arith.constant 0 : index
    %c0_4 = arith.constant 0 : index
    %7 = vector.load %arg3[%c0_2, %c0_3, %c0_4] : memref<4x32x32xf32, #tpu.memory_space<vmem>>, vector<4x32x32xf32>
    tpu.vector_store %arg3[%c0_2, %c0_3, %c0_4], %6 {strides = array<i32>} : memref<4x32x32xf32, #tpu.memory_space<vmem>>, vector<4x32x32xf32>,
    return
  }
  func.func @transform_0(%arg0: i32, %arg1: i32) -> (i32, i32, i32) {
    %c0_i32 = arith.constant 0 : i32
    %c0_i32_0 = arith.constant 0 : i32
    return %arg0, %arg1, %c0_i32 : i32, i32, i32
  }
  func.func @transform_1(%arg0: i32, %arg1: i32) -> (i32, i32, i32) {
    %c0_i32 = arith.constant 0 : i32
    %c0_i32_0 = arith.constant 0 : i32
    return %arg0, %arg1, %c0_i32 : i32, i32, i32
  }
}

</mosaic_0001>

<bundles_post_ra>
// kernel: tpu_custom_call.1
= control target key start
LH: loop header
LB: loop body
LE: loop exit
PB: predicated region body
PF: predicated region fallthrough
CT: control target
= control target key end

     0   :  { %6 = vsyncpa [#allocation3], 0  ;;  %s10335_s0 = inlined_call_operand.hbm [shape: f32[8,16,16], index: 0, kind: input, shape index: {}]   ;;  %s10336_s1 = inlined_call_operand.hbm [shape: f32[8,32,32], index: 1, kind: output, shape index: {}]  }
   0x1   :  { %8 = vsyncpa [#allocation3 + $0x1], 0 }
   0x2   :  { %9 = vsyncpa [#allocation4], 0 }
   0x3   :  { %11 = vsyncpa [#allocation4 + $0x1], 0  ;;  %s6253_s6 = smov 0   ;;  %s6255_s7 = smov 0  }
   0x4   :  { %s6257_s8 = smov 0   ;;  %s6259_s9 = smov 0  }
   0x5   :  { %s6261_s10 = smov 0   ;;  %s6263_s11 = smov 0  }
   0x6 LB: > { %s5998_s12 = sadd.s32 4294967295, %s6218_s11   ;;  %s5999_s13 = sadd.s32 4294967294, %s6218_s11   ;;  %s6218_s11 = sphi %s6263_s11, %s17_s11   ;;  %s6214_s10 = sphi %s6261_s10, %s11491_s10   ;;  %s6210_s9 = sphi %s6259_s9, %s11490_s9   ;;  %s6206_s8 = sphi %s6257_s8, %s11489_s8   ;;  %s6202_s7 = sphi %s6255_s7, %s11488_s7   ;;  %s6198_s6 = sphi %s6253_s6, %s11487_s6  }
   0x7   : > { %s29_s14 = sadd.s32 1, %s6214_s10  ;;  %s38_s15 = sadd.s32 1, %s6206_s8 }
   0x8   : > { %p31_p0 = scmp.ge.s32.totalorder %s29_s14, 2  ;;  %p45_p1 = scmp.ne.s32.totalorder %s6206_s8, %s6202_s7 }
   0x9   : > { %p46_p2 = scmp.eq.s32.totalorder %s6218_s11, 0  ;;  %p51_p3 = scmp.ne.s32.totalorder %s6202_s7, %s6198_s6 }
   0xa   : > { %s11493_s14 = smov (%p31_p0, %s29_s14), 0  ;;  %p52_p5 = scmp.eq.s32.totalorder %s5998_s12, 0 }
   0xb   : > { %p6294_p4 = por %p46_p2, %p45_p1  ;;  %s33_s17 = ssub.s32 %s6214_s10, %s11493_s14 }
   0xc   : > { %p77_p6 = scmp.eq.s32.totalorder %s5998_s12, 1  ;;  %p36_p7 = scmp.eq.s32.totalorder %s33_s17, 0 }
   0xd   : > { %p6300_p8 = por %p52_p5, %p51_p3  ;;  %p83_p10 = scmp.eq.s32.totalorder %s5999_s13, 1 }
   0xe   : > { %p6304_p9 = por %p77_p6, %p45_p1  ;;  %p6031_p13 = scmp.lt.s32.totalorder %s6218_s11, 2 }
   0xf   : > { %s6309_s20 = scalar_select %p36_p7, %s6206_s8, %s38_s15  }
  0x10   : > { %p6311_p11 = por %p83_p10, %p51_p3  ;;  %s103_s22 = sand.u32 1, %s6206_s8  }
  0x11   : > { %s6002_s23 = sshll.u32 %s103_s22, 6  ;;  %s6016_s24 = sshll.u32 %s6214_s10, 10 }
  0x12   : > { %s116_s27 = scalar_lea.hbm %s10335_s0, %s6016_s24  ;;  %s107_s28 = scalar_lea.vmem [#allocation2], %s6002_s23 }
  0x13   : > { %s117_s29 = sshll.u32 %s107_s28, 4  ;;  %p6324_p0 = pnand %p6031_p13, %p6294_p4  ;;  %s118_s29 = int_to_ptr.vmem [resolvable:$true] %s117_s29 }
  0x14   : > { %p6006_p1 = scmp.ge.s32.totalorder %s6218_s11, 1  ;;  %s104_s2 = scalar_lea.sflag [#allocation3], %s103_s22 }
  0x15   : > { %p6112_p2 = pneg %p6324_p0  ;;  %s6123_s3 = scalar_lea.vmem %s118_s29, 1024 }
  0x16   : > { %p6124_p3 = scmp.ne.s32.totalorder %s118_s29, %s6123_s3  ;;  %s6220_s4 = smov [#allocation2]  }
  0x17   : > { %s6128_s5 = sshll.u32 %s6220_s4, 4  ;;  %s6129_s5 = int_to_ptr.vmem [resolvable:$false] %s6128_s5 }
  0x18   : > { %p6126_p5 = pnand %p6124_p3, %p6112_p2  ;;  %s6130_s12 = scalar_lea.vmem %s6129_s5, 2048 }
  0x19   : > { %p6131_p7 = scmp.lt.s32.totalorder %s118_s29, %s6129_s5  ;;  %p6132_p10 = scmp.lt.s32.totalorder %s6130_s12, %s6123_s3 }
  0x1a   : > { %p6127_p6 = pneg %p6126_p5 }
  0x1b   : > { %p6133_p12 = por %p6132_p10, %p6131_p7 }
  0x1d   : > { %p6134_p4 = pnand %p6133_p12, %p6127_p6 }
  0x1f   : > { %6137 = shalt.err (!%p6134_p4)
}
  0x20   : > { %s6221_s13 = smov 128   ;;  %s6222_s15 = smov 8  }
  0x21   : > { %6026 = dma.hbm_to_vmem [thread:$0]  (!%p6324_p0), %s116_s27, 1024, %s118_s29, %s104_s2, %s6221_s13, %s6221_s13, %s6222_s15  }
  0x22   : > { %p125_p13 = scmp.lt.s32.totalorder %s6218_s11, 3 }
  0x24   : > { %p126_p2 = pnand %p6006_p1, %p125_p13 }
  0x26   : > { %129 = sbr.rel (%p126_p2) target bundleno = 1022 (0x3fe), region = 24 }
  0x2b   : > { %s6337_s16 = sand.u32 1, %s6202_s7  }
  0x2c   : > { %s6007_s17 = sshll.u32 %s6337_s16, 6  ;;  %s132_s22 = scalar_lea.sflag [#allocation3], %s6337_s16 }
  0x2d   : > { %s6341_s23 = scalar_lea.vmem [#allocation2], %s6007_s17 }
  0x2e   : > { %6189 = dma.done.wait (%p6300_p8), %s132_s22, 1024  }
  0x2f   : > { %6191 = vsyncadd (%p6300_p8), %s132_s22, 4294966272  ;;  %v178_v0 = vlaneseq  ;;  %v6223_v1 = vmov 1966171168   ;;  %v158_v6 = vld [vmem:[%s6341_s23] sm:$0xff]  ;;  %v159_v26 = vld [vmem:[%s6341_s23 + $0x8] sm:$0xff]  ;;  %s6226_s18 = smov 2  }
  0x30   : > { %v176_v2 = vunpack.c.l.s4 %v6223_v1  ;;  %v174_v11 = vcombine.high %v158_v6, %v158_v6  ;;  %v223_v37 = vcombine.high %v159_v26, %v159_v26  ;;  %v160_v48 = vld [vmem:[%s6341_s23 + $0x10] sm:$0xff]  ;;  %s6227_s24 = smov 4   ;;  %s6228_s25 = smov 6   ;;  %vm5622_vm0 = vcmask 15360  }
  0x31   : > { %v6347_v3 = vshrl.u32 %v178_v0, 7  ;;  %v272_v59 = vcombine.high %v160_v48, %v160_v48  ;;  %s6229_s26 = smov 8   ;;  %s6230_s27 = smov 10   ;;  %vm5639_vm1 = vcmask 31744   ;;  %vm5656_vm2 = vcmask 48128  }
  0x32   : > { %v177_v4 = vunpack.c.0.s8 %v176_v2  ;;  %s6231_s28 = smov 12   ;;  %s6232_s29 = smov 14   ;;  %vm5673_vm3 = vcmask 64512   ;;  %vm5690_vm4 = vcmask 80896   ;;  %vm5707_vm5 = vcmask 97280  }
  0x33   : > { %v6355_v8 = vsub.s32 0, %v6347_v3  ;;  %s6233_s30 = smov 16   ;;  %s6234_s2 = smov 18   ;;  %vm5724_vm6 = vcmask 113664   ;;  %vm5741_vm7 = vcmask 130048   ;;  %vm5758_vm8 = vcmask 146432  }
  0x34   : > { %v6350_v5 = vsub.s32 %v177_v4, %v6347_v3  ;;  %s6235_s3 = smov 20   ;;  %s6236_s4 = smov 22   ;;  %vm5775_vm9 = vcmask 162816   ;;  %vm5792_vm10 = vcmask 179200   ;;  %vm5809_vm11 = vcmask 195584  }
  0x35   : > { %s6237_s5 = smov 24   ;;  %s6238_s12 = smov 26   ;;  %vm5826_vm12 = vcmask 211968   ;;  %vm5843_vm13 = vcmask 228352   ;;  %vm5860_vm14 = vcmask 244736   ;;  %vm5877_vm15 = vcmask 261120  }
  0x36   : > { %v181_v7 = vrot.slane %v158_v6, %v6350_v5  ;;  %v188_v16 = vrot.slane %v174_v11, %v6350_v5  ;;  %v230_v29 = vrot.slane %v159_v26, %v6350_v5  ;;  %v237_v40 = vrot.slane %v223_v37, %v6350_v5  ;;  %s6239_s13 = smov 28   ;;  %s6240_s15 = smov 30  }
  0x37   : > { %v279_v51 = vrot.slane %v160_v48, %v6350_v5  ;;  %v286_v62 = vrot.slane %v272_v59, %v6350_v5  ;;  %v6224_v37 = vmov 1983009808   ;;  %s6008_s17 = sshll.u32 %s6337_s16, 7 }
  0x38   : > { %v197_v9 = vrot.slane %v181_v7, %v6350_v5  ;;  %v189_v10 = vcombine.high %v181_v7, %v181_v7  ;;  %v204_v18 = vrot.slane %v188_v16, %v6350_v5  ;;  %v190_v21 = vcombine.high %v188_v16, %v188_v16  ;;  %s10166_s22 = scalar_lea.vmem [#allocation5], %s6008_s17 }
  0x39   : > { %v246_v31 = vrot.slane %v230_v29, %v6350_v5  ;;  %v238_v32 = vcombine.high %v230_v29, %v230_v29  ;;  %v253_v42 = vrot.slane %v237_v40, %v6350_v5  ;;  %v239_v43 = vcombine.high %v237_v40, %v237_v40 }
  0x3a   : > { %v569_v12 = vrot.slane %v197_v9, %v6355_v8  ;;  %v211_v13 = vrot.slane %v189_v10, %v6350_v5  ;;  %v219_v15 = vcombine.high %v197_v9, %v197_v9  ;;  %v585_v19 = vrot.slane %v204_v18, %v6355_v8  ;;  %v161_v9 = vld [vmem:[%s6341_s23 + $0x18] sm:$0xff] }
  0x3b   : > { %v218_v23 = vrot.slane %v190_v21, %v6350_v5  ;;  %v220_v25 = vcombine.high %v204_v18, %v204_v18  ;;  %v601_v33 = vrot.slane %v246_v31, %v6355_v8  ;;  %v260_v34 = vrot.slane %v238_v32, %v6350_v5 }
  0x3c   : > { %887 = vbcast.lane.b32.xlu0 %v569_v12, 256  ;;  %v573_v14 = vrot.slane %v211_v13, %v6355_v8  ;;  %v577_v17 = vrot.slane %v219_v15, %v6355_v8  ;;  %v221_v20 = vcombine.high %v211_v13, %v211_v13  ;;  %v268_v36 = vcombine.high %v246_v31, %v246_v31  ;;  %v162_v31 = vld [vmem:[%s6341_s23 + $0x20] sm:$0xff] }
  0x3d   : > { %v589_v24 = vrot.slane %v218_v23, %v6355_v8  ;;  %v593_v27 = vrot.slane %v220_v25, %v6355_v8  ;;  %v222_v28 = vcombine.high %v218_v23, %v218_v23  ;;  %v605_v35 = vrot.slane %v260_v34, %v6355_v8 }
  0x3e   : > { %894 = vbcast.lane.b32.xlu1 %v573_v14, 256  ;;  %v581_v22 = vrot.slane %v221_v20, %v6355_v8  ;;  %v609_v38 = vrot.slane %v268_v36, %v6355_v8  ;;  %v270_v39 = vcombine.high %v260_v34, %v260_v34  ;;  %v617_v44 = vrot.slane %v253_v42, %v6355_v8 }
  0x3f   : > { %v597_v30 = vrot.slane %v222_v28, %v6355_v8  ;;  %v267_v45 = vrot.slane %v239_v43, %v6350_v5  ;;  %v269_v47 = vcombine.high %v253_v42, %v253_v42  ;;  %v295_v53 = vrot.slane %v279_v51, %v6350_v5 }
  0x40   : > { %891 = vbcast.lane.b32.xlu0 %v569_v12, 264  ;;  %v613_v41 = vrot.slane %v270_v39, %v6355_v8  ;;  %v287_v54 = vcombine.high %v279_v51, %v279_v51  ;;  %v302_v0 = vrot.slane %v286_v62, %v6350_v5  ;;  %v288_v1 = vcombine.high %v286_v62, %v286_v62 }
  0x41   : > { %v621_v46 = vrot.slane %v267_v45, %v6355_v8  ;;  %v625_v49 = vrot.slane %v269_v47, %v6355_v8  ;;  %v271_v50 = vcombine.high %v267_v45, %v267_v45  ;;  %v633_v55 = vrot.slane %v295_v53, %v6355_v8 }
  0x42   : > { %898 = vbcast.lane.b32.xlu1 %v573_v14, 264  ;;  %v309_v56 = vrot.slane %v287_v54, %v6350_v5  ;;  %v317_v58 = vcombine.high %v295_v53, %v295_v53  ;;  %v649_v2 = vrot.slane %v302_v0, %v6355_v8  ;;  %v316_v4 = vrot.slane %v288_v1, %v6350_v5 }
  0x43   : > { %v629_v52 = vrot.slane %v271_v50, %v6355_v8  ;;  %v318_v7 = vcombine.high %v302_v0, %v302_v0  ;;  %v328_v12 = vrot.slane %v161_v9, %v6350_v5  ;;  %v321_v20 = vcombine.high %v161_v9, %v161_v9 }
  0x44   : > { %901 = vbcast.lane.b32.xlu0 %v577_v17, 256  ;;  %v637_v57 = vrot.slane %v309_v56, %v6355_v8  ;;  %v641_v60 = vrot.slane %v317_v58, %v6355_v8  ;;  %v319_v61 = vcombine.high %v309_v56, %v309_v56  ;;  %v653_v6 = vrot.slane %v316_v4, %v6355_v8 }
  0x45   : > { %v657_v10 = vrot.slane %v318_v7, %v6355_v8  ;;  %v320_v11 = vcombine.high %v316_v4, %v316_v4  ;;  %v344_v14 = vrot.slane %v328_v12, %v6350_v5  ;;  %v336_v15 = vcombine.high %v328_v12, %v328_v12 }
  0x46   : > { %905 = vbcast.lane.b32.xlu1 %v577_v17, 264  ;;  %v645_v63 = vrot.slane %v319_v61, %v6355_v8  ;;  %v335_v23 = vrot.slane %v321_v20, %v6350_v5  ;;  %v377_v36 = vrot.slane %v162_v31, %v6350_v5  ;;  %v6225_v50 = vmov 1934713408  }
  0x47   : > { %v661_v13 = vrot.slane %v320_v11, %v6355_v8  ;;  %v665_v16 = vrot.slane %v344_v14, %v6355_v8  ;;  %v358_v17 = vrot.slane %v336_v15, %v6350_v5  ;;  %v1369_v51 = vunpack.c.l.s4 %v6225_v50 }
  0x48   : > { %915 = vbcast.lane.b32.xlu0 %v585_v19, 256  ;;  %v351_v25 = vrot.slane %v335_v23, %v6350_v5  ;;  %v337_v26 = vcombine.high %v335_v23, %v335_v23  ;;  %v393_v42 = vrot.slane %v377_v36, %v6350_v5  ;;  %v385_v43 = vcombine.high %v377_v36, %v377_v36 }
  0x49   : > { %v669_v18 = vrot.slane %v358_v17, %v6355_v8  ;;  %v370_v54 = vcombine.high %v162_v31, %v162_v31  ;;  %v1370_v58 = vunpack.c.0.s8 %v1369_v51 }
  0x4a   : > { %919 = vbcast.lane.b32.xlu1 %v585_v19, 264  ;;  %v366_v19 = vcombine.high %v344_v14, %v344_v14  ;;  %v365_v28 = vrot.slane %v337_v26, %v6350_v5  ;;  %v697_v47 = vrot.slane %v393_v42, %v6355_v8  ;;  %v407_v48 = vrot.slane %v385_v43, %v6350_v5 }
  0x4b   : > { %v6439_v7 = vsub.s32 %v1370_v58, %v6347_v3 }
  0x4c   : > { %908 = vbcast.lane.b32.xlu0 %v581_v22, 256  ;;  %v673_v21 = vrot.slane %v366_v19, %v6355_v8  ;;  %v685_v29 = vrot.slane %v365_v28, %v6355_v8  ;;  %v701_v56 = vrot.slane %v407_v48, %v6355_v8  ;;  %v417_v4 = vcombine.high %v407_v48, %v407_v48 }
  0x4e   : > { %912 = vbcast.lane.b32.xlu1 %v581_v22, 264  ;;  %v368_v22 = vcombine.high %v358_v17, %v358_v17 }
  0x50   : > { %922 = vbcast.lane.b32.xlu0 %v589_v24, 256 }
  0x52   : > { %926 = vbcast.lane.b32.xlu1 %v589_v24, 264  ;;  %v677_v24 = vrot.slane %v368_v22, %v6355_v8 }
  0x54   : > { %929 = vbcast.lane.b32.xlu0 %v593_v27, 256 }
  0x56   : > { %933 = vbcast.lane.b32.xlu1 %v593_v27, 264  ;;  %v681_v27 = vrot.slane %v351_v25, %v6355_v8 }
  0x58   : > { %936 = vbcast.lane.b32.xlu0 %v597_v30, 256 }
  0x5a   : > { %940 = vbcast.lane.b32.xlu1 %v597_v30, 264  ;;  %v367_v30 = vcombine.high %v351_v25, %v351_v25 }
  0x5c   : > { %943 = vbcast.lane.b32.xlu0 %v601_v33, 256  ;;  %v689_v34 = vrot.slane %v367_v30, %v6355_v8 }
  0x5e   : > { %947 = vbcast.lane.b32.xlu1 %v601_v33, 264 }
  0x60   : > { %950 = vbcast.lane.b32.xlu0 %v605_v35, 256 }
  0x62   : > { %954 = vbcast.lane.b32.xlu1 %v605_v35, 264  ;;  %v369_v35 = vcombine.high %v365_v28, %v365_v28 }
  0x64   : > { %957 = vbcast.lane.b32.xlu0 %v609_v38, 256 }
  0x66   : > { %961 = vbcast.lane.b32.xlu1 %v609_v38, 264  ;;  %v1337_v38 = vunpack.c.l.s4 %v6224_v37 }
  0x68   : > { %964 = vbcast.lane.b32.xlu0 %v613_v41, 256 }
  0x6a   : > { %968 = vbcast.lane.b32.xlu1 %v613_v41, 264  ;;  %v693_v41 = vrot.slane %v369_v35, %v6355_v8  ;;  %v6479_v35 = vld [vmem:[%s6341_s23 + $0x28] sm:$0xff] }
  0x6b   : > { %v426_v48 = vrot.slane %v6479_v35, %v6350_v5 }
  0x6c   : > { %971 = vbcast.lane.b32.xlu0 %v617_v44, 256 }
  0x6e   : > { %975 = vbcast.lane.b32.xlu1 %v617_v44, 264  ;;  %v1338_v44 = vunpack.c.0.s8 %v1337_v38 }
  0x70   : > { %978 = vbcast.lane.b32.xlu0 %v621_v46, 256 }
  0x72   : > { %982 = vbcast.lane.b32.xlu1 %v621_v46, 264 }
  0x74   : > { %985 = vbcast.lane.b32.xlu0 %v625_v49, 256 }
  0x76   : > { %989 = vbcast.lane.b32.xlu1 %v625_v49, 264  ;;  %v6427_v49 = vsub.s32 %v1338_v44, %v6347_v3  ;;  %v709_v3 = vrot.slane %v417_v4, %v6355_v8 }
  0x78   : > { %992 = vbcast.lane.b32.xlu0 %v629_v52, 256 }
  0x7a   : > { %996 = vbcast.lane.b32.xlu1 %v629_v52, 264 }
  0x7c   : > { %999 = vbcast.lane.b32.xlu0 %v633_v55, 256 }
  0x7e   : > { %1003 = vbcast.lane.b32.xlu1 %v633_v55, 264 }
  0x80   : > { %1006 = vbcast.lane.b32.xlu0 %v637_v57, 256 }
  0x82   : > { %1010 = vbcast.lane.b32.xlu1 %v637_v57, 264  ;;  %v415_v57 = vcombine.high %v393_v42, %v393_v42 }
  0x84   : > { %1013 = vbcast.lane.b32.xlu0 %v641_v60, 256 }
  0x86   : > { %1017 = vbcast.lane.b32.xlu1 %v641_v60, 264 }
  0x88   : > { %1020 = vbcast.lane.b32.xlu0 %v645_v63, 256 }
  0x8a   : > { %1024 = vbcast.lane.b32.xlu1 %v645_v63, 264  ;;  %v384_v63 = vrot.slane %v370_v54, %v6350_v5 }
  0x8c   : > { %1027 = vbcast.lane.b32.xlu0 %v649_v2, 256  ;;  %v386_v12 = vcombine.high %v384_v63, %v384_v63 }
  0x8e   : > { %1031 = vbcast.lane.b32.xlu1 %v649_v2, 264  ;;  %v705_v2 = vrot.slane %v415_v57, %v6355_v8  ;;  %v414_v23 = vrot.slane %v386_v12, %v6350_v5 }
  0x90   : > { %1034 = vbcast.lane.b32.xlu0 %v653_v6, 256  ;;  %v717_v37 = vrot.slane %v414_v23, %v6355_v8  ;;  %v418_v44 = vcombine.high %v414_v23, %v414_v23 }
  0x92   : > { %1038 = vbcast.lane.b32.xlu1 %v653_v6, 264 }
  0x94   : > { %1041 = vbcast.lane.b32.xlu0 %v657_v10, 256 }
  0x96   : > { %1045 = vbcast.lane.b32.xlu1 %v657_v10, 264 }
  0x98   : > { %1048 = vbcast.lane.b32.xlu0 %v661_v13, 256 }
  0x9a   : > { %1052 = vbcast.lane.b32.xlu1 %v661_v13, 264 }
  0x9c   : > { %1055 = vbcast.lane.b32.xlu0 %v665_v16, 256 }
  0x9e   : > { %1059 = vbcast.lane.b32.xlu1 %v665_v16, 264  ;;  %v400_v16 = vrot.slane %v384_v63, %v6350_v5 }
  0xa0   : > { %1062 = vbcast.lane.b32.xlu0 %v669_v18, 256  ;;  %v713_v28 = vrot.slane %v400_v16, %v6355_v8  ;;  %v416_v38 = vcombine.high %v400_v16, %v400_v16 }
  0xa2   : > { %1066 = vbcast.lane.b32.xlu1 %v669_v18, 264 }
  0xa4   : > { %1069 = vbcast.lane.b32.xlu0 %v673_v21, 256 }
  0xa6   : > { %1073 = vbcast.lane.b32.xlu1 %v673_v21, 264 }
  0xa8   : > { %1076 = vbcast.lane.b32.xlu0 %v677_v24, 256 }
  0xaa   : > { %1080 = vbcast.lane.b32.xlu1 %v677_v24, 264 }
  0xac   : > { %1083 = vbcast.lane.b32.xlu0 %v681_v27, 256 }
  0xae   : > { %v888_v32 = vpop.permute.xlu0 %887  ;;  %1087 = vbcast.lane.b32.xlu1 %v681_v27, 264 }
  0xb0   : > { %v895_v33 = vpop.permute.xlu1 %894  ;;  %1090 = vbcast.lane.b32.xlu0 %v685_v29, 256 }
  0xb1   : > { %v1334_v52 = vcombine.low %v888_v32, %v895_v33  ;;  %v1335_v61 = vcombine.high %v888_v32, %v895_v33 }
  0xb2   : > { %v6416_v39 = vpop.permute.xlu0 %891  ;;  %1094 = vbcast.lane.b32.xlu1 %v685_v29, 264 }
  0xb3   : > { %v1342_v59 = vrot.slane %v1334_v52, %v6427_v49  ;;  %v6442_v13 = vrot.slane %v1335_v61, %v6427_v49 }
  0xb4   : > { %v6418_v40 = vpop.permute.xlu1 %898  ;;  %1097 = vbcast.lane.b32.xlu0 %v689_v34, 256 }
  0xb5   : > { %v1366_v9 = vcombine.low %v1342_v59, %v1342_v59  ;;  %v1367_v10 = vcombine.high %v1342_v59, %v1342_v59  ;;  %10673 = vst [vmem:[#allocation8_spill] sm:$0xff] %v6442_v13  ;;  %v1383_v26 = vcombine.high %v6442_v13, %v6442_v13 }
  0xb6   : > { %v902_v45 = vpop.permute.xlu0 %901  ;;  %1101 = vbcast.lane.b32.xlu1 %v689_v34, 264 }
  0xb7   : > { %v6459_v24 = vrot.slane %v1366_v9, %v6439_v7  ;;  %v6462_v25 = vrot.slane %v1367_v10, %v6439_v7  ;;  %v6492_v50 = vrot.slane %v1383_v26, %v6439_v7  ;;  %v721_v9 = vrot.slane %v416_v38, %v6355_v8 }
  0xb8   : > { %v6422_v46 = vpop.permute.xlu1 %905  ;;  %1104 = vbcast.lane.b32.xlu0 %v693_v41, 256  ;;  %v725_v10 = vrot.slane %v418_v44, %v6355_v8 }
  0xb9   : > { %10676 = vst [vmem:[#allocation11_spill] sm:$0xff] %v6459_v24  ;;  %10678 = vst [vmem:[#allocation13_spill] sm:$0xff] %v6492_v50 }
  0xba   : > { %v916_v53 = vpop.permute.xlu0 %915  ;;  %1108 = vbcast.lane.b32.xlu1 %v693_v41, 264 }
  0xbc   : > { %v6429_v55 = vpop.permute.xlu1 %919  ;;  %1111 = vbcast.lane.b32.xlu0 %v697_v47, 256 }
  0xbe   : > { %v909_v60 = vpop.permute.xlu0 %908  ;;  %1115 = vbcast.lane.b32.xlu1 %v697_v47, 264 }
  0xbf   : > { %v1350_v62 = vcombine.low %v902_v45, %v909_v60  ;;  %v1351_v0 = vcombine.high %v902_v45, %v909_v60  ;;  %v1750_v45 = vcombine.low %v6416_v39, %v6418_v40 }
  0xc0   : > { %v6434_v1 = vpop.permute.xlu1 %912  ;;  %1118 = vbcast.lane.b32.xlu0 %v701_v56, 256 }
  0xc1   : > { %v1358_v6 = vrot.slane %v1350_v62, %v6427_v49  ;;  %v6446_v17 = vrot.slane %v1351_v0, %v6427_v49  ;;  %v1766_v52 = vcombine.low %v6422_v46, %v6434_v1  ;;  %v6529_v16 = vrot.slane %v1750_v45, %v6427_v49 }
  0xc2   : > { %v923_v11 = vpop.permute.xlu0 %922  ;;  %1122 = vbcast.lane.b32.xlu1 %v701_v56, 264 }
  0xc3   : > { %v1398_v14 = vcombine.low %v1358_v6, %v1358_v6  ;;  %v1399_v15 = vcombine.high %v1358_v6, %v1358_v6  ;;  %10674 = vst [vmem:[#allocation9_spill] sm:$0xff] %v6446_v17  ;;  %v1438_v19 = vcombine.low %v916_v53, %v923_v11  ;;  %v1439_v27 = vcombine.high %v916_v53, %v923_v11 }
  0xc4   : > { %v6448_v18 = vpop.permute.xlu1 %926  ;;  %1125 = vbcast.lane.b32.xlu0 %v705_v2, 256  ;;  %v1415_v29 = vcombine.high %v6446_v17, %v6446_v17  ;;  %v434_v11 = vcombine.high %v426_v48, %v426_v48  ;;  %10684 = vst [vmem:[#allocation19_spill] sm:$0xff] %v6529_v16  ;;  %v6541_v26 = vrot.slane %v1766_v52, %v6427_v49 }
  0xc5   : > { %v6452_v20 = vrot.slane %v1398_v14, %v6439_v7  ;;  %v6455_v21 = vrot.slane %v1399_v15, %v6439_v7  ;;  %v1446_v34 = vrot.slane %v1438_v19, %v6427_v49  ;;  %v6483_v41 = vrot.slane %v1439_v27, %v6427_v49 }
  0xc6   : > { %v930_v22 = vpop.permute.xlu0 %929  ;;  %1129 = vbcast.lane.b32.xlu1 %v705_v2, 264  ;;  %v6495_v51 = vrot.slane %v1415_v29, %v6439_v7  ;;  %v1854_v58 = vcombine.low %v6429_v55, %v6448_v18  ;;  %v6532_v19 = vrot.slane %v426_v48, %v6350_v5  ;;  %10687 = vst [vmem:[#allocation22_spill] sm:$0xff] %v6541_v26 }
  0xc7   : > { %10675 = vst [vmem:[#allocation10_spill] sm:$0xff] %v6452_v20  ;;  %10677 = vst [vmem:[#allocation12_spill] sm:$0xff] %v6483_v41  ;;  %v1470_v53 = vcombine.low %v1446_v34, %v1446_v34  ;;  %v1471_v57 = vcombine.high %v1446_v34, %v1446_v34  ;;  %v1487_v62 = vcombine.high %v6483_v41, %v6483_v41 }
  0xc8   : > { %v6469_v30 = vpop.permute.xlu1 %933  ;;  %1132 = vbcast.lane.b32.xlu0 %v709_v3, 256  ;;  %10679 = vst [vmem:[#allocation14_spill] sm:$0xff] %v6495_v51  ;;  %v6544_v27 = vrot.slane %v1854_v58, %v6427_v49  ;;  %v1783_v44 = vcombine.high %v6529_v16, %v6529_v16  ;;  %v419_v48 = vcombine.high %v6479_v35, %v6479_v35 }
  0xc9   : > { %v6520_v12 = vrot.slane %v1470_v53, %v6439_v7  ;;  %v6549_v29 = vrot.slane %v1487_v62, %v6439_v7 }
  0xca   : > { %1136 = vbcast.lane.b32.xlu1 %v709_v3, 264  ;;  %v937_v36 = vpop.permute.xlu0 %936  ;;  %10688 = vst [vmem:[#allocation23_spill] sm:$0xff] %v6544_v27  ;;  %v1887_v58 = vcombine.high %v6544_v27, %v6544_v27  ;;  %v6585_v32 = vrot.slane %v1783_v44, %v6439_v7 }
  0xcb   : > { %v1454_v42 = vcombine.low %v930_v22, %v937_v36  ;;  %v1455_v43 = vcombine.high %v930_v22, %v937_v36  ;;  %10681 = vst [vmem:[#allocation16_spill] sm:$0xff] %v6520_v12  ;;  %v6535_v22 = vrot.slane %v1471_v57, %v6439_v7  ;;  %10689 = vst [vmem:[#allocation24_spill] sm:$0xff] %v6549_v29 }
  0xcc   : > { %v6487_v47 = vpop.permute.xlu1 %940  ;;  %1139 = vbcast.lane.b32.xlu0 %v713_v28, 256  ;;  %v729_v57 = vrot.slane %v6532_v19, %v6355_v8  ;;  %10691 = vst [vmem:[#allocation26_spill] sm:$0xff] %v6585_v32 }
  0xcd   : > { %v1462_v54 = vrot.slane %v1454_v42, %v6427_v49  ;;  %v6501_v56 = vrot.slane %v1455_v43, %v6427_v49  ;;  %v1870_v4 = vcombine.low %v6469_v30, %v6487_v47  ;;  %10685 = vst [vmem:[#allocation20_spill] sm:$0xff] %v6535_v22  ;;  %v456_v43 = vrot.slane %v434_v11, %v6350_v5 }
  0xce   : > { %1143 = vbcast.lane.b32.xlu1 %v713_v28, 264  ;;  %v944_v59 = vpop.permute.xlu0 %943  ;;  %v433_v28 = vrot.slane %v419_v48, %v6350_v5 }
  0xcf   : > { %10680 = vst [vmem:[#allocation15_spill] sm:$0xff] %v6501_v56  ;;  %v1502_v63 = vcombine.low %v1462_v54, %v1462_v54  ;;  %v1503_v0 = vcombine.high %v1462_v54, %v1462_v54  ;;  %v1519_v2 = vcombine.high %v6501_v56, %v6501_v56  ;;  %v6552_v34 = vrot.slane %v1870_v4, %v6427_v49 }
  0xd0   : > { %v6515_v6 = vpop.permute.xlu1 %947  ;;  %1146 = vbcast.lane.b32.xlu0 %v717_v37, 256  ;;  %v1815_v54 = vcombine.high %v6541_v26, %v6541_v26  ;;  %v466_v11 = vcombine.high %v456_v43, %v456_v43 }
  0xd1   : > { %v6523_v14 = vrot.slane %v1502_v63, %v6439_v7  ;;  %v6526_v15 = vrot.slane %v1503_v0, %v6439_v7  ;;  %v6538_v23 = vrot.slane %v1519_v2, %v6439_v7  ;;  %10690 = vst [vmem:[#allocation25_spill] sm:$0xff] %v6552_v34  ;;  %v1919_v62 = vcombine.high %v6552_v34, %v6552_v34 }
  0xd2   : > { %1150 = vbcast.lane.b32.xlu1 %v717_v37, 264  ;;  %v951_v3 = vpop.permute.xlu0 %950  ;;  %v733_v2 = vrot.slane %v456_v43, %v6355_v8  ;;  %v6590_v53 = vrot.slane %v1815_v54, %v6439_v7  ;;  %v741_v38 = vrot.slane %v466_v11, %v6355_v8  ;;  %v435_v11 = vcombine.high %v433_v28, %v433_v28 }
  0xd3   : > { %10682 = vst [vmem:[#allocation17_spill] sm:$0xff] %v6523_v14  ;;  %10683 = vst [vmem:[#allocation18_spill] sm:$0xff] %v6526_v15  ;;  %v1542_v36 = vcombine.low %v944_v59, %v951_v3  ;;  %v1543_v63 = vcombine.high %v944_v59, %v951_v3  ;;  %v6601_v43 = vrot.slane %v1919_v62, %v6439_v7 }
  0xd4   : > { %10686 = vst [vmem:[#allocation21_spill] sm:$0xff] %v6538_v23  ;;  %v6554_v37 = vpop.permute.xlu1 %954  ;;  %1153 = vbcast.lane.b32.xlu0 %v721_v9, 256  ;;  %10692 = vst [vmem:[#allocation27_spill] sm:$0xff] %v6590_v53 }
  0xd5   : > { %v1550_v35 = vrot.slane %v1542_v36, %v6427_v49  ;;  %v1958_v59 = vcombine.low %v6515_v6, %v6554_v37  ;;  %10695 = vst [vmem:[#allocation30_spill] sm:$0xff] %v6601_v43 }
  0xd6   : > { %1157 = vbcast.lane.b32.xlu1 %v721_v9, 264  ;;  %v958_v45 = vpop.permute.xlu0 %957  ;;  %v464_v9 = vcombine.high %v6532_v19, %v6532_v19  ;;  %v6598_v19 = vrot.slane %v1887_v58, %v6439_v7 }
  0xd7   : > { %v1574_v61 = vcombine.low %v1550_v35, %v1550_v35  ;;  %v1575_v44 = vcombine.high %v1550_v35, %v1550_v35 }
  0xd8   : > { %v6578_v0 = vpop.permute.xlu1 %961  ;;  %1160 = vbcast.lane.b32.xlu0 %v725_v10, 256  ;;  %10694 = vst [vmem:[#allocation29_spill] sm:$0xff] %v6598_v19  ;;  %v737_v62 = vrot.slane %v464_v9, %v6355_v8 }
  0xda   : > { %1164 = vbcast.lane.b32.xlu1 %v725_v10, 264  ;;  %v965_v4 = vpop.permute.xlu0 %964  ;;  %v6593_v10 = vrot.slane %v1543_v63, %v6427_v49 }
  0xdb   : > { %v1558_v3 = vcombine.low %v958_v45, %v965_v4  ;;  %v1559_v36 = vcombine.high %v958_v45, %v965_v4 }
  0xdc   : > { %10693 = vst [vmem:[#allocation28_spill] sm:$0xff] %v6593_v10  ;;  %v6595_v52 = vpop.permute.xlu1 %968  ;;  %1167 = vbcast.lane.b32.xlu0 %v729_v57, 256  ;;  %v1591_v4 = vcombine.high %v6593_v10, %v6593_v10 }
  0xdd   : > { %v1566_v48 = vrot.slane %v1558_v3, %v6427_v49  ;;  %v6605_v45 = vrot.slane %v1559_v36, %v6427_v49  ;;  %v1974_v54 = vcombine.low %v6578_v0, %v6595_v52  ;;  %v6618_v3 = vrot.slane %v1958_v59, %v6427_v49 }
  0xde   : > { %1171 = vbcast.lane.b32.xlu1 %v729_v57, 264  ;;  %v972_v63 = vpop.permute.xlu0 %971  ;;  %v6634_v59 = vrot.slane %v1575_v44, %v6439_v7  ;;  %v6660_v43 = vrot.slane %v1591_v4, %v6439_v7 }
  0xdf   : > { %10696 = vst [vmem:[#allocation31_spill] sm:$0xff] %v6605_v45  ;;  %10697 = vst [vmem:[#allocation32_spill] sm:$0xff] %v6618_v3  ;;  %v1606_v36 = vcombine.low %v1566_v48, %v1566_v48  ;;  %v1607_v60 = vcombine.high %v1566_v48, %v1566_v48  ;;  %v1623_v57 = vcombine.high %v6605_v45, %v6605_v45 }
  0xe0   : > { %v6625_v42 = vrot.slane %v1974_v54, %v6427_v49  ;;  %v6627_v58 = vpop.permute.xlu1 %975  ;;  %1174 = vbcast.lane.b32.xlu0 %v733_v2, 256  ;;  %v6641_v54 = vrot.slane %v1574_v61, %v6439_v7  ;;  %v1991_v9 = vcombine.high %v6618_v3, %v6618_v3  ;;  %10703 = vst [vmem:[#allocation38_spill] sm:$0xff] %v6660_v43  ;;  %v6680_v3 = vld [vmem:[%s6341_s23 + $0x30] sm:$0xff] }
  0xe1   : > { %v6631_v35 = vrot.slane %v1606_v36, %v6439_v7  ;;  %v6637_v48 = vrot.slane %v1607_v60, %v6439_v7  ;;  %v6644_v31 = vrot.slane %v1623_v57, %v6439_v7  ;;  %v449_v36 = vrot.slane %v433_v28, %v6350_v5 }
  0xe2   : > { %10698 = vst [vmem:[#allocation33_spill] sm:$0xff] %v6625_v42  ;;  %1178 = vbcast.lane.b32.xlu1 %v733_v2, 264  ;;  %v979_v33 = vpop.permute.xlu0 %978  ;;  %10701 = vst [vmem:[#allocation36_spill] sm:$0xff] %v6641_v54  ;;  %v2023_v44 = vcombine.high %v6625_v42, %v6625_v42  ;;  %v6667_v28 = vrot.slane %v1991_v9, %v6439_v7  ;;  %v1959_v45 = vcombine.high %v6515_v6, %v6554_v37 }
  0xe3   : > { %10699 = vst [vmem:[#allocation34_spill] sm:$0xff] %v6631_v35  ;;  %10700 = vst [vmem:[#allocation35_spill] sm:$0xff] %v6637_v48  ;;  %v1646_v19 = vcombine.low %v972_v63, %v979_v33  ;;  %v1647_v57 = vcombine.high %v972_v63, %v979_v33  ;;  %v745_v4 = vrot.slane %v449_v36, %v6355_v8 }
  0xe4   : > { %10702 = vst [vmem:[#allocation37_spill] sm:$0xff] %v6644_v31  ;;  %v6653_v2 = vpop.permute.xlu1 %982  ;;  %1181 = vbcast.lane.b32.xlu0 %v737_v62, 256  ;;  %10704 = vst [vmem:[#allocation39_spill] sm:$0xff] %v6667_v28  ;;  %v6670_v61 = vrot.slane %v2023_v44, %v6439_v7 }
  0xe5   : > { %v1654_v27 = vrot.slane %v1646_v19, %v6427_v49  ;;  %v2062_v60 = vcombine.low %v6627_v58, %v6653_v2  ;;  %v6687_v44 = vrot.slane %v1647_v57, %v6427_v49 }
  0xe6   : > { %1185 = vbcast.lane.b32.xlu1 %v737_v62, 264  ;;  %v986_v53 = vpop.permute.xlu0 %985  ;;  %10705 = vst [vmem:[#allocation40_spill] sm:$0xff] %v6670_v61  ;;  %v463_v62 = vrot.slane %v435_v11, %v6350_v5  ;;  %v475_v61 = vrot.slane %v6680_v3, %v6350_v5 }
  0xe7   : > { %10706 = vst [vmem:[#allocation41_spill] sm:$0xff] %v6687_v44  ;;  %v1678_v16 = vcombine.low %v1654_v27, %v1654_v27  ;;  %v1679_v26 = vcombine.high %v1654_v27, %v1654_v27  ;;  %v6701_v28 = vrot.slane %v2062_v60, %v6427_v49 }
  0xe8   : > { %v6672_v34 = vpop.permute.xlu1 %989  ;;  %1188 = vbcast.lane.b32.xlu0 %v741_v38, 256  ;;  %v749_v19 = vrot.slane %v463_v62, %v6355_v8  ;;  %v467_v57 = vcombine.high %v463_v62, %v463_v62 }
  0xe9   : > { %10708 = vst [vmem:[#allocation43_spill] sm:$0xff] %v6701_v28  ;;  %v6714_v62 = vrot.slane %v1678_v16, %v6439_v7  ;;  %v2095_v16 = vcombine.high %v6701_v28, %v6701_v28 }
  0xea   : > { %1192 = vbcast.lane.b32.xlu1 %v741_v38, 264  ;;  %v993_v32 = vpop.permute.xlu0 %992  ;;  %v465_v38 = vcombine.high %v449_v36, %v449_v36  ;;  %v757_v43 = vrot.slane %v467_v57, %v6355_v8  ;;  %v483_v57 = vcombine.high %v475_v61, %v475_v61 }
  0xeb   : > { %v1662_v9 = vcombine.low %v986_v53, %v993_v32  ;;  %v1663_v42 = vcombine.high %v986_v53, %v993_v32  ;;  %10710 = vst [vmem:[#allocation45_spill] sm:$0xff] %v6714_v62 }
  0xec   : > { %v6689_v11 = vpop.permute.xlu1 %996  ;;  %1195 = vbcast.lane.b32.xlu0 %v745_v4, 256 }
  0xed   : > { %v1670_v32 = vrot.slane %v1662_v9, %v6427_v49  ;;  %v6694_v53 = vrot.slane %v1663_v42, %v6427_v49  ;;  %v2078_v33 = vcombine.low %v6672_v34, %v6689_v11  ;;  %v1695_v42 = vcombine.high %v6687_v44, %v6687_v44 }
  0xee   : > { %1199 = vbcast.lane.b32.xlu1 %v745_v4, 264  ;;  %v1000_v63 = vpop.permute.xlu0 %999  ;;  %v753_v4 = vrot.slane %v465_v38, %v6355_v8  ;;  %v505_v44 = vrot.slane %v483_v57, %v6350_v5 }
  0xef   : > { %10707 = vst [vmem:[#allocation42_spill] sm:$0xff] %v6694_v53  ;;  %v1710_v36 = vcombine.low %v1670_v32, %v1670_v32  ;;  %v1711_v23 = vcombine.high %v1670_v32, %v1670_v32  ;;  %v1727_v9 = vcombine.high %v6694_v53, %v6694_v53  ;;  %v6708_v29 = vrot.slane %v2078_v33, %v6427_v49 }
  0xf0   : > { %v6710_v27 = vpop.permute.xlu1 %1003  ;;  %1202 = vbcast.lane.b32.xlu0 %v749_v19, 256  ;;  %v6724_v33 = vrot.slane %v1679_v26, %v6439_v7  ;;  %v6743_v28 = vrot.slane %v1695_v42, %v6439_v7  ;;  %v6751_v53 = vrot.slane %v2095_v16, %v6439_v7 }
  0xf1   : > { %10709 = vst [vmem:[#allocation44_spill] sm:$0xff] %v6708_v29  ;;  %v6717_v60 = vrot.slane %v1710_v36, %v6439_v7  ;;  %v6720_v32 = vrot.slane %v1711_v23, %v6439_v7  ;;  %v6727_v51 = vrot.slane %v1727_v9, %v6439_v7  ;;  %v2127_v38 = vcombine.high %v6708_v29, %v6708_v29 }
  0xf2   : > { %1206 = vbcast.lane.b32.xlu1 %v749_v19, 264  ;;  %v1007_v31 = vpop.permute.xlu0 %1006  ;;  %10713 = vst [vmem:[#allocation48_spill] sm:$0xff] %v6724_v33  ;;  %v491_v36 = vrot.slane %v475_v61, %v6350_v5  ;;  %10715 = vst [vmem:[#allocation50_spill] sm:$0xff] %v6743_v28  ;;  %v515_v28 = vcombine.high %v505_v44, %v505_v44 }
  0xf3   : > { %10711 = vst [vmem:[#allocation46_spill] sm:$0xff] %v6717_v60  ;;  %10712 = vst [vmem:[#allocation47_spill] sm:$0xff] %v6720_v32  ;;  %v2166_v50 = vcombine.low %v1000_v63, %v1007_v31  ;;  %v6754_v26 = vrot.slane %v2127_v38, %v6439_v7  ;;  %v2167_v9 = vcombine.high %v1000_v63, %v1007_v31 }
  0xf4   : > { %10714 = vst [vmem:[#allocation49_spill] sm:$0xff] %v6727_v51  ;;  %v6736_v19 = vpop.permute.xlu1 %1010  ;;  %1209 = vbcast.lane.b32.xlu0 %v753_v4, 256  ;;  %v761_v61 = vrot.slane %v491_v36, %v6355_v8  ;;  %10716 = vst [vmem:[#allocation51_spill] sm:$0xff] %v6751_v53  ;;  %v513_v41 = vcombine.high %v491_v36, %v491_v36  ;;  %v1767_v31 = vcombine.high %v6422_v46, %v6434_v1 }
  0xf5   : > { %10717 = vst [vmem:[#allocation52_spill] sm:$0xff] %v6754_v26  ;;  %v2174_v23 = vrot.slane %v2166_v50, %v6427_v49  ;;  %v2582_v51 = vcombine.low %v6710_v27, %v6736_v19  ;;  %v765_v50 = vrot.slane %v505_v44, %v6355_v8 }
  0xf6   : > { %1213 = vbcast.lane.b32.xlu1 %v753_v4, 264  ;;  %v1014_v29 = vpop.permute.xlu0 %1013  ;;  %v468_v4 = vcombine.high %v6680_v3, %v6680_v3  ;;  %v6769_v3 = vrot.slane %v2167_v9, %v6427_v49  ;;  %v1751_v9 = vcombine.high %v6416_v39, %v6418_v40  ;;  %v6814_v37 = vrot.slane %v1767_v31, %v6427_v49 }
  0xf7   : > { %v2199_v10 = vcombine.high %v2174_v23, %v2174_v23  ;;  %v2198_v44 = vcombine.low %v2174_v23, %v2174_v23  ;;  %v6788_v26 = vrot.slane %v2582_v51, %v6427_v49 }
  0xf8   : > { %v6756_v42 = vpop.permute.xlu1 %1017  ;;  %1216 = vbcast.lane.b32.xlu0 %v757_v43, 256  ;;  %10718 = vst [vmem:[#allocation53_spill] sm:$0xff] %v6769_v3  ;;  %v482_v57 = vrot.slane %v468_v4, %v6350_v5  ;;  %v773_v4 = vrot.slane %v515_v28, %v6355_v8  ;;  %v2215_v39 = vcombine.high %v6769_v3, %v6769_v3  ;;  %10725 = vst [vmem:[#allocation60_spill] sm:$0xff] %v6814_v37 }
  0xf9   : > { %10720 = vst [vmem:[#allocation55_spill] sm:$0xff] %v6788_v26  ;;  %v6808_v23 = vrot.slane %v2199_v10, %v6439_v7  ;;  %v6825_v10 = vrot.slane %v1751_v9, %v6427_v49 }
  0xfa   : > { %1220 = vbcast.lane.b32.xlu1 %v757_v43, 264  ;;  %v1021_v16 = vpop.permute.xlu0 %1020  ;;  %v769_v43 = vrot.slane %v513_v41, %v6355_v8  ;;  %v6802_v1 = vrot.slane %v482_v57, %v6350_v5  ;;  %v484_v51 = vcombine.high %v482_v57, %v482_v57 }
  0xfb   : > { %v2182_v38 = vcombine.low %v1014_v29, %v1021_v16  ;;  %v2183_v56 = vcombine.high %v1014_v29, %v1021_v16  ;;  %10723 = vst [vmem:[#allocation58_spill] sm:$0xff] %v6808_v23  ;;  %10728 = vst [vmem:[#allocation63_spill] sm:$0xff] %v6825_v10 }
  0xfc   : > { %v6771_v36 = vpop.permute.xlu1 %1024  ;;  %1223 = vbcast.lane.b32.xlu0 %v761_v61, 256  ;;  %v777_v9 = vrot.slane %v6802_v1, %v6355_v8 }
  0xfd   : > { %v2190_v29 = vrot.slane %v2182_v38, %v6427_v49  ;;  %v6778_v16 = vrot.slane %v2183_v56, %v6427_v49  ;;  %v2598_v63 = vcombine.low %v6756_v42, %v6771_v36  ;;  %v2599_v15 = vcombine.high %v6756_v42, %v6771_v36 }
  0xfe   : > { %1227 = vbcast.lane.b32.xlu1 %v761_v61, 264  ;;  %v1028_v41 = vpop.permute.xlu0 %1027  ;;  %v1975_v61 = vcombine.high %v6578_v0, %v6595_v52  ;;  %v6834_v0 = vrot.slane %v1959_v45, %v6427_v49  ;;  %v1831_v45 = vcombine.high %v6814_v37, %v6814_v37  ;;  %v1799_v37 = vcombine.high %v6825_v10, %v6825_v10 }
  0xff   : > { %10719 = vst [vmem:[#allocation54_spill] sm:$0xff] %v6778_v16  ;;  %v2230_v38 = vcombine.low %v2190_v29, %v2190_v29  ;;  %v2231_v56 = vcombine.high %v2190_v29, %v2190_v29  ;;  %v2247_v53 = vcombine.high %v6778_v16, %v6778_v16  ;;  %v6797_v40 = vrot.slane %v2598_v63, %v6427_v49 }
 0x100   : > { %v6799_v46 = vpop.permute.xlu1 %1031  ;;  %1230 = vbcast.lane.b32.xlu0 %v765_v50, 256  ;;  %v6819_v29 = vrot.slane %v2198_v44, %v6439_v7  ;;  %10729 = vst [vmem:[#allocation64_spill] sm:$0xff] %v6834_v0  ;;  %v6843_v44 = vrot.slane %v2215_v39, %v6439_v7  ;;  %v6851_v52 = vrot.slane %v1975_v61, %v6427_v49 }
 0x101   : > { %10721 = vst [vmem:[#allocation56_spill] sm:$0xff] %v6797_v40  ;;  %v6805_v28 = vrot.slane %v2230_v38, %v6439_v7  ;;  %v6811_v6 = vrot.slane %v2231_v56, %v6439_v7  ;;  %v6822_v57 = vrot.slane %v2247_v53, %v6439_v7  ;;  %v2615_v38 = vcombine.high %v6788_v26, %v6788_v26 }
 0x102   : > { %1234 = vbcast.lane.b32.xlu1 %v765_v50, 264  ;;  %v1035_v63 = vpop.permute.xlu0 %1034  ;;  %10726 = vst [vmem:[#allocation61_spill] sm:$0xff] %v6819_v29  ;;  %v2647_v31 = vcombine.high %v6797_v40, %v6797_v40  ;;  %10730 = vst [vmem:[#allocation65_spill] sm:$0xff] %v6843_v44  ;;  %v6846_v40 = vrot.slane %v484_v51, %v6350_v5  ;;  %v2039_v53 = vcombine.high %v6851_v52, %v6851_v52 }
 0x103   : > { %10722 = vst [vmem:[#allocation57_spill] sm:$0xff] %v6805_v28  ;;  %10724 = vst [vmem:[#allocation59_spill] sm:$0xff] %v6811_v6  ;;  %v2270_v56 = vcombine.low %v1028_v41, %v1035_v63  ;;  %v6858_v39 = vrot.slane %v2615_v38, %v6439_v7  ;;  %v2271_v61 = vcombine.high %v1028_v41, %v1035_v63 }
 0x104   : > { %10727 = vst [vmem:[#allocation62_spill] sm:$0xff] %v6822_v57  ;;  %v6836_v50 = vpop.permute.xlu1 %1038  ;;  %1237 = vbcast.lane.b32.xlu0 %v769_v43, 256  ;;  %10731 = vst [vmem:[#allocation66_spill] sm:$0xff] %v6851_v52  ;;  %v6861_v51 = vrot.slane %v2647_v31, %v6439_v7  ;;  %v781_v31 = vrot.slane %v6846_v40, %v6355_v8  ;;  %v514_v41 = vcombine.high %v6802_v1, %v6802_v1 }
 0x105   : > { %10732 = vst [vmem:[#allocation67_spill] sm:$0xff] %v6858_v39  ;;  %v2278_v38 = vrot.slane %v2270_v56, %v6427_v49  ;;  %v2686_v10 = vcombine.low %v6799_v46, %v6836_v50  ;;  %v6881_v63 = vrot.slane %v1831_v45, %v6439_v7  ;;  %v6884_v56 = vld [vmem:[%s6341_s23 + $0x38] sm:$0xff]  ;;  %v6891_v13 = vrot.slane %v2271_v61, %v6427_v49  ;;  %s6018_s23 = sshll.u32 %s6210_s9, 11  ;;  %s5895_s9 = scalar_lea.sflag [#allocation4], %s6337_s16 }
 0x106   : > { %1241 = vbcast.lane.b32.xlu1 %v769_v43, 264  ;;  %v1042_v26 = vpop.permute.xlu0 %1041  ;;  %10733 = vst [vmem:[#allocation68_spill] sm:$0xff] %v6861_v51  ;;  %v2007_v43 = vcombine.high %v6834_v0, %v6834_v0  ;;  %v516_v1 = vcombine.high %v6846_v40, %v6846_v40  ;;  %v6898_v45 = vrot.slane %v1799_v37, %v6439_v7 }
 0x107   : > { %10734 = vst [vmem:[#allocation69_spill] sm:$0xff] %v6881_v63  ;;  %10735 = vst [vmem:[#allocation70_spill] sm:$0xff] %v6891_v13  ;;  %v2303_v51 = vcombine.high %v2278_v38, %v2278_v38  ;;  %v524_v40 = vrot.slane %v6884_v56, %v6350_v5 }
 0x108   : > { %v6867_v3 = vpop.permute.xlu1 %1045  ;;  %1244 = vbcast.lane.b32.xlu0 %v773_v4, 256  ;;  %10736 = vst [vmem:[#allocation71_spill] sm:$0xff] %v6898_v45  ;;  %v789_v22 = vrot.slane %v516_v1, %v6355_v8 }
 0x109   : > { %v532_v37 = vcombine.high %v524_v40, %v524_v40  ;;  %v540_v42 = vrot.slane %v524_v40, %v6350_v5 }
 0x10a   : > { %1248 = vbcast.lane.b32.xlu1 %v773_v4, 264  ;;  %v1049_v0 = vpop.permute.xlu0 %1048 }
 0x10b   : > { %v2286_v57 = vcombine.low %v1042_v26, %v1049_v0  ;;  %v2287_v44 = vcombine.high %v1042_v26, %v1049_v0  ;;  %v6901_v26 = vrot.slane %v2007_v43, %v6439_v7  ;;  %v2302_v0 = vcombine.low %v2278_v38, %v2278_v38 }
 0x10c   : > { %v6893_v4 = vpop.permute.xlu1 %1052  ;;  %1251 = vbcast.lane.b32.xlu0 %v777_v9, 256  ;;  %v6916_v43 = vrot.slane %v2039_v53, %v6439_v7  ;;  %v785_v53 = vrot.slane %v514_v41, %v6355_v8  ;;  %v554_v1 = vrot.slane %v532_v37, %v6350_v5 }
 0x10d   : > { %10737 = vst [vmem:[#allocation72_spill] sm:$0xff] %v6901_v26  ;;  %v2294_v16 = vrot.slane %v2286_v57, %v6427_v49  ;;  %v6905_v52 = vrot.slane %v2287_v44, %v6427_v49  ;;  %v2702_v61 = vcombine.low %v6867_v3, %v6893_v4  ;;  %v6919_v57 = vrot.slane %v2686_v10, %v6427_v49 }
 0x10e   : > { %1255 = vbcast.lane.b32.xlu1 %v777_v9, 264  ;;  %v6909_v39 = vpop.permute.xlu0 %1055  ;;  %10739 = vst [vmem:[#allocation74_spill] sm:$0xff] %v6916_v43  ;;  %v2319_v9 = vcombine.high %v6891_v13, %v6891_v13  ;;  %v6947_v10 = vrot.slane %v2303_v51, %v6439_v7  ;;  %v797_v51 = vrot.slane %v554_v1, %v6355_v8 }
 0x10f   : > { %10738 = vst [vmem:[#allocation73_spill] sm:$0xff] %v6905_v52  ;;  %10740 = vst [vmem:[#allocation75_spill] sm:$0xff] %v6919_v57  ;;  %v2334_v44 = vcombine.low %v2294_v16, %v2294_v16  ;;  %v2335_v17 = vcombine.high %v2294_v16, %v2294_v16  ;;  %v2351_v38 = vcombine.high %v6905_v52, %v6905_v52 }
 0x110   : > { %v6926_v32 = vrot.slane %v2702_v61, %v6427_v49  ;;  %v6928_v33 = vpop.permute.xlu1 %1059  ;;  %1258 = vbcast.lane.b32.xlu0 %v781_v31, 256  ;;  %v6934_v16 = vrot.slane %v2302_v0, %v6439_v7  ;;  %v2583_v61 = vcombine.high %v6710_v27, %v6736_v19  ;;  %10745 = vst [vmem:[#allocation80_spill] sm:$0xff] %v6947_v10 }
 0x111   : > { %v6937_v52 = vrot.slane %v2334_v44, %v6439_v7  ;;  %v6940_v13 = vrot.slane %v2335_v17, %v6439_v7  ;;  %v6950_v0 = vrot.slane %v2351_v38, %v6439_v7  ;;  %v2719_v44 = vcombine.high %v6919_v57, %v6919_v57 }
 0x112   : > { %10741 = vst [vmem:[#allocation76_spill] sm:$0xff] %v6926_v32  ;;  %10742 = vst [vmem:[#allocation77_spill] sm:$0xff] %v6934_v16  ;;  %1262 = vbcast.lane.b32.xlu1 %v781_v31, 264  ;;  %v1063_v41 = vpop.permute.xlu0 %1062  ;;  %v2751_v17 = vcombine.high %v6926_v32, %v6926_v32  ;;  %v6967_v31 = vrot.slane %v2319_v9, %v6439_v7  ;;  %v6972_v27 = vrot.slane %v2583_v61, %v6427_v49 }
 0x113   : > { %10743 = vst [vmem:[#allocation78_spill] sm:$0xff] %v6937_v52  ;;  %10744 = vst [vmem:[#allocation79_spill] sm:$0xff] %v6940_v13  ;;  %v2374_v38 = vcombine.low %v6909_v39, %v1063_v41  ;;  %v6975_v32 = vrot.slane %v2599_v15, %v6427_v49  ;;  %v6982_v9 = vrot.slane %v2719_v44, %v6439_v7 }
 0x114   : > { %10746 = vst [vmem:[#allocation81_spill] sm:$0xff] %v6950_v0  ;;  %v6959_v19 = vpop.permute.xlu1 %1066  ;;  %1265 = vbcast.lane.b32.xlu0 %v785_v53, 256  ;;  %10747 = vst [vmem:[#allocation82_spill] sm:$0xff] %v6967_v31  ;;  %v6985_v57 = vrot.slane %v2751_v17, %v6439_v7  ;;  %v2375_v37 = vcombine.high %v6909_v39, %v1063_v41  ;;  %v793_v15 = vrot.slane %v540_v42, %v6355_v8 }
 0x115   : > { %10748 = vst [vmem:[#allocation83_spill] sm:$0xff] %v6972_v27  ;;  %10749 = vst [vmem:[#allocation84_spill] sm:$0xff] %v6975_v32  ;;  %v2382_v36 = vrot.slane %v2374_v38, %v6427_v49  ;;  %v2631_v44 = vcombine.high %v6972_v27, %v6972_v27  ;;  %v2663_v17 = vcombine.high %v6975_v32, %v6975_v32 }
 0x116   : > { %1269 = vbcast.lane.b32.xlu1 %v785_v53, 264  ;;  %v1070_v40 = vpop.permute.xlu0 %1069  ;;  %10750 = vst [vmem:[#allocation85_spill] sm:$0xff] %v6982_v9  ;;  %10751 = vst [vmem:[#allocation86_spill] sm:$0xff] %v6985_v57  ;;  %v517_v53 = vcombine.high %v6884_v56, %v6884_v56  ;;  %v2790_v39 = vcombine.low %v6928_v33, %v6959_v19  ;;  %v562_v0 = vcombine.high %v540_v42, %v540_v42 }
 0x117   : > { %v1855_v27 = vcombine.high %v6429_v55, %v6448_v18  ;;  %v7008_v10 = vrot.slane %v2375_v37, %v6427_v49  ;;  %v2407_v6 = vcombine.high %v2382_v36, %v2382_v36  ;;  %v1871_v55 = vcombine.high %v6469_v30, %v6487_v47 }
 0x118   : > { %v6988_v61 = vpop.permute.xlu1 %1073  ;;  %1272 = vbcast.lane.b32.xlu0 %v789_v22, 256  ;;  %v531_v42 = vrot.slane %v517_v53, %v6350_v5  ;;  %v2406_v18 = vcombine.low %v2382_v36, %v2382_v36  ;;  %v7022_v56 = vrot.slane %v2631_v44, %v6439_v7 }
 0x119   : > { %10752 = vst [vmem:[#allocation87_spill] sm:$0xff] %v7008_v10  ;;  %v2423_v30 = vcombine.high %v7008_v10, %v7008_v10  ;;  %v7056_v10 = vrot.slane %v1871_v55, %v6427_v49 }
 0x11a   : > { %1276 = vbcast.lane.b32.xlu1 %v789_v22, 264  ;;  %v1077_v41 = vpop.permute.xlu0 %1076  ;;  %v564_v22 = vcombine.high %v554_v1, %v554_v1  ;;  %10754 = vst [vmem:[#allocation89_spill] sm:$0xff] %v7022_v56  ;;  %v7025_v1 = vrot.slane %v2663_v17, %v6439_v7  ;;  %v7059_v44 = vrot.slane %v2406_v18, %v6439_v7 }
 0x11b   : > { %v2390_v31 = vcombine.low %v1070_v40, %v1077_v41  ;;  %v2391_v13 = vcombine.high %v1070_v40, %v1077_v41  ;;  %10762 = vst [vmem:[#allocation97_spill] sm:$0xff] %v7056_v10  ;;  %v1935_v55 = vcombine.high %v7056_v10, %v7056_v10 }
 0x11c   : > { %v7010_v32 = vpop.permute.xlu1 %1080  ;;  %1279 = vbcast.lane.b32.xlu0 %v793_v15, 256  ;;  %10755 = vst [vmem:[#allocation90_spill] sm:$0xff] %v7025_v1  ;;  %v805_v17 = vrot.slane %v564_v22, %v6355_v8  ;;  %10763 = vst [vmem:[#allocation98_spill] sm:$0xff] %v7059_v44 }
 0x11d   : > { %v2398_v40 = vrot.slane %v2390_v31, %v6427_v49  ;;  %v7015_v41 = vrot.slane %v2391_v13, %v6427_v49  ;;  %v2806_v38 = vcombine.low %v6988_v61, %v7010_v32  ;;  %v7028_v31 = vrot.slane %v2790_v39, %v6427_v49 }
 0x11e   : > { %1283 = vbcast.lane.b32.xlu1 %v793_v15, 264  ;;  %v1084_v37 = vpop.permute.xlu0 %1083  ;;  %v801_v15 = vrot.slane %v562_v0, %v6355_v8 }
 0x11f   : > { %10753 = vst [vmem:[#allocation88_spill] sm:$0xff] %v7015_v41  ;;  %10756 = vst [vmem:[#allocation91_spill] sm:$0xff] %v7028_v31  ;;  %v2438_v13 = vcombine.low %v2398_v40, %v2398_v40  ;;  %v2439_v53 = vcombine.high %v2398_v40, %v2398_v40  ;;  %v2455_v57 = vcombine.high %v7015_v41, %v7015_v41 }
 0x120   : > { %v7035_v47 = vrot.slane %v2806_v38, %v6427_v49  ;;  %v7037_v36 = vpop.permute.xlu1 %1087  ;;  %1286 = vbcast.lane.b32.xlu0 %v797_v51, 256  ;;  %v7047_v40 = vrot.slane %v2407_v6, %v6439_v7  ;;  %v7053_v38 = vrot.slane %v1855_v27, %v6427_v49  ;;  %v2823_v6 = vcombine.high %v7028_v31, %v7028_v31 }
 0x121   : > { %v7044_v39 = vrot.slane %v2438_v13, %v6439_v7  ;;  %v7050_v9 = vrot.slane %v2439_v53, %v6439_v7  ;;  %v7062_v22 = vrot.slane %v2455_v57, %v6439_v7  ;;  %v547_v27 = vrot.slane %v531_v42, %v6350_v5 }
 0x122   : > { %10757 = vst [vmem:[#allocation92_spill] sm:$0xff] %v7035_v47  ;;  %10759 = vst [vmem:[#allocation94_spill] sm:$0xff] %v7047_v40  ;;  %1290 = vbcast.lane.b32.xlu1 %v797_v51, 264  ;;  %v1091_v0 = vpop.permute.xlu0 %1090  ;;  %v2855_v13 = vcombine.high %v7035_v47, %v7035_v47  ;;  %v533_v51 = vcombine.high %v531_v42, %v531_v42  ;;  %v7078_v31 = vrot.slane %v2423_v30, %v6439_v7 }
 0x123   : > { %10758 = vst [vmem:[#allocation93_spill] sm:$0xff] %v7044_v39  ;;  %10760 = vst [vmem:[#allocation95_spill] sm:$0xff] %v7050_v9  ;;  %v2478_v41 = vcombine.low %v1084_v37, %v1091_v0  ;;  %v1903_v47 = vcombine.high %v7053_v38, %v7053_v38  ;;  %v7089_v57 = vrot.slane %v2823_v6, %v6439_v7 }
 0x124   : > { %10761 = vst [vmem:[#allocation96_spill] sm:$0xff] %v7053_v38  ;;  %10764 = vst [vmem:[#allocation99_spill] sm:$0xff] %v7062_v22  ;;  %v7071_v53 = vpop.permute.xlu1 %1094  ;;  %1293 = vbcast.lane.b32.xlu0 %v801_v15, 256  ;;  %v7092_v30 = vrot.slane %v2855_v13, %v6439_v7  ;;  %v2479_v9 = vcombine.high %v1084_v37, %v1091_v0  ;;  %v809_v10 = vrot.slane %v547_v27, %v6355_v8 }
 0x125   : > { %10765 = vst [vmem:[#allocation100_spill] sm:$0xff] %v7078_v31  ;;  %10766 = vst [vmem:[#allocation101_spill] sm:$0xff] %v7089_v57  ;;  %v2486_v38 = vrot.slane %v2478_v41, %v6427_v49  ;;  %v2894_v42 = vcombine.low %v7037_v36, %v7071_v53  ;;  %v7102_v6 = vrot.slane %v1903_v47, %v6439_v7 }
 0x126   : > { %1297 = vbcast.lane.b32.xlu1 %v801_v15, 264  ;;  %v1098_v23 = vpop.permute.xlu0 %1097  ;;  %10767 = vst [vmem:[#allocation102_spill] sm:$0xff] %v7092_v30  ;;  %v561_v15 = vrot.slane %v533_v51, %v6350_v5  ;;  %v7105_v13 = vrot.slane %v1935_v55, %v6439_v7  ;;  %v7112_v41 = vrot.slane %v2479_v9, %v6427_v49 }
 0x127   : > { %10768 = vst [vmem:[#allocation103_spill] sm:$0xff] %v7102_v6  ;;  %v2510_v55 = vcombine.low %v2486_v38, %v2486_v38  ;;  %v2063_v9 = vcombine.high %v6627_v58, %v6653_v2  ;;  %v2511_v5 = vcombine.high %v2486_v38, %v2486_v38  ;;  %v2079_v57 = vcombine.high %v6672_v34, %v6689_v11 }
 0x128   : > { %v7094_v40 = vpop.permute.xlu1 %1101  ;;  %1300 = vbcast.lane.b32.xlu0 %v805_v17, 256  ;;  %10769 = vst [vmem:[#allocation104_spill] sm:$0xff] %v7105_v13  ;;  %10770 = vst [vmem:[#allocation105_spill] sm:$0xff] %v7112_v41  ;;  %v813_v47 = vrot.slane %v561_v15, %v6355_v8  ;;  %v565_v31 = vcombine.high %v561_v15, %v561_v15  ;;  %v2527_v58 = vcombine.high %v7112_v41, %v7112_v41 }
 0x129   : > { %v2791_v11 = vcombine.high %v6928_v33, %v6959_v19  ;;  %v7172_v19 = vrot.slane %v2079_v57, %v6427_v49 }
 0x12a   : > { %1304 = vbcast.lane.b32.xlu1 %v805_v17, 264  ;;  %v1105_v18 = vpop.permute.xlu0 %1104  ;;  %v563_v17 = vcombine.high %v547_v27, %v547_v27  ;;  %v7128_v27 = vrot.slane %v2894_v42, %v6427_v49  ;;  %v821_v42 = vrot.slane %v565_v31, %v6355_v8  ;;  %v7163_v31 = vrot.slane %v2063_v9, %v6427_v49 }
 0x12b   : > { %v2494_v37 = vcombine.low %v1098_v23, %v1105_v18  ;;  %v2495_v0 = vcombine.high %v1098_v23, %v1105_v18  ;;  %10778 = vst [vmem:[#allocation113_spill] sm:$0xff] %v7172_v19  ;;  %v7181_v9 = vrot.slane %v2527_v58, %v6439_v7 }
 0x12c   : > { %v7114_v51 = vpop.permute.xlu1 %1108  ;;  %1307 = vbcast.lane.b32.xlu0 %v809_v10, 256  ;;  %10772 = vst [vmem:[#allocation107_spill] sm:$0xff] %v7128_v27  ;;  %v817_v38 = vrot.slane %v563_v17, %v6355_v8  ;;  %v7157_v17 = vrot.slane %v2511_v5, %v6439_v7  ;;  %10777 = vst [vmem:[#allocation112_spill] sm:$0xff] %v7163_v31  ;;  %v1431_v5 = vcombine.high %v6459_v24, %v6452_v20 }
 0x12d   : > { %v2502_v48 = vrot.slane %v2494_v37, %v6427_v49  ;;  %v7119_v23 = vrot.slane %v2495_v0, %v6427_v49  ;;  %v2910_v18 = vcombine.low %v7094_v40, %v7114_v51  ;;  %10779 = vst [vmem:[#allocation114_spill] sm:$0xff] %v7181_v9 }
 0x12e   : > { %1311 = vbcast.lane.b32.xlu1 %v809_v10, 264  ;;  %v1112_v22 = vpop.permute.xlu0 %1111 }
 0x12f   : > { %10771 = vst [vmem:[#allocation106_spill] sm:$0xff] %v7119_v23  ;;  %v2542_v15 = vcombine.low %v2502_v48, %v2502_v48  ;;  %v2543_v37 = vcombine.high %v2502_v48, %v2502_v48  ;;  %v2559_v0 = vcombine.high %v7119_v23, %v7119_v23  ;;  %v7137_v2 = vrot.slane %v2910_v18, %v6427_v49 }
 0x130   : > { %v7139_v10 = vpop.permute.xlu1 %1115  ;;  %1314 = vbcast.lane.b32.xlu0 %v813_v47, 256  ;;  %v7144_v48 = vrot.slane %v2510_v55, %v6439_v7  ;;  %v2807_v18 = vcombine.high %v6988_v61, %v7010_v32  ;;  %v2927_v55 = vcombine.high %v7128_v27, %v7128_v27 }
 0x131   : > { %10773 = vst [vmem:[#allocation108_spill] sm:$0xff] %v7137_v2  ;;  %v7147_v30 = vrot.slane %v2542_v15, %v6439_v7  ;;  %v7150_v34 = vrot.slane %v2543_v37, %v6439_v7  ;;  %v7160_v8 = vrot.slane %v2559_v0, %v6439_v7  ;;  %v2959_v33 = vcombine.high %v7137_v2, %v7137_v2 }
 0x132   : > { %10774 = vst [vmem:[#allocation109_spill] sm:$0xff] %v7144_v48  ;;  %1318 = vbcast.lane.b32.xlu1 %v813_v47, 264  ;;  %v1119_v41 = vpop.permute.xlu0 %1118  ;;  %v7184_v37 = vrot.slane %v2791_v11, %v6427_v49  ;;  %v7187_v0 = vrot.slane %v2807_v18, %v6427_v49  ;;  %v7194_v47 = vrot.slane %v2927_v55, %v6439_v7 }
 0x133   : > { %10775 = vst [vmem:[#allocation110_spill] sm:$0xff] %v7147_v30  ;;  %10776 = vst [vmem:[#allocation111_spill] sm:$0xff] %v7160_v8  ;;  %v2998_v15 = vcombine.low %v1112_v22, %v1119_v41  ;;  %v7197_v58 = vrot.slane %v2959_v33, %v6439_v7  ;;  %v2111_v11 = vcombine.high %v7163_v31, %v7163_v31 }
 0x134   : > { %v7174_v61 = vpop.permute.xlu1 %1122  ;;  %1321 = vbcast.lane.b32.xlu0 %v817_v38, 256  ;;  %10780 = vst [vmem:[#allocation115_spill] sm:$0xff] %v7184_v37  ;;  %10781 = vst [vmem:[#allocation116_spill] sm:$0xff] %v7187_v0  ;;  %v2143_v18 = vcombine.high %v7172_v19, %v7172_v19  ;;  %v2839_v55 = vcombine.high %v7184_v37, %v7184_v37  ;;  %v2871_v33 = vcombine.high %v7187_v0, %v7187_v0 }
 0x135   : > { %10782 = vst [vmem:[#allocation117_spill] sm:$0xff] %v7194_v47  ;;  %10783 = vst [vmem:[#allocation118_spill] sm:$0xff] %v7197_v58  ;;  %v3006_v32 = vrot.slane %v2998_v15, %v6427_v49  ;;  %v3414_v31 = vcombine.low %v7139_v10, %v7174_v61  ;;  %v3415_v47 = vcombine.high %v7139_v10, %v7174_v61 }
 0x136   : > { %1325 = vbcast.lane.b32.xlu1 %v817_v38, 264  ;;  %v1126_v57 = vpop.permute.xlu0 %1125  ;;  %v2999_v38 = vcombine.high %v1112_v22, %v1119_v41  ;;  %v1535_v22 = vcombine.high %v6520_v12, %v6523_v14  ;;  %v7229_v14 = vrot.slane %v2111_v11, %v6439_v7  ;;  %v1743_v11 = vcombine.high %v6714_v62, %v6717_v60 }
 0x137   : > { %v3030_v12 = vcombine.low %v3006_v32, %v3006_v32 }
 0x138   : > { %v7203_v2 = vpop.permute.xlu1 %1129  ;;  %1328 = vbcast.lane.b32.xlu0 %v821_v42, 256  ;;  %v7221_v24 = vrot.slane %v2999_v38, %v6427_v49  ;;  %10785 = vst [vmem:[#allocation120_spill] sm:$0xff] %v7229_v14 }
 0x13a   : > { %1332 = vbcast.lane.b32.xlu1 %v821_v42, 264  ;;  %v1133_v19 = vpop.permute.xlu0 %1132  ;;  %10784 = vst [vmem:[#allocation119_spill] sm:$0xff] %v7221_v24  ;;  %v1639_v42 = vcombine.high %v6641_v54, %v6631_v35  ;;  %v7244_v35 = vrot.slane %v2839_v55, %v6439_v7 }
 0x13b   : > { %v3014_v41 = vcombine.low %v1126_v57, %v1133_v19  ;;  %v3015_v27 = vcombine.high %v1126_v57, %v1133_v19  ;;  %v7232_v19 = vrot.slane %v2143_v18, %v6439_v7  ;;  %v3031_v57 = vcombine.high %v3006_v32, %v3006_v32 }
 0x13c   : > { %v7223_v0 = vpop.permute.xlu1 %1136  ;;  %4678 = vrot.lane.b32.xlu0 %v1431_v5, %s6226_s18  ;;  %10787 = vst [vmem:[#allocation122_spill] sm:$0xff] %v7244_v35  ;;  %v7247_v18 = vrot.slane %v2871_v33, %v6439_v7 }
 0x13d   : > { %10786 = vst [vmem:[#allocation121_spill] sm:$0xff] %v7232_v19  ;;  %v3022_v20 = vrot.slane %v3014_v41, %v6427_v49  ;;  %v7236_v38 = vrot.slane %v3015_v27, %v6427_v49  ;;  %v3430_v15 = vcombine.low %v7203_v2, %v7223_v0  ;;  %v7250_v41 = vrot.slane %v3414_v31, %v6427_v49 }
 0x13e   : > { %4680 = vrot.lane.b32.xlu1 %v1535_v22, %s6226_s18  ;;  %v1140_v5 = vpop.permute.xlu0 %1139  ;;  %10788 = vst [vmem:[#allocation123_spill] sm:$0xff] %v7247_v18  ;;  %v3047_v22 = vcombine.high %v7221_v24, %v7221_v24  ;;  %v7272_v62 = vrot.slane %v3031_v57, %v6439_v7  ;;  %v2263_v31 = vcombine.high %v6819_v29, %v6805_v28 }
 0x13f   : > { %10789 = vst [vmem:[#allocation124_spill] sm:$0xff] %v7250_v41  ;;  %v3062_v27 = vcombine.low %v3022_v20, %v3022_v20  ;;  %v3063_v54 = vcombine.high %v3022_v20, %v3022_v20  ;;  %v3079_v32 = vcombine.high %v7236_v38, %v7236_v38  ;;  %v7257_v37 = vrot.slane %v3430_v15, %v6427_v49 }
 0x140   : > { %v7259_v60 = vpop.permute.xlu1 %1143  ;;  %4682 = vrot.lane.b32.xlu0 %v1639_v42, %s6226_s18  ;;  %v2687_v20 = vcombine.high %v6799_v46, %v6836_v50  ;;  %v2703_v42 = vcombine.high %v6867_v3, %v6893_v4  ;;  %v7283_v46 = vrot.slane %v3030_v12, %v6439_v7  ;;  %v3447_v57 = vcombine.high %v7250_v41, %v7250_v41 }
 0x141   : > { %10790 = vst [vmem:[#allocation125_spill] sm:$0xff] %v7257_v37  ;;  %v7269_v33 = vrot.slane %v3062_v27, %v6439_v7  ;;  %v7275_v15 = vrot.slane %v3063_v54, %v6439_v7  ;;  %v7286_v50 = vrot.slane %v3079_v32, %v6439_v7  ;;  %v3479_v54 = vcombine.high %v7257_v37, %v7257_v37 }
 0x142   : > { %4684 = vrot.lane.b32.xlu1 %v1743_v11, %s6226_s18  ;;  %v1147_v55 = vpop.permute.xlu0 %1146  ;;  %10792 = vst [vmem:[#allocation127_spill] sm:$0xff] %v7283_v46  ;;  %v2367_v12 = vcombine.high %v6934_v16, %v6937_v52  ;;  %v7304_v32 = vrot.slane %v3047_v22, %v6439_v7  ;;  %v7307_v28 = vrot.slane %v2687_v20, %v6427_v49 }
 0x143   : > { %10791 = vst [vmem:[#allocation126_spill] sm:$0xff] %v7269_v33  ;;  %10793 = vst [vmem:[#allocation128_spill] sm:$0xff] %v7286_v50  ;;  %v3102_v3 = vcombine.low %v1140_v5, %v1147_v55  ;;  %v7310_v29 = vrot.slane %v2703_v42, %v6427_v49  ;;  %v2471_v52 = vcombine.high %v7059_v44, %v7044_v39 }
 0x144   : > { %v7294_v4 = vpop.permute.xlu1 %1150  ;;  %4686 = vrot.lane.b32.xlu0 %v2263_v31, %s6226_s18  ;;  %10794 = vst [vmem:[#allocation129_spill] sm:$0xff] %v7304_v32  ;;  %10795 = vst [vmem:[#allocation130_spill] sm:$0xff] %v7307_v28  ;;  %v7320_v27 = vrot.slane %v3447_v57, %v6439_v7  ;;  %v7323_v20 = vrot.slane %v3479_v54, %v6439_v7  ;;  %v3103_v42 = vcombine.high %v1140_v5, %v1147_v55 }
 0x145   : > { %10796 = vst [vmem:[#allocation131_spill] sm:$0xff] %v7310_v29  ;;  %v3110_v39 = vrot.slane %v3102_v3, %v6427_v49  ;;  %v2735_v11 = vcombine.high %v7307_v28, %v7307_v28  ;;  %v2767_v57 = vcombine.high %v7310_v29, %v7310_v29  ;;  %v3518_v54 = vcombine.low %v7259_v60, %v7294_v4 }
 0x146   : > { %4688 = vrot.lane.b32.xlu1 %v2367_v12, %s6226_s18  ;;  %v1154_v31 = vpop.permute.xlu0 %1153  ;;  %10797 = vst [vmem:[#allocation132_spill] sm:$0xff] %v7320_v27  ;;  %10798 = vst [vmem:[#allocation133_spill] sm:$0xff] %v7323_v20  ;;  %v2575_v12 = vcombine.high %v7144_v48, %v7147_v30  ;;  %v7345_v48 = vrot.slane %v3103_v42, %v6427_v49 }
 0x147   : > { %v7357_v30 = vrot.slane %v2735_v11, %v6439_v7  ;;  %v7360_v42 = vrot.slane %v2767_v57, %v6439_v7 }
 0x148   : > { %v7325_v16 = vpop.permute.xlu1 %1157  ;;  %4690 = vrot.lane.b32.xlu0 %v2471_v52, %s6226_s18  ;;  %v3095_v52 = vcombine.high %v7283_v46, %v7269_v33  ;;  %10799 = vst [vmem:[#allocation134_spill] sm:$0xff] %v7345_v48  ;;  %v7363_v46 = vrot.slane %v3518_v54, %v6427_v49 }
 0x149   : > { %10801 = vst [vmem:[#allocation136_spill] sm:$0xff] %v7357_v30  ;;  %10802 = vst [vmem:[#allocation137_spill] sm:$0xff] %v7360_v42  ;;  %v10891_v42 = vld [vmem:[#allocation59_spill] sm:$0xff] }
 0x14a   : > { %4692 = vrot.lane.b32.xlu1 %v2575_v12, %s6226_s18  ;;  %v1161_v5 = vpop.permute.xlu0 %1160  ;;  %v3134_v12 = vcombine.low %v3110_v39, %v3110_v39  ;;  %10803 = vst [vmem:[#allocation138_spill] sm:$0xff] %v7363_v46 }
 0x14b   : > { %v3118_v55 = vcombine.low %v1154_v31, %v1161_v5  ;;  %v3119_v22 = vcombine.high %v1154_v31, %v1161_v5  ;;  %v3135_v5 = vcombine.high %v3110_v39, %v3110_v39 }
 0x14c   : > { %v7347_v44 = vpop.permute.xlu1 %1164  ;;  %4694 = vrot.lane.b32.xlu0 %v3095_v52, %s6226_s18  ;;  %v7377_v57 = vrot.slane %v3134_v12, %v6439_v7  ;;  %v3551_v12 = vcombine.high %v7363_v46, %v7363_v46 }
 0x14d   : > { %v3126_v29 = vrot.slane %v3118_v55, %v6427_v49  ;;  %v7352_v33 = vrot.slane %v3119_v22, %v6427_v49  ;;  %v3534_v31 = vcombine.low %v7325_v16, %v7347_v44  ;;  %v3151_v55 = vcombine.high %v7345_v48, %v7345_v48 }
 0x14e   : > { %v1168_v3 = vpop.permute.xlu0 %1167  ;;  %10805 = vst [vmem:[#allocation140_spill] sm:$0xff] %v7377_v57  ;;  %v7390_v27 = vrot.slane %v3135_v5, %v6439_v7  ;;  %v7424_v5 = vrot.slane %v3551_v12, %v6439_v7 }
 0x14f   : > { %10800 = vst [vmem:[#allocation135_spill] sm:$0xff] %v7352_v33  ;;  %v3166_v52 = vcombine.low %v3126_v29, %v3126_v29  ;;  %v3167_v28 = vcombine.high %v3126_v29, %v3126_v29  ;;  %v3183_v22 = vcombine.high %v7352_v33, %v7352_v33  ;;  %v7370_v39 = vrot.slane %v3534_v31, %v6427_v49 }
 0x150   : > { %v7372_v58 = vpop.permute.xlu1 %1171  ;;  %v3431_v31 = vcombine.high %v7203_v2, %v7223_v0  ;;  %10811 = vst [vmem:[#allocation146_spill] sm:$0xff] %v7424_v5 }
 0x151   : > { %10804 = vst [vmem:[#allocation139_spill] sm:$0xff] %v7370_v39  ;;  %v7380_v54 = vrot.slane %v3166_v52, %v6439_v7  ;;  %v7383_v29 = vrot.slane %v3167_v28, %v6439_v7  ;;  %v7393_v11 = vrot.slane %v3183_v22, %v6439_v7  ;;  %v3583_v28 = vcombine.high %v7370_v39, %v7370_v39 }
 0x152   : > { %v1175_v20 = vpop.permute.xlu0 %1174  ;;  %v7410_v22 = vrot.slane %v3151_v55, %v6439_v7  ;;  %v7414_v39 = vrot.slane %v3415_v47, %v6427_v49  ;;  %v7417_v46 = vrot.slane %v3431_v31, %v6427_v49 }
 0x153   : > { %10806 = vst [vmem:[#allocation141_spill] sm:$0xff] %v7380_v54  ;;  %10807 = vst [vmem:[#allocation142_spill] sm:$0xff] %v7393_v11  ;;  %v3199_v52 = vcombine.high %v7377_v57, %v7380_v54  ;;  %v3206_v2 = vcombine.low %v1168_v3, %v1175_v20  ;;  %v7427_v55 = vrot.slane %v3583_v28, %v6439_v7 }
 0x154   : > { %v7403_v61 = vpop.permute.xlu1 %1178  ;;  %10808 = vst [vmem:[#allocation143_spill] sm:$0xff] %v7410_v22  ;;  %10809 = vst [vmem:[#allocation144_spill] sm:$0xff] %v7414_v39  ;;  %v3463_v31 = vcombine.high %v7414_v39, %v7414_v39  ;;  %v3495_v54 = vcombine.high %v7417_v46, %v7417_v46 }
 0x155   : > { %4696 = vrot.lane.b32.xlu1 %v3199_v52, %s6226_s18  ;;  %10810 = vst [vmem:[#allocation145_spill] sm:$0xff] %v7417_v46  ;;  %10812 = vst [vmem:[#allocation147_spill] sm:$0xff] %v7427_v55  ;;  %v3207_v52 = vcombine.high %v1168_v3, %v1175_v20  ;;  %v3214_v47 = vrot.slane %v3206_v2, %v6427_v49  ;;  %v3622_v0 = vcombine.low %v7372_v58, %v7403_v61 }
 0x156   : > { %v1182_v10 = vpop.permute.xlu0 %1181  ;;  %v2911_v20 = vcombine.high %v7094_v40, %v7114_v51  ;;  %v7458_v28 = vrot.slane %v3463_v31, %v6439_v7 }
 0x157   : > { %v7443_v3 = vrot.slane %v3207_v52, %v6427_v49  ;;  %v3238_v2 = vcombine.low %v3214_v47, %v3214_v47  ;;  %v3239_v11 = vcombine.high %v3214_v47, %v3214_v47  ;;  %v7461_v47 = vrot.slane %v3495_v54, %v6439_v7 }
 0x158   : > { %v7430_v57 = vpop.permute.xlu1 %1185  ;;  %10815 = vst [vmem:[#allocation150_spill] sm:$0xff] %v7458_v28  ;;  %v7493_v8 = vrot.slane %v2911_v20, %v6427_v49 }
 0x159   : > { %10813 = vst [vmem:[#allocation148_spill] sm:$0xff] %v7443_v3  ;;  %10816 = vst [vmem:[#allocation151_spill] sm:$0xff] %v7461_v47  ;;  %v7478_v54 = vrot.slane %v3238_v2, %v6439_v7 }
 0x15a   : > { %v1189_v37 = vpop.permute.xlu0 %1188  ;;  %10822 = vst [vmem:[#allocation157_spill] sm:$0xff] %v7493_v8 }
 0x15b   : > { %v3222_v12 = vcombine.low %v1182_v10, %v1189_v37  ;;  %v3223_v41 = vcombine.high %v1182_v10, %v1189_v37  ;;  %v2895_v10 = vcombine.high %v7037_v36, %v7071_v53  ;;  %v3255_v36 = vcombine.high %v7443_v3, %v7443_v3  ;;  %10819 = vst [vmem:[#allocation154_spill] sm:$0xff] %v7478_v54 }
 0x15c   : > { %v7445_v39 = vpop.permute.xlu1 %1192 }
 0x15d   : > { %v3230_v46 = vrot.slane %v3222_v12, %v6427_v49  ;;  %v7449_v22 = vrot.slane %v3223_v41, %v6427_v49  ;;  %v3638_v37 = vcombine.low %v7430_v57, %v7445_v39  ;;  %v7464_v12 = vrot.slane %v3622_v0, %v6427_v49 }
 0x15e   : > { %v1196_v52 = vpop.permute.xlu0 %1195 }
 0x15f   : > { %10814 = vst [vmem:[#allocation149_spill] sm:$0xff] %v7449_v22  ;;  %10817 = vst [vmem:[#allocation152_spill] sm:$0xff] %v7464_v12  ;;  %v3270_v41 = vcombine.low %v3230_v46, %v3230_v46  ;;  %v3271_v55 = vcombine.high %v3230_v46, %v3230_v46  ;;  %v3287_v5 = vcombine.high %v7449_v22, %v7449_v22 }
 0x160   : > { %v7471_v40 = vrot.slane %v3638_v37, %v6427_v49  ;;  %v7473_v53 = vpop.permute.xlu1 %1199  ;;  %v7484_v46 = vrot.slane %v3239_v11, %v6439_v7  ;;  %v7490_v37 = vrot.slane %v2895_v10, %v6427_v49  ;;  %v3655_v2 = vcombine.high %v7464_v12, %v7464_v12 }
 0x161   : > { %v7481_v0 = vrot.slane %v3270_v41, %v6439_v7  ;;  %v7487_v31 = vrot.slane %v3271_v55, %v6439_v7  ;;  %v7496_v51 = vrot.slane %v3287_v5, %v6439_v7  ;;  %v7513_v12 = vrot.slane %v3255_v36, %v6439_v7 }
 0x162   : > { %10818 = vst [vmem:[#allocation153_spill] sm:$0xff] %v7471_v40  ;;  %10821 = vst [vmem:[#allocation156_spill] sm:$0xff] %v7490_v37  ;;  %v1203_v9 = vpop.permute.xlu0 %1202  ;;  %v3687_v11 = vcombine.high %v7471_v40, %v7471_v40  ;;  %v2943_v40 = vcombine.high %v7490_v37, %v7490_v37  ;;  %v2975_v10 = vcombine.high %v7493_v8, %v7493_v8 }
 0x163   : > { %10820 = vst [vmem:[#allocation155_spill] sm:$0xff] %v7481_v0  ;;  %10823 = vst [vmem:[#allocation158_spill] sm:$0xff] %v7496_v51  ;;  %v3303_v55 = vcombine.high %v7478_v54, %v7481_v0  ;;  %v3310_v41 = vcombine.low %v1196_v52, %v1203_v9  ;;  %v7525_v5 = vrot.slane %v3655_v2, %v6439_v7 }
 0x164   : > { %v7506_v50 = vpop.permute.xlu1 %1206  ;;  %10824 = vst [vmem:[#allocation159_spill] sm:$0xff] %v7513_v12  ;;  %v7528_v36 = vrot.slane %v3687_v11, %v6439_v7  ;;  %v3519_v8 = vcombine.high %v7259_v60, %v7294_v4  ;;  %v7538_v20 = vrot.slane %v2943_v40, %v6439_v7  ;;  %v7541_v2 = vrot.slane %v2975_v10, %v6439_v7 }
 0x165   : > { %4698 = vrot.lane.b32.xlu0 %v3303_v55, %s6226_s18  ;;  %10825 = vst [vmem:[#allocation160_spill] sm:$0xff] %v7525_v5  ;;  %v3311_v55 = vcombine.high %v1196_v52, %v1203_v9  ;;  %v3318_v0 = vrot.slane %v3310_v41, %v6427_v49  ;;  %v3726_v48 = vcombine.low %v7473_v53, %v7506_v50 }
 0x166   : > { %v1210_v32 = vpop.permute.xlu0 %1209  ;;  %10826 = vst [vmem:[#allocation161_spill] sm:$0xff] %v7528_v36  ;;  %10827 = vst [vmem:[#allocation162_spill] sm:$0xff] %v7538_v20  ;;  %v3535_v52 = vcombine.high %v7325_v16, %v7347_v44  ;;  %v3623_v5 = vcombine.high %v7372_v58, %v7403_v61 }
 0x167   : > { %10828 = vst [vmem:[#allocation163_spill] sm:$0xff] %v7541_v2  ;;  %v7548_v60 = vrot.slane %v3311_v55, %v6427_v49  ;;  %v3342_v4 = vcombine.low %v3318_v0, %v3318_v0  ;;  %v3343_v12 = vcombine.high %v3318_v0, %v3318_v0  ;;  %v7566_v0 = vrot.slane %v3726_v48, %v6427_v49 }
 0x168   : > { %v7531_v54 = vpop.permute.xlu1 %1213  ;;  %v7594_v61 = vrot.slane %v3535_v52, %v6427_v49  ;;  %v7621_v45 = vrot.slane %v3623_v5, %v6427_v49 }
 0x169   : > { %10829 = vst [vmem:[#allocation164_spill] sm:$0xff] %v7548_v60  ;;  %10832 = vst [vmem:[#allocation167_spill] sm:$0xff] %v7566_v0  ;;  %v7582_v9 = vrot.slane %v3342_v4, %v6439_v7  ;;  %v3759_v4 = vcombine.high %v7566_v0, %v7566_v0 }
 0x16a   : > { %v1217_v37 = vpop.permute.xlu0 %1216  ;;  %10836 = vst [vmem:[#allocation171_spill] sm:$0xff] %v7594_v61  ;;  %10839 = vst [vmem:[#allocation174_spill] sm:$0xff] %v7621_v45  ;;  %v3599_v52 = vcombine.high %v7594_v61, %v7594_v61 }
 0x16b   : > { %v3326_v11 = vcombine.low %v1210_v32, %v1217_v37  ;;  %v3327_v51 = vcombine.high %v1210_v32, %v1217_v37  ;;  %v7559_v37 = vrot.slane %v3519_v8, %v6427_v49  ;;  %v3359_v8 = vcombine.high %v7548_v60, %v7548_v60  ;;  %10834 = vst [vmem:[#allocation169_spill] sm:$0xff] %v7582_v9 }
 0x16c   : > { %v7550_v41 = vpop.permute.xlu1 %1220 }
 0x16d   : > { %v3334_v40 = vrot.slane %v3326_v11, %v6427_v49  ;;  %v7554_v10 = vrot.slane %v3327_v51, %v6427_v49  ;;  %v3742_v32 = vcombine.low %v7531_v54, %v7550_v41  ;;  %10831 = vst [vmem:[#allocation166_spill] sm:$0xff] %v7559_v37  ;;  %v3567_v63 = vcombine.high %v7559_v37, %v7559_v37 }
 0x16e   : > { %v1224_v55 = vpop.permute.xlu0 %1223 }
 0x16f   : > { %10830 = vst [vmem:[#allocation165_spill] sm:$0xff] %v7554_v10  ;;  %v3374_v11 = vcombine.low %v3334_v40, %v3334_v40  ;;  %v3375_v36 = vcombine.high %v3334_v40, %v3334_v40  ;;  %v3391_v51 = vcombine.high %v7554_v10, %v7554_v10  ;;  %v7575_v16 = vrot.slane %v3742_v32, %v6427_v49 }
 0x170   : > { %v7577_v44 = vpop.permute.xlu1 %1227  ;;  %v7588_v10 = vrot.slane %v3343_v12, %v6439_v7  ;;  %v3639_v32 = vcombine.high %v7430_v57, %v7445_v39  ;;  %v7651_v0 = vrot.slane %v3567_v63, %v6439_v7 }
 0x171   : > { %10833 = vst [vmem:[#allocation168_spill] sm:$0xff] %v7575_v16  ;;  %v7585_v40 = vrot.slane %v3374_v11, %v6439_v7  ;;  %v7591_v58 = vrot.slane %v3375_v36, %v6439_v7  ;;  %v7599_v48 = vrot.slane %v3391_v51, %v6439_v7  ;;  %v3791_v12 = vcombine.high %v7575_v16, %v7575_v16 }
 0x172   : > { %v1231_v60 = vpop.permute.xlu0 %1230  ;;  %v7616_v51 = vrot.slane %v3359_v8, %v6439_v7  ;;  %v7627_v39 = vrot.slane %v3639_v32, %v6427_v49  ;;  %v3671_v32 = vcombine.high %v7621_v45, %v7621_v45  ;;  %10843 = vst [vmem:[#allocation178_spill] sm:$0xff] %v7651_v0  ;;  %v11004_v0 = vld [vmem:[#allocation49_spill] sm:$0xff] }
 0x173   : > { %10835 = vst [vmem:[#allocation170_spill] sm:$0xff] %v7585_v40  ;;  %10837 = vst [vmem:[#allocation172_spill] sm:$0xff] %v7599_v48  ;;  %v3407_v36 = vcombine.high %v7582_v9, %v7585_v40  ;;  %v3830_v16 = vcombine.low %v1224_v55, %v1231_v60  ;;  %v7634_v9 = vrot.slane %v3759_v4, %v6439_v7 }
 0x174   : > { %v7609_v11 = vpop.permute.xlu1 %1234  ;;  %10838 = vst [vmem:[#allocation173_spill] sm:$0xff] %v7616_v51  ;;  %10840 = vst [vmem:[#allocation175_spill] sm:$0xff] %v7627_v39  ;;  %v7637_v5 = vrot.slane %v3791_v12, %v6439_v7  ;;  %v3703_v8 = vcombine.high %v7627_v39, %v7627_v39 }
 0x175   : > { %4700 = vrot.lane.b32.xlu1 %v3407_v36, %s6226_s18  ;;  %10841 = vst [vmem:[#allocation176_spill] sm:$0xff] %v7634_v9  ;;  %v3831_v36 = vcombine.high %v1224_v55, %v1231_v60  ;;  %v7644_v61 = vrot.slane %v3830_v16, %v6427_v49  ;;  %v4246_v57 = vcombine.low %v7577_v44, %v7609_v11 }
 0x176   : > { %v1238_v40 = vpop.permute.xlu0 %1237  ;;  %10842 = vst [vmem:[#allocation177_spill] sm:$0xff] %v7637_v5  ;;  %v7654_v60 = vrot.slane %v3599_v52, %v6439_v7  ;;  %v7676_v16 = vrot.slane %v3671_v32, %v6439_v7 }
 0x177   : > { %v7661_v39 = vrot.slane %v3831_v36, %v6427_v49  ;;  %v3862_v63 = vcombine.low %v7644_v61, %v7644_v61  ;;  %v7679_v36 = vrot.slane %v3703_v8, %v6439_v7  ;;  %v7684_v5 = vrot.slane %v4246_v57, %v6427_v49 }
 0x178   : > { %v7639_v37 = vpop.permute.xlu1 %1241  ;;  %10844 = vst [vmem:[#allocation179_spill] sm:$0xff] %v7654_v60  ;;  %10847 = vst [vmem:[#allocation182_spill] sm:$0xff] %v7676_v16  ;;  %v11012_v16 = vld [vmem:[#allocation81_spill] sm:$0xff] }
 0x179   : > { %10845 = vst [vmem:[#allocation180_spill] sm:$0xff] %v7661_v39  ;;  %10848 = vst [vmem:[#allocation183_spill] sm:$0xff] %v7679_v36  ;;  %v3879_v9 = vcombine.high %v7661_v39, %v7661_v39  ;;  %v7702_v33 = vrot.slane %v3862_v63, %v6439_v7  ;;  %v11011_v36 = vld [vmem:[#allocation82_spill] sm:$0xff] }
 0x17a   : > { %v1245_v4 = vpop.permute.xlu0 %1244  ;;  %10849 = vst [vmem:[#allocation184_spill] sm:$0xff] %v7684_v5 }
 0x17b   : > { %v3846_v55 = vcombine.low %v1238_v40, %v1245_v4  ;;  %v3847_v12 = vcombine.high %v1238_v40, %v1245_v4  ;;  %10851 = vst [vmem:[#allocation186_spill] sm:$0xff] %v7702_v33 }
 0x17c   : > { %v7663_v48 = vpop.permute.xlu1 %1248 }
 0x17d   : > { %v7668_v51 = vrot.slane %v3846_v55, %v6427_v49  ;;  %v7671_v52 = vrot.slane %v3847_v12, %v6427_v49  ;;  %v4262_v40 = vcombine.low %v7639_v37, %v7663_v48 }
 0x17e   : > { %v1252_v4 = vpop.permute.xlu0 %1251 }
 0x17f   : > { %10846 = vst [vmem:[#allocation181_spill] sm:$0xff] %v7671_v52  ;;  %v3894_v55 = vcombine.low %v7668_v51, %v7668_v51  ;;  %v3911_v12 = vcombine.high %v7671_v52, %v7671_v52  ;;  %v7693_v32 = vrot.slane %v4262_v40, %v6427_v49  ;;  %v4279_v40 = vcombine.high %v7684_v5, %v7684_v5 }
 0x180   : > { %v7695_v8 = vpop.permute.xlu1 %1255 }
 0x181   : > { %10850 = vst [vmem:[#allocation185_spill] sm:$0xff] %v7693_v32  ;;  %v7705_v23 = vrot.slane %v3894_v55, %v6439_v7  ;;  %v7708_v39 = vrot.slane %v3911_v12, %v6439_v7  ;;  %v4311_v3 = vcombine.high %v7693_v32, %v7693_v32  ;;  %v7721_v55 = vrot.slane %v3879_v9, %v6439_v7 }
 0x182   : > { %v1259_v52 = vpop.permute.xlu0 %1258  ;;  %v7729_v5 = vrot.slane %v4279_v40, %v6439_v7 }
 0x183   : > { %10852 = vst [vmem:[#allocation187_spill] sm:$0xff] %v7705_v23  ;;  %10853 = vst [vmem:[#allocation188_spill] sm:$0xff] %v7708_v39  ;;  %v3927_v45 = vcombine.high %v7702_v33, %v7705_v23  ;;  %v3934_v43 = vcombine.low %v1252_v4, %v1259_v52  ;;  %v7732_v22 = vrot.slane %v4311_v3, %v6439_v7 }
 0x184   : > { %v7716_v57 = vpop.permute.xlu1 %1262  ;;  %10854 = vst [vmem:[#allocation189_spill] sm:$0xff] %v7721_v55  ;;  %10855 = vst [vmem:[#allocation190_spill] sm:$0xff] %v7729_v5  ;;  %v3935_v63 = vcombine.high %v1252_v4, %v1259_v52  ;;  %v4247_v55 = vcombine.high %v7577_v44, %v7609_v11 }
 0x185   : > { %4702 = vrot.lane.b32.xlu0 %v3927_v45, %s6226_s18  ;;  %10856 = vst [vmem:[#allocation191_spill] sm:$0xff] %v7732_v22  ;;  %v7737_v9 = vrot.slane %v3934_v43, %v6427_v49  ;;  %v4350_v45 = vcombine.low %v7695_v8, %v7716_v57 }
 0x186   : > { %v1266_v12 = vpop.permute.xlu0 %1265  ;;  %v7746_v3 = vrot.slane %v3935_v63, %v6427_v49  ;;  %v7808_v11 = vrot.slane %v4247_v55, %v6427_v49 }
 0x187   : > { %v3966_v43 = vcombine.low %v7737_v9, %v7737_v9  ;;  %v7763_v63 = vrot.slane %v4350_v45, %v6427_v49 }
 0x188   : > { %v7734_v23 = vpop.permute.xlu1 %1269  ;;  %10858 = vst [vmem:[#allocation193_spill] sm:$0xff] %v7746_v3  ;;  %10867 = vst [vmem:[#allocation202_spill] sm:$0xff] %v7808_v11 }
 0x189   : > { %10857 = vst [vmem:[#allocation192_spill] sm:$0xff] %v7734_v23  ;;  %10861 = vst [vmem:[#allocation196_spill] sm:$0xff] %v7763_v63  ;;  %v7781_v1 = vrot.slane %v3966_v43, %v6439_v7  ;;  %v4383_v40 = vcombine.high %v7763_v63, %v7763_v63 }
 0x18a   : > { %v1273_v33 = vpop.permute.xlu0 %1272 }
 0x18b   : > { %v3950_v26 = vcombine.low %v1266_v12, %v1273_v33  ;;  %v3951_v24 = vcombine.high %v1266_v12, %v1273_v33  ;;  %10863 = vst [vmem:[#allocation198_spill] sm:$0xff] %v7781_v1  ;;  %v7818_v44 = vrot.slane %v4383_v40, %v6439_v7 }
 0x18c   : > { %v7748_v52 = vpop.permute.xlu1 %1276 }
 0x18d   : > { %10859 = vst [vmem:[#allocation194_spill] sm:$0xff] %v7748_v52  ;;  %v7753_v4 = vrot.slane %v3950_v26, %v6427_v49  ;;  %v7756_v39 = vrot.slane %v3951_v24, %v6427_v49  ;;  %v4366_v33 = vcombine.low %v7734_v23, %v7748_v52  ;;  %v3983_v24 = vcombine.high %v7746_v3, %v7746_v3 }
 0x18e   : > { %v1280_v12 = vpop.permute.xlu0 %1279  ;;  %10869 = vst [vmem:[#allocation204_spill] sm:$0xff] %v7818_v44 }
 0x18f   : > { %10860 = vst [vmem:[#allocation195_spill] sm:$0xff] %v7756_v39  ;;  %v3998_v32 = vcombine.low %v7753_v4, %v7753_v4  ;;  %v4015_v26 = vcombine.high %v7756_v39, %v7756_v39  ;;  %v7772_v22 = vrot.slane %v4366_v33, %v6427_v49  ;;  %v4263_v33 = vcombine.high %v7639_v37, %v7663_v48 }
 0x190   : > { %v7774_v5 = vpop.permute.xlu1 %1283  ;;  %v7804_v37 = vrot.slane %v3983_v24, %v6439_v7 }
 0x191   : > { %10862 = vst [vmem:[#allocation197_spill] sm:$0xff] %v7772_v22  ;;  %v7784_v56 = vrot.slane %v3998_v32, %v6439_v7  ;;  %v7791_v39 = vrot.slane %v4015_v26, %v6439_v7  ;;  %v4415_v43 = vcombine.high %v7772_v22, %v7772_v22  ;;  %v7811_v26 = vrot.slane %v4263_v33, %v6427_v49 }
 0x192   : > { %v1287_v3 = vpop.permute.xlu0 %1286  ;;  %10866 = vst [vmem:[#allocation201_spill] sm:$0xff] %v7804_v37  ;;  %v4295_v33 = vcombine.high %v7808_v11, %v7808_v11 }
 0x193   : > { %10864 = vst [vmem:[#allocation199_spill] sm:$0xff] %v7784_v56  ;;  %10865 = vst [vmem:[#allocation200_spill] sm:$0xff] %v7791_v39  ;;  %v4031_v32 = vcombine.high %v7781_v1, %v7784_v56  ;;  %v4038_v48 = vcombine.low %v1280_v12, %v1287_v3  ;;  %v7821_v24 = vrot.slane %v4415_v43, %v6439_v7 }
 0x194   : > { %v7799_v45 = vpop.permute.xlu1 %1290  ;;  %10868 = vst [vmem:[#allocation203_spill] sm:$0xff] %v7811_v26  ;;  %v4327_v14 = vcombine.high %v7811_v26, %v7811_v26 }
 0x195   : > { %4704 = vrot.lane.b32.xlu1 %v4031_v32, %s6226_s18  ;;  %10870 = vst [vmem:[#allocation205_spill] sm:$0xff] %v7821_v24  ;;  %v4039_v32 = vcombine.high %v1280_v12, %v1287_v3  ;;  %v7826_v55 = vrot.slane %v4038_v48, %v6427_v49  ;;  %v4454_v40 = vcombine.low %v7774_v5, %v7799_v45 }
 0x196   : > { %v1294_v19 = vpop.permute.xlu0 %1293  ;;  %v7851_v3 = vrot.slane %v4295_v33, %v6439_v7  ;;  %v4455_v23 = vcombine.high %v7774_v5, %v7799_v45 }
 0x197   : > { %v7837_v12 = vrot.slane %v4039_v32, %v6427_v49  ;;  %v4070_v11 = vcombine.low %v7826_v55, %v7826_v55  ;;  %v7854_v32 = vrot.slane %v4327_v14, %v6439_v7  ;;  %v7859_v24 = vrot.slane %v4454_v40, %v6427_v49 }
 0x198   : > { %v7823_v56 = vpop.permute.xlu1 %1297  ;;  %10872 = vst [vmem:[#allocation207_spill] sm:$0xff] %v7851_v3 }
 0x199   : > { %10871 = vst [vmem:[#allocation206_spill] sm:$0xff] %v7837_v12  ;;  %10873 = vst [vmem:[#allocation208_spill] sm:$0xff] %v7854_v32  ;;  %v4087_v44 = vcombine.high %v7837_v12, %v7837_v12  ;;  %v7875_v40 = vrot.slane %v4070_v11, %v6439_v7  ;;  %v4487_v39 = vcombine.high %v7859_v24, %v7859_v24  ;;  %v11009_v32 = vld [vmem:[#allocation188_spill] sm:$0xff] }
 0x19a   : > { %v1301_v1 = vpop.permute.xlu0 %1300  ;;  %10874 = vst [vmem:[#allocation209_spill] sm:$0xff] %v7859_v24 }
 0x19b   : > { %v4054_v13 = vcombine.low %v1294_v19, %v1301_v1  ;;  %v4055_v6 = vcombine.high %v1294_v19, %v1301_v1  ;;  %10876 = vst [vmem:[#allocation211_spill] sm:$0xff] %v7875_v40  ;;  %v7904_v52 = vrot.slane %v4487_v39, %v6439_v7 }
 0x19c   : > { %v1305_v43 = vpop.permute.xlu1 %1304 }
 0x19d   : > { %v7844_v26 = vrot.slane %v4054_v13, %v6427_v49  ;;  %v7847_v22 = vrot.slane %v4055_v6, %v6427_v49  ;;  %v4470_v1 = vcombine.low %v7823_v56, %v1305_v43  ;;  %10880 = vst [vmem:[#allocation215_spill] sm:$0xff] %v7904_v52  ;;  %v4471_v39 = vcombine.high %v7823_v56, %v1305_v43  ;;  %v10885_v43 = vld [vmem:[#allocation35_spill] sm:$0xff] }
 0x19e   : > { %v1308_v19 = vpop.permute.xlu0 %1307 }
 0x19f   : > { %v4102_v13 = vcombine.low %v7844_v26, %v7844_v26  ;;  %v4119_v6 = vcombine.high %v7847_v22, %v7847_v22  ;;  %v7868_v33 = vrot.slane %v4470_v1, %v6427_v49 }
 0x1a0   : > { %v7870_v14 = vpop.permute.xlu1 %1311 }
 0x1a1   : > { %10875 = vst [vmem:[#allocation210_spill] sm:$0xff] %v7868_v33  ;;  %v7878_v18 = vrot.slane %v4102_v13, %v6439_v7  ;;  %v7881_v63 = vrot.slane %v4119_v6, %v6439_v7  ;;  %v4519_v1 = vcombine.high %v7868_v33, %v7868_v33  ;;  %v7894_v13 = vrot.slane %v4087_v44, %v6439_v7 }
 0x1a2   : > { %v1315_v35 = vpop.permute.xlu0 %1314  ;;  %v10883_v33 = vcombine.low %v6462_v25, %v6455_v21 }
 0x1a3   : > { %10877 = vst [vmem:[#allocation212_spill] sm:$0xff] %v7878_v18  ;;  %10878 = vst [vmem:[#allocation213_spill] sm:$0xff] %v7881_v63  ;;  %v4135_v37 = vcombine.high %v7875_v40, %v7878_v18  ;;  %v4142_v12 = vcombine.low %v1308_v19, %v1315_v35  ;;  %v7907_v11 = vrot.slane %v4519_v1, %v6439_v7 }
 0x1a4   : > { %v7889_v48 = vpop.permute.xlu1 %1318  ;;  %10879 = vst [vmem:[#allocation214_spill] sm:$0xff] %v7894_v13  ;;  %v4143_v44 = vcombine.high %v1308_v19, %v1315_v35 }
 0x1a5   : > { %4706 = vrot.lane.b32.xlu0 %v4135_v37, %s6226_s18  ;;  %v4558_v6 = vcombine.low %v7870_v14, %v7889_v48  ;;  %10881 = vst [vmem:[#allocation216_spill] sm:$0xff] %v7907_v11  ;;  %v7912_v37 = vrot.slane %v4142_v12, %v6427_v49 }
 0x1a6   : > { %v1322_v24 = vpop.permute.xlu0 %1321  ;;  %v7929_v13 = vrot.slane %v4143_v44, %v6427_v49 }
 0x1a7   : > { %v7922_v1 = vrot.slane %v4558_v6, %v6427_v49  ;;  %v4174_v56 = vcombine.low %v7912_v37, %v7912_v37  ;;  %v10886_v6 = vcombine.low %v6634_v59, %v10885_v43 }
 0x1a8   : > { %v7909_v18 = vpop.permute.xlu1 %1325  ;;  %v4191_v12 = vcombine.high %v7929_v13, %v7929_v13 }
 0x1a9   : > { %10882 = vst [vmem:[#allocation217_spill] sm:$0xff] %v7909_v18  ;;  %4742 = vrot.lane.b32.xlu0 %v10883_v33, %s6227_s24  ;;  %10884 = vst [vmem:[#allocation218_spill] sm:$0xff] %v7922_v1  ;;  %v7973_v11 = vrot.slane %v4174_v56, %v6439_v7  ;;  %v10904_v56 = vld [vmem:[#allocation18_spill] sm:$0xff] }
 0x1aa   : > { %v1329_v35 = vpop.permute.xlu0 %1328 }
 0x1ab   : > { %v4158_v19 = vcombine.low %v1322_v24, %v1329_v35  ;;  %v4159_v40 = vcombine.high %v1322_v24, %v1329_v35  ;;  %v7950_v35 = vrot.slane %v4455_v23, %v6427_v49 }
 0x1ac   : > { %v7931_v33 = vpop.permute.xlu1 %1332 }
 0x1ad   : > { %v7936_v5 = vrot.slane %v4158_v19, %v6427_v49  ;;  %v7939_v45 = vrot.slane %v4159_v40, %v6427_v49  ;;  %v4574_v24 = vcombine.low %v7909_v18, %v7931_v33  ;;  %4746 = vrot.lane.b32.xlu0 %v10886_v6, %s6227_s24  ;;  %10887 = vst [vmem:[#allocation35_spill] sm:$0xff] %v7950_v35 }
 0x1ae   : > { %v7953_v19 = vrot.slane %v4471_v39, %v6427_v49  ;;  %v4591_v40 = vcombine.high %v7922_v1, %v7922_v1  ;;  %v10890_v39 = vld [vmem:[#allocation58_spill] sm:$0xff] }
 0x1af   : > { %v4206_v63 = vcombine.low %v7936_v5, %v7936_v5  ;;  %v4223_v6 = vcombine.high %v7939_v45, %v7939_v45  ;;  %v7964_v44 = vrot.slane %v4574_v24, %v6427_v49  ;;  %v10892_v30 = vcombine.low %v10890_v39, %v10891_v42  ;;  %10893 = vst [vmem:[#allocation58_spill] sm:$0xff] %v7973_v11 }
 0x1b0   : > { %10888 = vst [vmem:[#allocation219_spill] sm:$0xff] %v7953_v19  ;;  %v4503_v24 = vcombine.high %v7950_v35, %v7950_v35  ;;  %v7985_v2 = vrot.slane %v4591_v40, %v6439_v7  ;;  %v10896_v35 = vld [vmem:[#allocation94_spill] sm:$0xff] }
 0x1b1   : > { %10889 = vst [vmem:[#allocation220_spill] sm:$0xff] %v7964_v44  ;;  %4750 = vrot.lane.b32.xlu0 %v10892_v30, %s6227_s24  ;;  %v7976_v52 = vrot.slane %v4206_v63, %v6439_v7  ;;  %v4623_v1 = vcombine.high %v7964_v44, %v7964_v44  ;;  %v4535_v30 = vcombine.high %v7953_v19, %v7953_v19  ;;  %v10897_v44 = vld [vmem:[#allocation95_spill] sm:$0xff] }
 0x1b2   : > { %10895 = vst [vmem:[#allocation221_spill] sm:$0xff] %v7985_v2  ;;  %v7992_v63 = vrot.slane %v4191_v12, %v6439_v7  ;;  %v7995_v20 = vrot.slane %v4223_v6, %v6439_v7  ;;  %v10898_v18 = vcombine.low %v10896_v35, %v10897_v44  ;;  %v3895_v6 = vcombine.high %v7668_v51, %v7668_v51  ;;  %v10903_v51 = vld [vmem:[#allocation20_spill] sm:$0xff] }
 0x1b3   : > { %10894 = vst [vmem:[#allocation59_spill] sm:$0xff] %v7976_v52  ;;  %v4239_v23 = vcombine.high %v7973_v11, %v7976_v52  ;;  %v8003_v40 = vrot.slane %v4623_v1, %v6439_v7  ;;  %v8019_v1 = vrot.slane %v4535_v30, %v6439_v7  ;;  %v3863_v19 = vcombine.high %v7644_v61, %v7644_v61  ;;  %v10910_v61 = vld [vmem:[#allocation80_spill] sm:$0xff] }
 0x1b4   : > { %v10902_v12 = vcombine.low %v7272_v62, %v7275_v15  ;;  %v10905_v52 = vcombine.low %v10903_v51, %v10904_v56  ;;  %v4103_v30 = vcombine.high %v7844_v26, %v7844_v26  ;;  %v4071_v11 = vcombine.high %v7826_v55, %v7826_v55  ;;  %v10911_v55 = vld [vmem:[#allocation79_spill] sm:$0xff] }
 0x1b5   : > { %4754 = vrot.lane.b32.xlu0 %v10898_v18, %s6227_s24  ;;  %4708 = vrot.lane.b32.xlu1 %v4239_v23, %s6226_s18  ;;  %10899 = vst [vmem:[#allocation94_spill] sm:$0xff] %v8003_v40  ;;  %v8016_v23 = vrot.slane %v4503_v24, %v6439_v7  ;;  %10901 = vst [vmem:[#allocation222_spill] sm:$0xff] %v8019_v1  ;;  %v3909_v18 = vrot.slane %v3895_v6, %v6439_v7  ;;  %v10908_v40 = vld [vmem:[#allocation47_spill] sm:$0xff]  ;;  %s5911_s18 = sshll.u32 %s10166_s22, 4  ;;  %s10283_s18 = int_to_ptr.vmem [resolvable:$true] %s5911_s18 }
 0x1b6   : > { %v3877_v26 = vrot.slane %v3863_v19, %v6439_v7  ;;  %v4117_v6 = vrot.slane %v4103_v30, %v6439_v7  ;;  %v10912_v47 = vcombine.low %v10910_v61, %v10911_v55  ;;  %v4085_v28 = vrot.slane %v4071_v11, %v6439_v7 }
 0x1b7   : > { %10900 = vst [vmem:[#allocation95_spill] sm:$0xff] %v8016_v23  ;;  %v3999_v19 = vcombine.high %v7753_v4, %v7753_v4  ;;  %v10915_v11 = vcombine.low %v7390_v27, %v7383_v29  ;;  %v4207_v30 = vcombine.high %v7936_v5, %v7936_v5  ;;  %v4175_v4 = vcombine.high %v7912_v37, %v7912_v37 }
 0x1b8   : > { %v3928_v2 = vcombine.low %v3877_v26, %v3909_v18  ;;  %v10918_v37 = vcombine.high %v10890_v39, %v10891_v42  ;;  %v10920_v42 = vcombine.high %v7272_v62, %v7275_v15  ;;  %v10921_v39 = vcombine.high %v10903_v51, %v10904_v56  ;;  %v10924_v15 = vld [vmem:[#allocation9_spill] sm:$0xff] }
 0x1b9   : > { %4758 = vrot.lane.b32.xlu0 %v10902_v12, %s6227_s24  ;;  %4744 = vrot.lane.b32.xlu1 %v10905_v52, %s6227_s24  ;;  %v10906_v12 = vcombine.low %v7484_v46, %v7487_v31  ;;  %v10907_v52 = vld [vmem:[#allocation48_spill] sm:$0xff]  ;;  %v1414_v56 = vcombine.low %v10924_v15, %v10924_v15  ;;  %v3929_v51 = vcombine.high %v3877_v26, %v3909_v18 }
 0x1ba   : > { %v10909_v24 = vcombine.low %v10907_v52, %v10908_v40  ;;  %v10923_v62 = vcombine.high %v10907_v52, %v10908_v40  ;;  %v4137_v40 = vcombine.high %v4085_v28, %v4117_v6  ;;  %v10928_v52 = vld [vmem:[#allocation28_spill] sm:$0xff] }
 0x1bb   : > { %v8150_v18 = vrot.slane %v1414_v56, %v6439_v7  ;;  %v1590_v26 = vcombine.low %v10928_v52, %v10928_v52  ;;  %v10937_v56 = vcombine.high %v7588_v10, %v7591_v58  ;;  %v10939_v52 = vld [vmem:[#allocation12_spill] sm:$0xff] }
 0x1bd   : > { %4762 = vrot.lane.b32.xlu0 %v10906_v12, %s6227_s24  ;;  %4748 = vrot.lane.b32.xlu1 %v10909_v24, %s6227_s24  ;;  %v4136_v12 = vcombine.low %v4085_v28, %v4117_v6  ;;  %v10913_v24 = vcombine.low %v7157_v17, %v7150_v34 }
 0x1c1   : > { %4766 = vrot.lane.b32.xlu0 %v3928_v2, %s6227_s24  ;;  %4752 = vrot.lane.b32.xlu1 %v10912_v47, %s6227_s24  ;;  %v3967_v2 = vcombine.high %v7737_v9, %v7737_v9  ;;  %v10914_v47 = vcombine.high %v6462_v25, %v6455_v21  ;;  %v10916_v21 = vcombine.high %v6634_v59, %v10885_v43 }
 0x1c2   : > { %v10917_v25 = vcombine.low %v7588_v10, %v7591_v58  ;;  %v8101_v59 = vrot.slane %v4175_v4, %v6439_v7  ;;  %v1486_v10 = vcombine.low %v10939_v52, %v10939_v52  ;;  %v10940_v58 = vld [vmem:[#allocation119_spill] sm:$0xff] }
 0x1c3   : > { %v3981_v5 = vrot.slane %v3967_v2, %v6439_v7  ;;  %v10919_v2 = vcombine.high %v10896_v35, %v10897_v44  ;;  %v3743_v44 = vcombine.high %v7531_v54, %v7550_v41  ;;  %v10922_v35 = vcombine.high %v7484_v46, %v7487_v31  ;;  %v10927_v31 = vld [vmem:[#allocation31_spill] sm:$0xff] }
 0x1c4   : > { %v10926_v46 = vcombine.high %v10910_v61, %v10911_v55  ;;  %v1622_v41 = vcombine.low %v10927_v31, %v10927_v31  ;;  %v10929_v61 = vcombine.high %v7157_v17, %v7150_v34  ;;  %v10930_v55 = vld [vmem:[#allocation54_spill] sm:$0xff]  ;;  %v10932_v34 = vcombine.high %v7390_v27, %v7383_v29  ;;  %v10936_v29 = vld [vmem:[#allocation87_spill] sm:$0xff] }
 0x1c5   : > { %4770 = vrot.lane.b32.xlu0 %v4136_v12, %s6227_s24  ;;  %4756 = vrot.lane.b32.xlu1 %v10913_v24, %s6227_s24  ;;  %v8076_v12 = vrot.slane %v3999_v19, %v6439_v7  ;;  %v8093_v19 = vrot.slane %v4207_v30, %v6439_v7  ;;  %v10925_v30 = vld [vmem:[#allocation8_spill] sm:$0xff]  ;;  %v8140_v54 = vrot.slane %v3743_v44, %v6427_v49 }
 0x1c6   : > { %v8167_v6 = vrot.slane %v1622_v41, %v6439_v7  ;;  %v2422_v15 = vcombine.low %v10936_v29, %v10936_v29  ;;  %v8255_v29 = vrot.slane %v1486_v10, %v6439_v7  ;;  %v10948_v10 = vld [vmem:[#allocation180_spill] sm:$0xff] }
 0x1c7   : > { %v4032_v24 = vcombine.low %v3981_v5, %v8076_v12  ;;  %v4240_v43 = vcombine.low %v8101_v59, %v8093_v19  ;;  %v4033_v41 = vcombine.high %v3981_v5, %v8076_v12  ;;  %v10942_v5 = vld [vmem:[#allocation149_spill] sm:$0xff] }
 0x1c9   : > { %4806 = vrot.lane.b32.xlu0 %v10914_v47, %s6228_s25  ;;  %4760 = vrot.lane.b32.xlu1 %v10915_v11, %s6227_s24  ;;  %v3727_v11 = vcombine.high %v7473_v53, %v7506_v50  ;;  %v1382_v50 = vcombine.low %v10925_v30, %v10925_v30  ;;  %v10938_v30 = vld [vmem:[#allocation15_spill] sm:$0xff] }
 0x1cb   : > { %v8137_v53 = vrot.slane %v3727_v11, %v6427_v49  ;;  %v8164_v28 = vrot.slane %v1382_v50, %v6439_v7  ;;  %v10935_v11 = vld [vmem:[#allocation88_spill] sm:$0xff]  ;;  %v1518_v50 = vcombine.low %v10938_v30, %v10938_v30 }
 0x1cc   : > { %v2454_v44 = vcombine.low %v10935_v11, %v10935_v11 }
 0x1cd   : > { %4810 = vrot.lane.b32.xlu0 %v10916_v21, %s6228_s25  ;;  %4764 = vrot.lane.b32.xlu1 %v10917_v25, %s6227_s24  ;;  %v3775_v4 = vcombine.high %v8137_v53, %v8137_v53  ;;  %v3807_v21 = vcombine.high %v8140_v54, %v8140_v54  ;;  %v2246_v25 = vcombine.low %v10930_v55, %v10930_v55  ;;  %v8236_v55 = vpop.permute.xlu0 %4678 }
 0x1ce   : > { %v8232_v12 = vrot.slane %v1518_v50, %v6439_v7 }
 0x1cf   : > { %v8184_v17 = vrot.slane %v3775_v4, %v6439_v7  ;;  %v10941_v4 = vld [vmem:[#allocation42_spill] sm:$0xff] }
 0x1d1   : > { %4814 = vrot.lane.b32.xlu0 %v10918_v37, %s6228_s25  ;;  %4768 = vrot.lane.b32.xlu1 %v4032_v24, %s6227_s24  ;;  %v1434_v24 = vcombine.low %v8164_v28, %v8150_v18  ;;  %v8174_v37 = vrot.slane %v1590_v26, %v6439_v7  ;;  %10933 = vst [vmem:[#allocation20_spill] sm:$0xff] %v8184_v17 }
 0x1d2   : > { %v3046_v26 = vcombine.low %v10940_v58, %v10940_v58  ;;  %v3878_v58 = vcombine.low %v10948_v10, %v10948_v10 }
 0x1d5   : > { %4818 = vrot.lane.b32.xlu0 %v10919_v2, %s6228_s25  ;;  %4772 = vrot.lane.b32.xlu1 %v4240_v43, %s6227_s24  ;;  %v10931_v43 = vld [vmem:[#allocation53_spill] sm:$0xff] }
 0x1d6   : > { %v2214_v2 = vcombine.low %v10931_v43, %v10931_v43 }
 0x1d9   : > { %4822 = vrot.lane.b32.xlu0 %v10920_v42, %s6228_s25  ;;  %4808 = vrot.lane.b32.xlu1 %v10921_v39, %s6228_s25  ;;  %v8187_v42 = vrot.slane %v3807_v21, %v6439_v7  ;;  %v1642_v39 = vcombine.low %v8174_v37, %v8167_v6  ;;  %v1726_v21 = vcombine.low %v10941_v4, %v10941_v4  ;;  %v8278_v4 = vpop.permute.xlu0 %4682 }
 0x1db   : > { %10934 = vst [vmem:[#allocation18_spill] sm:$0xff] %v8187_v42  ;;  %v1435_v42 = vcombine.high %v8164_v28, %v8150_v18  ;;  %v1643_v18 = vcombine.high %v8174_v37, %v8167_v6  ;;  %v4190_v6 = vcombine.low %v7929_v13, %v7929_v13 }
 0x1dd   : > { %4826 = vrot.lane.b32.xlu0 %v10922_v35, %s6228_s25  ;;  %4812 = vrot.lane.b32.xlu1 %v10923_v62, %s6228_s25  ;;  %v8194_v35 = vrot.slane %v2246_v25, %v6439_v7  ;;  %v8321_v27 = vpop.permute.xlu0 %4686  ;;  %v4198_v13 = vrot.slane %v4190_v6, %v6439_v7  ;;  %v1539_v6 = vcombine.high %v8255_v29, %v8232_v12 }
 0x1e1   : > { %4830 = vrot.lane.b32.xlu0 %v3929_v51, %s6228_s25  ;;  %4816 = vrot.lane.b32.xlu1 %v10926_v46, %s6228_s25  ;;  %v8208_v51 = vrot.slane %v2214_v2, %v6439_v7  ;;  %v3078_v46 = vcombine.low %v7236_v38, %v7236_v38  ;;  %v8227_v38 = vrot.slane %v2422_v15, %v6439_v7  ;;  %v10943_v2 = vld [vmem:[#allocation41_spill] sm:$0xff] }
 0x1e2   : > { %v8260_v15 = vrot.slane %v1726_v21, %v6439_v7 }
 0x1e3   : > { %v2266_v31 = vcombine.low %v8208_v51, %v8194_v35  ;;  %v8243_v43 = vrot.slane %v3078_v46, %v6439_v7  ;;  %v1538_v46 = vcombine.low %v8255_v29, %v8232_v12  ;;  %v4559_v12 = vcombine.high %v7870_v14, %v7889_v48 }
 0x1e5   : > { %4834 = vrot.lane.b32.xlu0 %v4137_v40, %s6228_s25  ;;  %4820 = vrot.lane.b32.xlu1 %v10929_v61, %s6228_s25  ;;  %v8218_v40 = vrot.slane %v2454_v44, %v6439_v7  ;;  %v3286_v61 = vcombine.low %v10942_v5, %v10942_v5  ;;  %v8252_v44 = vrot.slane %v3046_v26, %v6439_v7  ;;  %v10949_v5 = vld [vmem:[#allocation106_spill] sm:$0xff] }
 0x1e7   : > { %v2474_v25 = vcombine.low %v8227_v38, %v8218_v40  ;;  %v3098_v50 = vcombine.low %v8252_v44, %v8243_v43 }
 0x1e9   : > { %4870 = vrot.lane.b32.xlu0 %v1434_v24, %s6229_s26  ;;  %4824 = vrot.lane.b32.xlu1 %v10932_v34, %s6228_s25  ;;  %v4241_v24 = vcombine.high %v8101_v59, %v8093_v19  ;;  %v1694_v34 = vcombine.low %v10943_v2, %v10943_v2  ;;  %v10945_v19 = vld [vmem:[#allocation73_spill] sm:$0xff]  ;;  %v4118_v2 = vcombine.low %v7847_v22, %v7847_v22 }
 0x1ea   : > { %v2350_v59 = vcombine.low %v10945_v19, %v10945_v19  ;;  %v10950_v19 = vld [vmem:[#allocation105_spill] sm:$0xff]  ;;  %v4351_v22 = vcombine.high %v7695_v8, %v7716_v57 }
 0x1eb   : > { %v8276_v26 = vrot.slane %v1694_v34, %v6439_v7  ;;  %v8326_v57 = vrot.slane %v4118_v2, %v6439_v7 }
 0x1ed   : > { %4874 = vrot.lane.b32.xlu0 %v1642_v39, %s6229_s26  ;;  %4828 = vrot.lane.b32.xlu1 %v10937_v56, %s6228_s25  ;;  %v10944_v39 = vld [vmem:[#allocation148_spill] sm:$0xff]  ;;  %v10946_v56 = vld [vmem:[#allocation181_spill] sm:$0xff] }
 0x1ee   : > { %v3254_v11 = vcombine.low %v10944_v39, %v10944_v39  ;;  %v3910_v30 = vcombine.low %v10946_v56, %v10946_v56  ;;  %v2526_v56 = vcombine.low %v10950_v19, %v10950_v19  ;;  %v10954_v19 = vld [vmem:[#allocation135_spill] sm:$0xff] }
 0x1f0   : > { %v8283_v21 = vrot.slane %v3254_v11, %v6439_v7  ;;  %v8297_v39 = vrot.slane %v3910_v30, %v6439_v7  ;;  %v10953_v30 = vld [vmem:[#allocation206_spill] sm:$0xff]  ;;  %v8362_v11 = vpop.permute.xlu1 %4680 }
 0x1f1   : > { %4878 = vrot.lane.b32.xlu0 %v2266_v31, %s6229_s26  ;;  %4832 = vrot.lane.b32.xlu1 %v4033_v41, %s6228_s25  ;;  %v8269_v31 = vrot.slane %v3286_v61, %v6439_v7  ;;  %v10947_v41 = vld [vmem:[#allocation70_spill] sm:$0xff]  ;;  %v2558_v61 = vcombine.low %v10949_v5, %v10949_v5  ;;  %v4086_v5 = vcombine.low %v10953_v30, %v10953_v30 }
 0x1f2   : > { %v2318_v52 = vcombine.low %v10947_v41, %v10947_v41  ;;  %v10952_v41 = vld [vmem:[#allocation192_spill] sm:$0xff]  ;;  %v8337_v30 = vrot.slane %v4351_v22, %v6427_v49 }
 0x1f3   : > { %v3306_v34 = vcombine.low %v8283_v21, %v8269_v31  ;;  %v8345_v2 = vrot.slane %v4086_v5, %v6439_v7 }
 0x1f5   : > { %4882 = vrot.lane.b32.xlu0 %v2474_v25, %s6229_s26  ;;  %4836 = vrot.lane.b32.xlu1 %v4241_v24, %s6228_s25  ;;  %v1746_v25 = vcombine.low %v8276_v26, %v8260_v15  ;;  %v8290_v24 = vrot.slane %v2350_v59, %v6439_v7  ;;  %v8307_v59 = vrot.slane %v2318_v52, %v6439_v7 }
 0x1f6   : > { %v3182_v52 = vcombine.low %v10954_v19, %v10954_v19 }
 0x1f9   : > { %4886 = vrot.lane.b32.xlu0 %v3098_v50, %s6229_s26  ;;  %4872 = vrot.lane.b32.xlu1 %v1538_v46, %s6229_s26  ;;  %v8304_v50 = vrot.slane %v3878_v58, %v6439_v7  ;;  %v10951_v46 = vld [vmem:[#allocation194_spill] sm:$0xff]  ;;  %v2370_v58 = vcombine.low %v8307_v59, %v8290_v24 }
 0x1fa   : > { %v4367_v10 = vcombine.high %v10952_v41, %v10951_v46  ;;  %v8329_v46 = vrot.slane %v2558_v61, %v6439_v7  ;;  %v8334_v41 = vrot.slane %v2526_v56, %v6439_v7  ;;  %v10956_v61 = vld [vmem:[#allocation165_spill] sm:$0xff]  ;;  %v4138_v56 = vcombine.low %v8345_v2, %v8326_v57 }
 0x1fb   : > { %v3930_v8 = vcombine.low %v8304_v50, %v8297_v39  ;;  %v3390_v9 = vcombine.low %v10956_v61, %v10956_v61  ;;  %v8364_v61 = vpop.permute.xlu0 %4690 }
 0x1fc   : > { %v8340_v19 = vrot.slane %v4367_v10, %v6427_v49  ;;  %v2578_v22 = vcombine.low %v8334_v41, %v8329_v46  ;;  %v10957_v10 = vld [vmem:[#allocation164_spill] sm:$0xff] }
 0x1fd   : > { %4890 = vrot.lane.b32.xlu0 %v3306_v34, %s6229_s26  ;;  %4876 = vrot.lane.b32.xlu1 %v1746_v25, %s6229_s26  ;;  %v10955_v34 = vld [vmem:[#allocation134_spill] sm:$0xff]  ;;  %v8372_v47 = vrot.slane %v3390_v9, %v6439_v7 }
 0x1fe   : > { %v3150_v25 = vcombine.low %v10955_v34, %v10955_v34  ;;  %v8354_v34 = vrot.slane %v3182_v52, %v6439_v7  ;;  %v4431_v5 = vcombine.high %v8340_v19, %v8340_v19 }
 0x200   : > { %v8369_v52 = vrot.slane %v3150_v25, %v6439_v7  ;;  %v8391_v25 = vrot.slane %v4431_v5, %v6439_v7 }
 0x201   : > { %4894 = vrot.lane.b32.xlu0 %v3930_v8, %s6229_s26  ;;  %4880 = vrot.lane.b32.xlu1 %v2370_v58, %s6229_s26  ;;  %v3358_v8 = vcombine.low %v10957_v10, %v10957_v10  ;;  %v4399_v58 = vcombine.high %v8337_v30, %v8337_v30  ;;  %v10958_v10 = vld [vmem:[#allocation195_spill] sm:$0xff] }
 0x202   : > { %v4014_v62 = vcombine.low %v10958_v10, %v10958_v10  ;;  %v3202_v17 = vcombine.low %v8369_v52, %v8354_v34  ;;  %10961 = vst [vmem:[#allocation47_spill] sm:$0xff] %v8391_v25  ;;  %v8399_v10 = vpop.permute.xlu1 %4684 }
 0x203   : > { %v8381_v60 = vrot.slane %v3358_v8, %v6439_v7  ;;  %v8388_v9 = vrot.slane %v4399_v58, %v6439_v7  ;;  %v4222_v8 = vcombine.low %v7939_v45, %v7939_v45 }
 0x205   : > { %4898 = vrot.lane.b32.xlu0 %v4138_v56, %s6229_s26  ;;  %4884 = vrot.lane.b32.xlu1 %v2578_v22, %s6229_s26  ;;  %v10959_v56 = vld [vmem:[#allocation193_spill] sm:$0xff]  ;;  %10960 = vst [vmem:[#allocation48_spill] sm:$0xff] %v8388_v9  ;;  %v3410_v28 = vcombine.low %v8381_v60, %v8372_v47  ;;  %v8424_v5 = vrot.slane %v4222_v8, %v6439_v7  ;;  %v11003_v9 = vld [vmem:[#allocation50_spill] sm:$0xff] }
 0x206   : > { %v3982_v22 = vcombine.low %v10959_v56, %v10959_v56  ;;  %v8426_v58 = vpop.permute.xlu1 %4688  ;;  %v3099_v8 = vcombine.high %v8252_v44, %v8243_v43  ;;  %v10966_v44 = vld [vmem:[#allocation217_spill] sm:$0xff]  ;;  %v11005_v1 = vcombine.low %v11003_v9, %v11004_v0 }
 0x207   : > { %v4575_v29 = vcombine.high %v10966_v44, %v7931_v33  ;;  %v10979_v44 = vld [vmem:[#allocation38_spill] sm:$0xff] }
 0x208   : > { %v8415_v45 = vrot.slane %v3982_v22, %v6439_v7 }
 0x209   : > { %4934 = vrot.lane.b32.xlu0 %v1435_v42, %s6230_s27  ;;  %4888 = vrot.lane.b32.xlu1 %v3202_v17, %s6229_s26  ;;  %v8401_v42 = vpop.permute.xlu0 %4694  ;;  %v8404_v17 = vrot.slane %v4014_v62, %v6439_v7  ;;  %v2267_v62 = vcombine.high %v8208_v51, %v8194_v35  ;;  %v4242_v35 = vcombine.low %v4198_v13, %v8424_v5 }
 0x20a   : > { %10962 = vst [vmem:[#allocation80_spill] sm:$0xff] %v8401_v42  ;;  %v8438_v51 = vpop.permute.xlu1 %4692  ;;  %v8476_v48 = vrot.slane %v4575_v29, %v6427_v49  ;;  %v10980_v29 = vld [vmem:[#allocation37_spill] sm:$0xff] }
 0x20b   : > { %v4034_v56 = vcombine.low %v8415_v45, %v8404_v17 }
 0x20d   : > { %4938 = vrot.lane.b32.xlu0 %v1643_v18, %s6230_s27  ;;  %4892 = vrot.lane.b32.xlu1 %v3410_v28, %s6229_s26  ;;  %v8417_v37 = vpop.permute.xlu0 %4698  ;;  %v2475_v18 = vcombine.high %v8227_v38, %v8218_v40 }
 0x20e   : > { %10963 = vst [vmem:[#allocation79_spill] sm:$0xff] %v8417_v37  ;;  %v8448_v40 = vpop.permute.xlu1 %4696 }
 0x20f   : > { %10965 = vst [vmem:[#allocation8_spill] sm:$0xff] %v8448_v40  ;;  %v11019_v40 = vld [vmem:[#allocation114_spill] sm:$0xff] }
 0x211   : > { %4942 = vrot.lane.b32.xlu0 %v2267_v62, %s6230_s27  ;;  %4896 = vrot.lane.b32.xlu1 %v4034_v56, %s6229_s26  ;;  %v8431_v22 = vpop.permute.xlu0 %4702  ;;  %v3307_v62 = vcombine.high %v8283_v21, %v8269_v31  ;;  %v1747_v56 = vcombine.high %v8276_v26, %v8260_v15  ;;  %v3931_v15 = vcombine.high %v8304_v50, %v8297_v39 }
 0x212   : > { %10964 = vst [vmem:[#allocation9_spill] sm:$0xff] %v8431_v22  ;;  %v2371_v31 = vcombine.high %v8307_v59, %v8290_v24  ;;  %v8473_v26 = vrot.slane %v4559_v12, %v6427_v49  ;;  %v4139_v21 = vcombine.high %v8345_v2, %v8326_v57  ;;  %v2579_v24 = vcombine.high %v8334_v41, %v8329_v46  ;;  %v10972_v46 = vld [vmem:[#allocation13_spill] sm:$0xff]  ;;  %v10973_v41 = vld [vmem:[#allocation14_spill] sm:$0xff] }
 0x213   : > { %v4639_v49 = vcombine.high %v8476_v48, %v8476_v48  ;;  %v3203_v57 = vcombine.high %v8369_v52, %v8354_v34  ;;  %v10974_v2 = vcombine.low %v10972_v46, %v10973_v41  ;;  %v3411_v34 = vcombine.high %v8381_v60, %v8372_v47  ;;  %v10984_v47 = vld [vmem:[#allocation65_spill] sm:$0xff]  ;;  %v10996_v52 = vld [vmem:[#allocation24_spill] sm:$0xff] }
 0x214   : > { %v4607_v39 = vcombine.high %v8473_v26, %v8473_v26  ;;  %v4035_v60 = vcombine.high %v8415_v45, %v8404_v17 }
 0x215   : > { %4946 = vrot.lane.b32.xlu0 %v2475_v18, %s6230_s27  ;;  %4900 = vrot.lane.b32.xlu1 %v4242_v35, %s6229_s26  ;;  %v8464_v18 = vpop.permute.xlu1 %4700 }
 0x216   : > { %10967 = vst [vmem:[#allocation31_spill] sm:$0xff] %v8464_v18 }
 0x217   : > { %v8440_v28 = vpop.permute.xlu0 %4706 }
 0x219   : > { %4950 = vrot.lane.b32.xlu0 %v3099_v8, %s6230_s27  ;;  %4936 = vrot.lane.b32.xlu1 %v1539_v6, %s6230_s27  ;;  %v8480_v14 = vpop.permute.xlu1 %4704  ;;  %v8506_v8 = vrot.slane %v4607_v39, %v6439_v7  ;;  %v8509_v6 = vrot.slane %v4639_v49, %v6439_v7 }
 0x21a   : > { %10968 = vst [vmem:[#allocation28_spill] sm:$0xff] %v8480_v14  ;;  %v11013_v14 = vcombine.low %v11011_v36, %v11012_v16 }
 0x21b   : > { %v8450_v38 = vpop.permute.xlu0 %4742  ;;  %10975 = vst [vmem:[#allocation87_spill] sm:$0xff] %v8506_v8  ;;  %10976 = vst [vmem:[#allocation15_spill] sm:$0xff] %v8509_v6  ;;  %v10997_v6 = vld [vmem:[#allocation21_spill] sm:$0xff] }
 0x21d   : > { %4954 = vrot.lane.b32.xlu0 %v3307_v62, %s6230_s27  ;;  %4940 = vrot.lane.b32.xlu1 %v1747_v56, %s6230_s27 }
 0x21f   : > { %v8466_v35 = vpop.permute.xlu0 %4746 }
 0x221   : > { %4958 = vrot.lane.b32.xlu0 %v3931_v15, %s6230_s27  ;;  %4944 = vrot.lane.b32.xlu1 %v2371_v31, %s6230_s27  ;;  %v10981_v15 = vcombine.low %v10979_v44, %v10980_v29 }
 0x223   : > { %v8482_v33 = vpop.permute.xlu0 %4750 }
 0x224   : > { %10969 = vst [vmem:[#allocation54_spill] sm:$0xff] %v8482_v33 }
 0x225   : > { %4962 = vrot.lane.b32.xlu0 %v4139_v21, %s6230_s27  ;;  %4948 = vrot.lane.b32.xlu1 %v2579_v24, %s6230_s27  ;;  %v10985_v24 = vld [vmem:[#allocation62_spill] sm:$0xff] }
 0x226   : > { %v10986_v39 = vcombine.low %v10984_v47, %v10985_v24 }
 0x227   : > { %v8494_v50 = vpop.permute.xlu1 %4708  ;;  %v8496_v59 = vpop.permute.xlu0 %4754 }
 0x228   : > { %10970 = vst [vmem:[#allocation53_spill] sm:$0xff] %v8494_v50  ;;  %10971 = vst [vmem:[#allocation88_spill] sm:$0xff] %v8496_v59 }
 0x229   : > { %4998 = vrot.lane.b32.xlu0 %v10974_v2, %s6231_s28  ;;  %4952 = vrot.lane.b32.xlu1 %v3203_v57, %s6230_s27  ;;  %v4243_v2 = vcombine.high %v4198_v13, %v8424_v5  ;;  %v10998_v5 = vcombine.low %v10996_v52, %v10997_v6 }
 0x22b   : > { %v8511_v62 = vpop.permute.xlu1 %4744  ;;  %v8513_v56 = vpop.permute.xlu0 %4758 }
 0x22c   : > { %10977 = vst [vmem:[#allocation12_spill] sm:$0xff] %v8511_v62  ;;  %10978 = vst [vmem:[#allocation119_spill] sm:$0xff] %v8513_v56 }
 0x22d   : > { %5002 = vrot.lane.b32.xlu0 %v10981_v15, %s6231_s28  ;;  %4956 = vrot.lane.b32.xlu1 %v3411_v34, %s6230_s27  ;;  %v10989_v34 = vld [vmem:[#allocation100_spill] sm:$0xff]  ;;  %v10990_v15 = vld [vmem:[#allocation99_spill] sm:$0xff] }
 0x22e   : > { %v10991_v12 = vcombine.low %v10989_v34, %v10990_v15 }
 0x22f   : > { %v8526_v31 = vpop.permute.xlu1 %4748  ;;  %v8528_v21 = vpop.permute.xlu0 %4762 }
 0x230   : > { %10982 = vst [vmem:[#allocation42_spill] sm:$0xff] %v8526_v31  ;;  %10983 = vst [vmem:[#allocation149_spill] sm:$0xff] %v8528_v21  ;;  %v11025_v21 = vld [vmem:[#allocation142_spill] sm:$0xff]  ;;  %v11027_v31 = vcombine.high %v10972_v46, %v10973_v41  ;;  %v11036_v46 = vld [vmem:[#allocation201_spill] sm:$0xff] }
 0x231   : > { %5006 = vrot.lane.b32.xlu0 %v10986_v39, %s6231_s28  ;;  %4960 = vrot.lane.b32.xlu1 %v4035_v60, %s6230_s27  ;;  %v10993_v39 = vld [vmem:[#allocation129_spill] sm:$0xff]  ;;  %v10994_v60 = vld [vmem:[#allocation128_spill] sm:$0xff] }
 0x232   : > { %v10995_v43 = vcombine.low %v10993_v39, %v10994_v60  ;;  %v11037_v41 = vld [vmem:[#allocation200_spill] sm:$0xff] }
 0x233   : > { %v8537_v49 = vpop.permute.xlu1 %4752  ;;  %v8539_v57 = vpop.permute.xlu0 %4766 }
 0x234   : > { %10987 = vst [vmem:[#allocation41_spill] sm:$0xff] %v8537_v49  ;;  %10988 = vst [vmem:[#allocation148_spill] sm:$0xff] %v8539_v57 }
 0x235   : > { %5010 = vrot.lane.b32.xlu0 %v10991_v12, %s6231_s28  ;;  %4964 = vrot.lane.b32.xlu1 %v4243_v2, %s6230_s27  ;;  %v11000_v12 = vld [vmem:[#allocation159_spill] sm:$0xff]  ;;  %v11001_v2 = vld [vmem:[#allocation158_spill] sm:$0xff]  ;;  %s10279_s27 = scalar_lea.hbm %s10336_s1, %s6018_s23 }
 0x236   : > { %v11002_v25 = vcombine.low %v11000_v12, %v11001_v2 }
 0x237   : > { %v8547_v17 = vpop.permute.xlu1 %4756  ;;  %v8549_v45 = vpop.permute.xlu0 %4770 }
 0x238   : > { %10992 = vst [vmem:[#allocation73_spill] sm:$0xff] %v8547_v17  ;;  %v11020_v17 = vld [vmem:[#allocation111_spill] sm:$0xff] }
 0x239   : > { %5014 = vrot.lane.b32.xlu0 %v10995_v43, %s6231_s28  ;;  %5000 = vrot.lane.b32.xlu1 %v10998_v5, %s6231_s28  ;;  %v11008_v5 = vld [vmem:[#allocation189_spill] sm:$0xff]  ;;  %v11021_v57 = vcombine.low %v11019_v40, %v11020_v17 }
 0x23a   : > { %v11010_v3 = vcombine.low %v11008_v5, %v11009_v32 }
 0x23b   : > { %v8559_v13 = vpop.permute.xlu1 %4760  ;;  %v8561_v8 = vpop.permute.xlu0 %4806 }
 0x23c   : > { %10999 = vst [vmem:[#allocation181_spill] sm:$0xff] %v8559_v13  ;;  %v11017_v13 = vld [vmem:[#allocation213_spill] sm:$0xff] }
 0x23d   : > { %5018 = vrot.lane.b32.xlu0 %v11002_v25, %s6231_s28  ;;  %5004 = vrot.lane.b32.xlu1 %v11005_v1, %s6231_s28  ;;  %v11016_v1 = vld [vmem:[#allocation214_spill] sm:$0xff] }
 0x23f   : > { %v8571_v43 = vpop.permute.xlu1 %4764  ;;  %v8573_v23 = vpop.permute.xlu0 %4810 }
 0x240   : > { %11006 = vst [vmem:[#allocation70_spill] sm:$0xff] %v8571_v43  ;;  %11007 = vst [vmem:[#allocation180_spill] sm:$0xff] %v8573_v23  ;;  %v11018_v43 = vcombine.low %v11016_v1, %v11017_v13 }
 0x241   : > { %5022 = vrot.lane.b32.xlu0 %v11010_v3, %s6231_s28  ;;  %5008 = vrot.lane.b32.xlu1 %v11013_v14, %s6231_s28  ;;  %v11024_v14 = vld [vmem:[#allocation143_spill] sm:$0xff] }
 0x243   : > { %v8583_v25 = vpop.permute.xlu1 %4768  ;;  %v8585_v18 = vpop.permute.xlu0 %4814 }
 0x244   : > { %11014 = vst [vmem:[#allocation106_spill] sm:$0xff] %v8583_v25  ;;  %11015 = vst [vmem:[#allocation105_spill] sm:$0xff] %v8585_v18  ;;  %v11026_v25 = vcombine.low %v11024_v14, %v11025_v21 }
 0x245   : > { %5026 = vrot.lane.b32.xlu0 %v11018_v43, %s6231_s28  ;;  %5012 = vrot.lane.b32.xlu1 %v11021_v57, %s6231_s28  ;;  %v11030_v57 = vld [vmem:[#allocation173_spill] sm:$0xff] }
 0x247   : > { %v8595_v3 = vpop.permute.xlu1 %4772  ;;  %v8597_v49 = vpop.permute.xlu0 %4818 }
 0x248   : > { %11022 = vst [vmem:[#allocation194_spill] sm:$0xff] %v8595_v3  ;;  %11023 = vst [vmem:[#allocation192_spill] sm:$0xff] %v8597_v49  ;;  %v11031_v3 = vld [vmem:[#allocation172_spill] sm:$0xff]  ;;  %v11033_v49 = vcombine.high %v10979_v44, %v10980_v29  ;;  %v11042_v44 = vcombine.low %v7992_v63, %v7995_v20  ;;  %v11043_v29 = vcombine.high %v10989_v34, %v10990_v15 }
 0x249   : > { %5016 = vrot.lane.b32.xlu1 %v11026_v25, %s6231_s28  ;;  %5062 = vrot.lane.b32.xlu0 %v11027_v31, %s6232_s29  ;;  %v11032_v18 = vcombine.low %v11030_v57, %v11031_v3  ;;  %v11038_v31 = vcombine.low %v11036_v46, %v11037_v41  ;;  %v11048_v34 = vcombine.high %v11003_v9, %v11004_v0 }
 0x24a   : > { %v11049_v15 = vcombine.high %v11000_v12, %v11001_v2  ;;  %v11054_v0 = vcombine.high %v11011_v36, %v11012_v16  ;;  %v11055_v9 = vcombine.high %v11008_v5, %v11009_v32  ;;  %v11056_v12 = vld [vmem:[#allocation32_spill] sm:$0xff]  ;;  %v11060_v16 = vcombine.high %v11019_v40, %v11020_v17  ;;  %v11062_v5 = vld [vmem:[#allocation55_spill] sm:$0xff] }
 0x24b   : > { %v8607_v43 = vpop.permute.xlu1 %4808  ;;  %v8609_v56 = vpop.permute.xlu0 %4822  ;;  %v1990_v2 = vcombine.low %v11056_v12, %v11056_v12  ;;  %v11061_v36 = vcombine.high %v11016_v1, %v11017_v13  ;;  %v11066_v1 = vcombine.high %v11024_v14, %v11025_v21  ;;  %v11071_v14 = vcombine.high %v11030_v57, %v11031_v3 }
 0x24c   : > { %11028 = vst [vmem:[#allocation206_spill] sm:$0xff] %v8607_v43  ;;  %11029 = vst [vmem:[#allocation135_spill] sm:$0xff] %v8609_v56  ;;  %v11039_v56 = vcombine.high %v10984_v47, %v10985_v24  ;;  %v11046_v47 = vcombine.high %v10993_v39, %v10994_v60  ;;  %v11053_v60 = vld [vmem:[#allocation19_spill] sm:$0xff] }
 0x24d   : > { %5020 = vrot.lane.b32.xlu1 %v11032_v18, %s6231_s28  ;;  %5066 = vrot.lane.b32.xlu0 %v11033_v49, %s6232_s29  ;;  %v8716_v17 = vrot.slane %v1990_v2, %v6439_v7 }
 0x24f   : > { %v8619_v25 = vpop.permute.xlu1 %4812  ;;  %v8621_v62 = vpop.permute.xlu0 %4826 }
 0x250   : > { %11034 = vst [vmem:[#allocation134_spill] sm:$0xff] %v8619_v25  ;;  %11035 = vst [vmem:[#allocation165_spill] sm:$0xff] %v8621_v62 }
 0x251   : > { %5024 = vrot.lane.b32.xlu1 %v11038_v31, %s6231_s28  ;;  %5070 = vrot.lane.b32.xlu0 %v11039_v56, %s6232_s29  ;;  %v11045_v56 = vcombine.high %v10996_v52, %v10997_v6  ;;  %v11050_v6 = vld [vmem:[#allocation22_spill] sm:$0xff] }
 0x252   : > { %v1814_v52 = vcombine.low %v11050_v6, %v11050_v6 }
 0x253   : > { %v8631_v18 = vpop.permute.xlu1 %4816  ;;  %v8633_v43 = vpop.permute.xlu0 %4830 }
 0x254   : > { %11040 = vst [vmem:[#allocation164_spill] sm:$0xff] %v8631_v18  ;;  %11041 = vst [vmem:[#allocation195_spill] sm:$0xff] %v8633_v43 }
 0x255   : > { %5028 = vrot.lane.b32.xlu1 %v11042_v44, %s6231_s28  ;;  %5074 = vrot.lane.b32.xlu0 %v11043_v29, %s6232_s29  ;;  %s6138_s28 = scalar_lea.vmem %s10283_s18, 2048 }
 0x256   : > { %p6139_p8 = scmp.ne.s32.totalorder %s10283_s18, %s6138_s28 }
 0x257   : > { %v8643_v49 = vpop.permute.xlu1 %4820  ;;  %v8645_v31 = vpop.permute.xlu0 %4834 }
 0x258   : > { %11044 = vst [vmem:[#allocation193_spill] sm:$0xff] %v8643_v49  ;;  %p6140_p12 = pnand %p6139_p8, %p6304_p9 }
 0x259   : > { %5064 = vrot.lane.b32.xlu1 %v11045_v56, %s6232_s29  ;;  %5078 = vrot.lane.b32.xlu0 %v11046_v47, %s6232_s29  ;;  %v1782_v56 = vcombine.low %v11053_v60, %v11053_v60  ;;  %v11057_v47 = vld [vmem:[#allocation33_spill] sm:$0xff]  ;;  %v8692_v60 = vrot.slane %v1814_v52, %v6439_v7 }
 0x25a   : > { %p6141_p0 = pneg %p6140_p12 }
 0x25b   : > { %v8655_v24 = vpop.permute.xlu1 %4824  ;;  %v8657_v44 = vpop.permute.xlu0 %4870  ;;  %v8703_v32 = vrot.slane %v1782_v56, %v6439_v7 }
 0x25c   : > { %11047 = vst [vmem:[#allocation217_spill] sm:$0xff] %v8655_v24  ;;  %v11075_v24 = vld [vmem:[#allocation125_spill] sm:$0xff] }
 0x25d   : > { %5068 = vrot.lane.b32.xlu1 %v11048_v34, %s6232_s29  ;;  %5082 = vrot.lane.b32.xlu0 %v11049_v15, %s6232_s29  ;;  %v2022_v34 = vcombine.low %v11057_v47, %v11057_v47  ;;  %v1846_v40 = vcombine.low %v8703_v32, %v8692_v60  ;;  %v3478_v49 = vcombine.low %v11075_v24, %v11075_v24 }
 0x25e   : > { %v11080_v24 = vcombine.high %v11036_v46, %v11037_v41 }
 0x25f   : > { %v8669_v29 = vpop.permute.xlu1 %4828  ;;  %v8671_v39 = vpop.permute.xlu0 %4874  ;;  %v8719_v13 = vrot.slane %v2022_v34, %v6439_v7 }
 0x260   : > { %11051 = vst [vmem:[#allocation13_spill] sm:$0xff] %v8669_v29  ;;  %11052 = vst [vmem:[#allocation14_spill] sm:$0xff] %v8671_v39  ;;  %v11105_v39 = vld [vmem:[#allocation197_spill] sm:$0xff] }
 0x261   : > { %5072 = vrot.lane.b32.xlu1 %v11054_v0, %s6232_s29  ;;  %5086 = vrot.lane.b32.xlu0 %v11055_v9, %s6232_s29  ;;  %v2614_v0 = vcombine.low %v11062_v5, %v11062_v5  ;;  %v11063_v9 = vld [vmem:[#allocation56_spill] sm:$0xff]  ;;  %v2054_v21 = vcombine.low %v8716_v17, %v8719_v13 }
 0x262   : > { %v2646_v52 = vcombine.low %v11063_v9, %v11063_v9  ;;  %v11068_v5 = vld [vmem:[#allocation92_spill] sm:$0xff] }
 0x263   : > { %v8687_v15 = vpop.permute.xlu1 %4832  ;;  %v8689_v6 = vpop.permute.xlu0 %4878  ;;  %v8727_v56 = vrot.slane %v2614_v0, %v6439_v7  ;;  %v2854_v34 = vcombine.low %v11068_v5, %v11068_v5  ;;  %v11072_v0 = vld [vmem:[#allocation23_spill] sm:$0xff]  ;;  %v11074_v5 = vld [vmem:[#allocation124_spill] sm:$0xff] }
 0x264   : > { %11058 = vst [vmem:[#allocation38_spill] sm:$0xff] %v8687_v15  ;;  %11059 = vst [vmem:[#allocation37_spill] sm:$0xff] %v8689_v6  ;;  %v3446_v29 = vcombine.low %v11074_v5, %v11074_v5  ;;  %v11081_v5 = vld [vmem:[#allocation152_spill] sm:$0xff] }
 0x265   : > { %5076 = vrot.lane.b32.xlu1 %v11060_v16, %s6232_s29  ;;  %5090 = vrot.lane.b32.xlu0 %v11061_v36, %s6232_s29  ;;  %v8730_v16 = vrot.slane %v2646_v52, %v6439_v7  ;;  %v11067_v36 = vld [vmem:[#allocation91_spill] sm:$0xff]  ;;  %v1886_v52 = vcombine.low %v11072_v0, %v11072_v0 }
 0x266   : > { %v2822_v2 = vcombine.low %v11067_v36, %v11067_v36  ;;  %v8793_v41 = vrot.slane %v3446_v29, %v6439_v7  ;;  %v11087_v29 = vld [vmem:[#allocation76_spill] sm:$0xff] }
 0x267   : > { %v8709_v12 = vpop.permute.xlu1 %4836  ;;  %v8711_v47 = vpop.permute.xlu0 %4882  ;;  %v2678_v36 = vcombine.low %v8727_v56, %v8730_v16 }
 0x268   : > { %11064 = vst [vmem:[#allocation65_spill] sm:$0xff] %v8709_v12  ;;  %11065 = vst [vmem:[#allocation62_spill] sm:$0xff] %v8711_v47  ;;  %v8762_v57 = vrot.slane %v2822_v2, %v6439_v7  ;;  %v3654_v2 = vcombine.low %v11081_v5, %v11081_v5  ;;  %v11094_v47 = vld [vmem:[#allocation210_spill] sm:$0xff] }
 0x269   : > { %5080 = vrot.lane.b32.xlu1 %v11066_v1, %s6232_s29  ;;  %5126 = vrot.lane.b32.xlu0 %v1846_v40, %s6233_s30  ;;  %v11073_v40 = vld [vmem:[#allocation25_spill] sm:$0xff]  ;;  %v4518_v12 = vcombine.low %v11094_v47, %v11094_v47 }
 0x26a   : > { %v1918_v1 = vcombine.low %v11073_v40, %v11073_v40  ;;  %v11079_v40 = vld [vmem:[#allocation44_spill] sm:$0xff] }
 0x26b   : > { %v8736_v9 = vpop.permute.xlu1 %4872  ;;  %v8738_v15 = vpop.permute.xlu0 %4886  ;;  %v2126_v18 = vcombine.low %v11079_v40, %v11079_v40  ;;  %v8885_v33 = vrot.slane %v4518_v12, %v6439_v7 }
 0x26c   : > { %11069 = vst [vmem:[#allocation100_spill] sm:$0xff] %v8736_v9  ;;  %11070 = vst [vmem:[#allocation99_spill] sm:$0xff] %v8738_v15  ;;  %v8790_v46 = vrot.slane %v1918_v1, %v6439_v7 }
 0x26d   : > { %5084 = vrot.lane.b32.xlu1 %v11071_v14, %s6232_s29  ;;  %5130 = vrot.lane.b32.xlu0 %v2054_v21, %s6233_s30  ;;  %v8765_v21 = vrot.slane %v2854_v34, %v6439_v7  ;;  %v11078_v14 = vld [vmem:[#allocation43_spill] sm:$0xff]  ;;  %v8809_v1 = vrot.slane %v2126_v18, %v6439_v7 }
 0x26e   : > { %v2094_v0 = vcombine.low %v11078_v14, %v11078_v14 }
 0x26f   : > { %v8757_v43 = vpop.permute.xlu1 %4876  ;;  %v8759_v3 = vpop.permute.xlu0 %4890  ;;  %v2886_v40 = vcombine.low %v8762_v57, %v8765_v21 }
 0x270   : > { %11076 = vst [vmem:[#allocation129_spill] sm:$0xff] %v8757_v43  ;;  %11077 = vst [vmem:[#allocation128_spill] sm:$0xff] %v8759_v3  ;;  %v11082_v3 = vld [vmem:[#allocation153_spill] sm:$0xff]  ;;  %v8781_v43 = vrot.slane %v1886_v52, %v6439_v7  ;;  %v8806_v5 = vrot.slane %v2094_v0, %v6439_v7 }
 0x271   : > { %5088 = vrot.lane.b32.xlu1 %v11080_v24, %s6232_s29  ;;  %5134 = vrot.lane.b32.xlu0 %v2678_v36, %s6233_s30  ;;  %v3686_v34 = vcombine.low %v11082_v3, %v11082_v3  ;;  %v8796_v36 = vrot.slane %v3478_v49, %v6439_v7  ;;  %v11085_v3 = vld [vmem:[#allocation75_spill] sm:$0xff]  ;;  %v11086_v24 = vcombine.high %v7992_v63, %v7995_v20  ;;  %v11089_v63 = vld [vmem:[#allocation185_spill] sm:$0xff] }
 0x272   : > { %v2718_v52 = vcombine.low %v11085_v3, %v11085_v3  ;;  %v2750_v49 = vcombine.low %v11087_v29, %v11087_v29  ;;  %v1950_v18 = vcombine.low %v8781_v43, %v8790_v46  ;;  %v11091_v29 = vld [vmem:[#allocation107_spill] sm:$0xff] }
 0x273   : > { %v8783_v14 = vpop.permute.xlu1 %4880  ;;  %v8785_v15 = vpop.permute.xlu0 %4894  ;;  %v8817_v3 = vrot.slane %v3686_v34, %v6439_v7  ;;  %v2158_v34 = vcombine.low %v8806_v5, %v8809_v1 }
 0x274   : > { %11083 = vst [vmem:[#allocation24_spill] sm:$0xff] %v8783_v14  ;;  %11084 = vst [vmem:[#allocation21_spill] sm:$0xff] %v8785_v15  ;;  %v8814_v15 = vrot.slane %v3654_v2, %v6439_v7  ;;  %v11088_v14 = vld [vmem:[#allocation184_spill] sm:$0xff]  ;;  %v3510_v2 = vcombine.low %v8793_v41, %v8796_v36  ;;  %v8845_v25 = vrot.slane %v2750_v49, %v6439_v7  ;;  %v11096_v49 = vld [vmem:[#allocation138_spill] sm:$0xff] }
 0x275   : > { %5092 = vrot.lane.b32.xlu1 %v11086_v24, %s6232_s29  ;;  %5138 = vrot.lane.b32.xlu0 %v2886_v40, %s6233_s30  ;;  %v4278_v20 = vcombine.low %v11088_v14, %v11088_v14  ;;  %v4310_v40 = vcombine.low %v11089_v63, %v11089_v63  ;;  %v8836_v14 = vrot.slane %v2718_v52, %v6439_v7  ;;  %s6241_s29 = smov [#allocation5]  }
 0x276   : > { %v2926_v63 = vcombine.low %v11091_v29, %v11091_v29  ;;  %v3718_v62 = vcombine.low %v8814_v15, %v8817_v3 }
 0x277   : > { %v8823_v0 = vpop.permute.xlu1 %4884  ;;  %v8825_v24 = vpop.permute.xlu0 %4898  ;;  %v8856_v29 = vrot.slane %v4278_v20, %v6439_v7  ;;  %v2782_v47 = vcombine.low %v8836_v14, %v8845_v25  ;;  %v11097_v20 = vld [vmem:[#allocation139_spill] sm:$0xff] }
 0x278   : > { %11090 = vst [vmem:[#allocation159_spill] sm:$0xff] %v8823_v0  ;;  %v11092_v0 = vld [vmem:[#allocation108_spill] sm:$0xff] }
 0x279   : > { %5128 = vrot.lane.b32.xlu1 %v1950_v18, %s6233_s30  ;;  %5142 = vrot.lane.b32.xlu0 %v3510_v2, %s6233_s30  ;;  %v2958_v9 = vcombine.low %v11092_v0, %v11092_v0  ;;  %v11093_v18 = vld [vmem:[#allocation209_spill] sm:$0xff]  ;;  %v8859_v0 = vrot.slane %v4310_v40, %v6439_v7  ;;  %v3582_v40 = vcombine.low %v11097_v20, %v11097_v20  ;;  %v11101_v20 = vld [vmem:[#allocation168_spill] sm:$0xff] }
 0x27a   : > { %v4486_v2 = vcombine.low %v11093_v18, %v11093_v18  ;;  %v3550_v18 = vcombine.low %v11096_v49, %v11096_v49 }
 0x27b   : > { %v8851_v52 = vpop.permute.xlu1 %4888  ;;  %v8853_v6 = vpop.permute.xlu0 %4934  ;;  %v8871_v59 = vrot.slane %v2958_v9, %v6439_v7  ;;  %v11100_v9 = vld [vmem:[#allocation167_spill] sm:$0xff] }
 0x27c   : > { %11095 = vst [vmem:[#allocation158_spill] sm:$0xff] %v8851_v52  ;;  %v8868_v52 = vrot.slane %v2926_v63, %v6439_v7  ;;  %v8882_v49 = vrot.slane %v4486_v2, %v6439_v7  ;;  %v3758_v63 = vcombine.low %v11100_v9, %v11100_v9 }
 0x27d   : > { %5132 = vrot.lane.b32.xlu1 %v2158_v34, %s6233_s30  ;;  %5146 = vrot.lane.b32.xlu0 %v3718_v62, %s6233_s30  ;;  %v4342_v62 = vcombine.low %v8856_v29, %v8859_v0 }
 0x27e   : > { %v2990_v2 = vcombine.low %v8868_v52, %v8871_v59  ;;  %v4550_v12 = vcombine.low %v8882_v49, %v8885_v33  ;;  %v8910_v9 = vrot.slane %v3758_v63, %v6439_v7  ;;  %v1847_v63 = vcombine.high %v8703_v32, %v8692_v60 }
 0x27f   : > { %v8875_v50 = vpop.permute.xlu1 %4892  ;;  %v8877_v34 = vpop.permute.xlu0 %4938 }
 0x280   : > { %11098 = vst [vmem:[#allocation50_spill] sm:$0xff] %v8875_v50  ;;  %11099 = vst [vmem:[#allocation49_spill] sm:$0xff] %v8877_v34  ;;  %v3790_v50 = vcombine.low %v11101_v20, %v11101_v20 }
 0x281   : > { %5136 = vrot.lane.b32.xlu1 %v2782_v47, %s6233_s30  ;;  %5150 = vrot.lane.b32.xlu0 %v4342_v62, %s6233_s30  ;;  %v8902_v47 = vrot.slane %v3550_v18, %v6439_v7  ;;  %v8905_v62 = vrot.slane %v3582_v40, %v6439_v7  ;;  %v4414_v18 = vcombine.low %v11105_v39, %v11105_v39 }
 0x282   : > { %v8913_v20 = vrot.slane %v3790_v50, %v6439_v7  ;;  %v2055_v39 = vcombine.high %v8716_v17, %v8719_v13 }
 0x283   : > { %v8893_v34 = vpop.permute.xlu1 %4896  ;;  %v8895_v22 = vpop.permute.xlu0 %4942 }
 0x284   : > { %11102 = vst [vmem:[#allocation189_spill] sm:$0xff] %v8893_v34  ;;  %11103 = vst [vmem:[#allocation188_spill] sm:$0xff] %v8895_v22  ;;  %v11104_v34 = vld [vmem:[#allocation196_spill] sm:$0xff]  ;;  %v3822_v50 = vcombine.low %v8910_v9, %v8913_v20 }
 0x285   : > { %5140 = vrot.lane.b32.xlu1 %v2990_v2, %s6233_s30  ;;  %5154 = vrot.lane.b32.xlu0 %v4550_v12, %s6233_s30  ;;  %v4382_v22 = vcombine.low %v11104_v34, %v11104_v34  ;;  %v3614_v2 = vcombine.low %v8902_v47, %v8905_v62  ;;  %v11108_v34 = vld [vmem:[#allocation218_spill] sm:$0xff] }
 0x286   : > { %v4590_v12 = vcombine.low %v11108_v34, %v11108_v34 }
 0x287   : > { %v8919_v37 = vpop.permute.xlu1 %4900  ;;  %v8921_v40 = vpop.permute.xlu0 %4946  ;;  %v4390_v32 = vrot.slane %v4382_v22, %v6439_v7 }
 0x288   : > { %11106 = vst [vmem:[#allocation82_spill] sm:$0xff] %v8919_v37  ;;  %11107 = vst [vmem:[#allocation81_spill] sm:$0xff] %v8921_v40  ;;  %v11109_v40 = vld [vmem:[#allocation220_spill] sm:$0xff]  ;;  %v4598_v34 = vrot.slane %v4590_v12, %v6439_v7  ;;  %v3511_v12 = vcombine.high %v8793_v41, %v8796_v36  ;;  %v2783_v41 = vcombine.high %v8836_v14, %v8845_v25 }
 0x289   : > { %5144 = vrot.lane.b32.xlu1 %v3614_v2, %s6233_s30  ;;  %5190 = vrot.lane.b32.xlu0 %v1847_v63, %s6234_s2  ;;  %v4622_v37 = vcombine.low %v11109_v40, %v11109_v40  ;;  %v4422_v2 = vrot.slane %v4414_v18, %v6439_v7  ;;  %v2679_v40 = vcombine.high %v8727_v56, %v8730_v16 }
 0x28a   : > { %v4343_v36 = vcombine.high %v8856_v29, %v8859_v0  ;;  %v3615_v29 = vcombine.high %v8902_v47, %v8905_v62  ;;  %v11124_v0 = vld [vmem:[#allocation26_spill] sm:$0xff]  ;;  %v11130_v47 = vld [vmem:[#allocation40_spill] sm:$0xff] }
 0x28b   : > { %v8937_v42 = vpop.permute.xlu1 %4936  ;;  %v8939_v60 = vpop.permute.xlu0 %4950  ;;  %v4446_v13 = vcombine.low %v4390_v32, %v4422_v2 }
 0x28c   : > { %11110 = vst [vmem:[#allocation214_spill] sm:$0xff] %v8937_v42  ;;  %11111 = vst [vmem:[#allocation213_spill] sm:$0xff] %v8939_v60  ;;  %v4630_v60 = vrot.slane %v4622_v37, %v6439_v7  ;;  %v1951_v37 = vcombine.high %v8781_v43, %v8790_v46 }
 0x28d   : > { %5148 = vrot.lane.b32.xlu1 %v3822_v50, %s6233_s30  ;;  %5194 = vrot.lane.b32.xlu0 %v2055_v39, %s6234_s2  ;;  %v2887_v39 = vcombine.high %v8762_v57, %v8765_v21  ;;  %v2159_v21 = vcombine.high %v8806_v5, %v8809_v1  ;;  %v2991_v1 = vcombine.high %v8868_v52, %v8871_v59  ;;  %v11125_v59 = vld [vmem:[#allocation27_spill] sm:$0xff] }
 0x28e   : > { %v4654_v50 = vcombine.low %v4598_v34, %v4630_v60  ;;  %v11126_v52 = vcombine.low %v11124_v0, %v11125_v59 }
 0x28f   : > { %v8945_v63 = vpop.permute.xlu1 %4940  ;;  %v8947_v17 = vpop.permute.xlu0 %4954 }
 0x290   : > { %11112 = vst [vmem:[#allocation114_spill] sm:$0xff] %v8945_v63  ;;  %11113 = vst [vmem:[#allocation111_spill] sm:$0xff] %v8947_v17  ;;  %v11168_v63 = vld [vmem:[#allocation118_spill] sm:$0xff] }
 0x291   : > { %5152 = vrot.lane.b32.xlu1 %v4446_v13, %s6233_s30  ;;  %5198 = vrot.lane.b32.xlu0 %v2679_v40, %s6234_s2  ;;  %v3719_v40 = vcombine.high %v8814_v15, %v8817_v3  ;;  %v4551_v3 = vcombine.high %v8882_v49, %v8885_v33 }
 0x293   : > { %v8955_v22 = vpop.permute.xlu1 %4944  ;;  %v8957_v18 = vpop.permute.xlu0 %4958 }
 0x294   : > { %11114 = vst [vmem:[#allocation143_spill] sm:$0xff] %v8955_v22  ;;  %11115 = vst [vmem:[#allocation142_spill] sm:$0xff] %v8957_v18  ;;  %v11160_v18 = vld [vmem:[#allocation86_spill] sm:$0xff] }
 0x295   : > { %5156 = vrot.lane.b32.xlu1 %v4654_v50, %s6233_s30  ;;  %5202 = vrot.lane.b32.xlu0 %v2887_v39, %s6234_s2  ;;  %v3823_v50 = vcombine.high %v8910_v9, %v8913_v20  ;;  %v11129_v39 = vld [vmem:[#allocation39_spill] sm:$0xff]  ;;  %v11162_v22 = vld [vmem:[#allocation190_spill] sm:$0xff]  ;;  %s6142_s30 = sshll.u32 %s6241_s29, 4  ;;  %s6143_s30 = int_to_ptr.vmem [resolvable:$false] %s6142_s30 }
 0x296   : > { %v11131_v62 = vcombine.low %v11129_v39, %v11130_v47  ;;  %p6145_p1 = scmp.lt.s32.totalorder %s10283_s18, %s6143_s30 }
 0x297   : > { %v8963_v56 = vpop.permute.xlu1 %4948  ;;  %v8965_v16 = vpop.permute.xlu0 %4962 }
 0x298   : > { %11116 = vst [vmem:[#allocation173_spill] sm:$0xff] %v8963_v56  ;;  %v11155_v56 = vld [vmem:[#allocation161_spill] sm:$0xff] }
 0x299   : > { %5192 = vrot.lane.b32.xlu1 %v1951_v37, %s6234_s2  ;;  %5206 = vrot.lane.b32.xlu0 %v3511_v12, %s6234_s2 }
 0x29b   : > { %v8973_v13 = vpop.permute.xlu1 %4952  ;;  %v8975_v57 = vpop.permute.xlu0 %4998 }
 0x29c   : > { %11117 = vst [vmem:[#allocation172_spill] sm:$0xff] %v8973_v13 }
 0x29d   : > { %5196 = vrot.lane.b32.xlu1 %v2159_v21, %s6234_s2  ;;  %5210 = vrot.lane.b32.xlu0 %v3719_v40, %s6234_s2  ;;  %v4447_v21 = vcombine.high %v4390_v32, %v4422_v2  ;;  %v11134_v40 = vld [vmem:[#allocation67_spill] sm:$0xff] }
 0x29f   : > { %v8983_v43 = vpop.permute.xlu1 %4956  ;;  %v8985_v46 = vpop.permute.xlu0 %5002 }
 0x2a0   : > { %11118 = vst [vmem:[#allocation201_spill] sm:$0xff] %v8983_v43  ;;  %11119 = vst [vmem:[#allocation200_spill] sm:$0xff] %v8985_v46  ;;  %v11152_v43 = vld [vmem:[#allocation52_spill] sm:$0xff] }
 0x2a1   : > { %5200 = vrot.lane.b32.xlu1 %v2783_v41, %s6234_s2  ;;  %5214 = vrot.lane.b32.xlu0 %v4343_v36, %s6234_s2  ;;  %v11135_v41 = vld [vmem:[#allocation68_spill] sm:$0xff] }
 0x2a2   : > { %v11136_v36 = vcombine.low %v11134_v40, %v11135_v41 }
 0x2a3   : > { %v8993_v5 = vpop.permute.xlu1 %4960  ;;  %v8995_v15 = vpop.permute.xlu0 %5006 }
 0x2a4   : > { %11120 = vst [vmem:[#allocation22_spill] sm:$0xff] %v8993_v5  ;;  %11121 = vst [vmem:[#allocation19_spill] sm:$0xff] %v8995_v15  ;;  %v11147_v5 = vld [vmem:[#allocation133_spill] sm:$0xff] }
 0x2a5   : > { %5204 = vrot.lane.b32.xlu1 %v2991_v1, %s6234_s2  ;;  %5218 = vrot.lane.b32.xlu0 %v4551_v3, %s6234_s2  ;;  %v4655_v1 = vcombine.high %v4598_v34, %v4630_v60  ;;  %v11139_v3 = vld [vmem:[#allocation101_spill] sm:$0xff] }
 0x2a7   : > { %v9003_v25 = vpop.permute.xlu1 %4964  ;;  %v9005_v14 = vpop.permute.xlu0 %5010 }
 0x2a8   : > { %11122 = vst [vmem:[#allocation32_spill] sm:$0xff] %v9003_v25  ;;  %11123 = vst [vmem:[#allocation33_spill] sm:$0xff] %v9005_v14  ;;  %v11176_v25 = vld [vmem:[#allocation147_spill] sm:$0xff] }
 0x2a9   : > { %5208 = vrot.lane.b32.xlu1 %v3615_v29, %s6234_s2  ;;  %5254 = vrot.lane.b32.xlu0 %v11126_v52, %s6235_s3  ;;  %v11140_v29 = vld [vmem:[#allocation102_spill] sm:$0xff] }
 0x2aa   : > { %v11141_v52 = vcombine.low %v11139_v3, %v11140_v29 }
 0x2ab   : > { %v9014_v33 = vpop.permute.xlu1 %5000  ;;  %v9016_v49 = vpop.permute.xlu0 %5014 }
 0x2ac   : > { %11127 = vst [vmem:[#allocation55_spill] sm:$0xff] %v9014_v33  ;;  %11128 = vst [vmem:[#allocation56_spill] sm:$0xff] %v9016_v49  ;;  %v11170_v49 = vld [vmem:[#allocation215_spill] sm:$0xff]  ;;  %v11171_v33 = vld [vmem:[#allocation216_spill] sm:$0xff] }
 0x2ad   : > { %5212 = vrot.lane.b32.xlu1 %v3823_v50, %s6234_s2  ;;  %5258 = vrot.lane.b32.xlu0 %v11131_v62, %s6235_s3  ;;  %v11143_v50 = vld [vmem:[#allocation29_spill] sm:$0xff]  ;;  %v11144_v62 = vld [vmem:[#allocation30_spill] sm:$0xff]  ;;  %v11172_v42 = vcombine.low %v11170_v49, %v11171_v33 }
 0x2af   : > { %v9025_v37 = vpop.permute.xlu1 %5004  ;;  %v9027_v12 = vpop.permute.xlu0 %5018 }
 0x2b0   : > { %11132 = vst [vmem:[#allocation91_spill] sm:$0xff] %v9025_v37  ;;  %11133 = vst [vmem:[#allocation92_spill] sm:$0xff] %v9027_v12  ;;  %v11163_v12 = vld [vmem:[#allocation191_spill] sm:$0xff] }
 0x2b1   : > { %5216 = vrot.lane.b32.xlu1 %v4447_v21, %s6234_s2  ;;  %5262 = vrot.lane.b32.xlu0 %v11136_v36, %s6235_s3  ;;  %v11145_v21 = vcombine.low %v11143_v50, %v11144_v62  ;;  %v11146_v36 = vld [vmem:[#allocation132_spill] sm:$0xff]  ;;  %v11164_v37 = vcombine.low %v11162_v22, %v11163_v12 }
 0x2b2   : > { %v11148_v60 = vcombine.low %v11146_v36, %v11147_v5 }
 0x2b3   : > { %v9034_v9 = vpop.permute.xlu1 %5008  ;;  %v9036_v20 = vpop.permute.xlu0 %5022 }
 0x2b4   : > { %11137 = vst [vmem:[#allocation23_spill] sm:$0xff] %v9034_v9  ;;  %11138 = vst [vmem:[#allocation25_spill] sm:$0xff] %v9036_v20 }
 0x2b5   : > { %5220 = vrot.lane.b32.xlu1 %v4655_v1, %s6234_s2  ;;  %5266 = vrot.lane.b32.xlu0 %v11141_v52, %s6235_s3  ;;  %v11151_v52 = vld [vmem:[#allocation51_spill] sm:$0xff]  ;;  %s6144_s2 = scalar_lea.vmem %s6143_s30, 4096 }
 0x2b6   : > { %v11153_v13 = vcombine.low %v11151_v52, %v11152_v43  ;;  %p6146_p3 = scmp.lt.s32.totalorder %s6144_s2, %s6138_s28 }
 0x2b7   : > { %v9043_v32 = vpop.permute.xlu1 %5012  ;;  %v9045_v2 = vpop.permute.xlu0 %5026 }
 0x2b8   : > { %11142 = vst [vmem:[#allocation124_spill] sm:$0xff] %v9043_v32  ;;  %v11154_v32 = vld [vmem:[#allocation160_spill] sm:$0xff]  ;;  %p6147_p5 = por %p6146_p3, %p6145_p1 }
 0x2b9   : > { %5256 = vrot.lane.b32.xlu1 %v11145_v21, %s6235_s3  ;;  %5270 = vrot.lane.b32.xlu0 %v11148_v60, %s6235_s3  ;;  %v11156_v20 = vcombine.low %v11154_v32, %v11155_v56  ;;  %v11159_v60 = vld [vmem:[#allocation85_spill] sm:$0xff] }
 0x2ba   : > { %p6148_p6 = pnand %p6147_p5, %p6141_p0 }
 0x2bb   : > { %v9055_v34 = vpop.permute.xlu1 %5016  ;;  %v9057_v1 = vpop.permute.xlu0 %5062 }
 0x2bc   : > { %11149 = vst [vmem:[#allocation125_spill] sm:$0xff] %v9055_v34  ;;  %11150 = vst [vmem:[#allocation43_spill] sm:$0xff] %v9057_v1  ;;  %v11161_v34 = vcombine.low %v11159_v60, %v11160_v18 }
 0x2bd   : > { %5260 = vrot.lane.b32.xlu1 %v11153_v13, %s6235_s3  ;;  %5274 = vrot.lane.b32.xlu0 %v11156_v20, %s6235_s3  ;;  %v11167_v20 = vld [vmem:[#allocation117_spill] sm:$0xff] }
 0x2bf   : > { %v9067_v21 = vpop.permute.xlu1 %5020  ;;  %v9069_v9 = vpop.permute.xlu0 %5066 }
 0x2c0   : > { %11157 = vst [vmem:[#allocation44_spill] sm:$0xff] %v9067_v21  ;;  %11158 = vst [vmem:[#allocation152_spill] sm:$0xff] %v9069_v9  ;;  %v11169_v21 = vcombine.low %v11167_v20, %v11168_v63 }
 0x2c1   : > { %5264 = vrot.lane.b32.xlu1 %v11161_v34, %s6235_s3  ;;  %5278 = vrot.lane.b32.xlu0 %v11164_v37, %s6235_s3  ;;  %v11175_v37 = vld [vmem:[#allocation146_spill] sm:$0xff] }
 0x2c3   : > { %v9079_v13 = vpop.permute.xlu1 %5024  ;;  %v9081_v17 = vpop.permute.xlu0 %5070 }
 0x2c4   : > { %11165 = vst [vmem:[#allocation153_spill] sm:$0xff] %v9079_v13  ;;  %11166 = vst [vmem:[#allocation75_spill] sm:$0xff] %v9081_v17  ;;  %v11177_v13 = vcombine.low %v11175_v37, %v11176_v25  ;;  %v11178_v17 = vcombine.high %v11124_v0, %v11125_v59  ;;  %v11188_v0 = vld [vmem:[#allocation205_spill] sm:$0xff] }
 0x2c5   : > { %5268 = vrot.lane.b32.xlu1 %v11169_v21, %s6235_s3  ;;  %5282 = vrot.lane.b32.xlu0 %v11172_v42, %s6235_s3  ;;  %v11181_v42 = vld [vmem:[#allocation176_spill] sm:$0xff] }
 0x2c7   : > { %v9091_v34 = vpop.permute.xlu1 %5028  ;;  %v9093_v14 = vpop.permute.xlu0 %5074 }
 0x2c8   : > { %11173 = vst [vmem:[#allocation76_spill] sm:$0xff] %v9091_v34  ;;  %11174 = vst [vmem:[#allocation184_spill] sm:$0xff] %v9093_v14  ;;  %v11182_v34 = vld [vmem:[#allocation177_spill] sm:$0xff]  ;;  %v11184_v14 = vcombine.high %v11129_v39, %v11130_v47  ;;  %v11194_v39 = vld [vmem:[#allocation94_spill] sm:$0xff] }
 0x2c9   : > { %5272 = vrot.lane.b32.xlu1 %v11177_v13, %s6235_s3  ;;  %5318 = vrot.lane.b32.xlu0 %v11178_v17, %s6236_s4  ;;  %v11183_v9 = vcombine.low %v11181_v42, %v11182_v34  ;;  %v11187_v17 = vld [vmem:[#allocation204_spill] sm:$0xff] }
 0x2ca   : > { %v11189_v59 = vcombine.low %v11187_v17, %v11188_v0 }
 0x2cb   : > { %v9103_v21 = vpop.permute.xlu1 %5064  ;;  %v9105_v15 = vpop.permute.xlu0 %5078 }
 0x2cc   : > { %11179 = vst [vmem:[#allocation185_spill] sm:$0xff] %v9103_v21  ;;  %11180 = vst [vmem:[#allocation107_spill] sm:$0xff] %v9105_v15  ;;  %v11190_v15 = vcombine.high %v11134_v40, %v11135_v41  ;;  %v11199_v40 = vcombine.high %v11146_v36, %v11147_v5  ;;  %v11207_v36 = vld [vmem:[#allocation63_spill] sm:$0xff] }
 0x2cd   : > { %5276 = vrot.lane.b32.xlu1 %v11183_v9, %s6235_s3  ;;  %5322 = vrot.lane.b32.xlu0 %v11184_v14, %s6236_s4  ;;  %v11193_v14 = vld [vmem:[#allocation221_spill] sm:$0xff] }
 0x2ce   : > { %v11195_v47 = vcombine.low %v11193_v14, %v11194_v39 }
 0x2cf   : > { %v9115_v13 = vpop.permute.xlu1 %5068  ;;  %v9117_v46 = vpop.permute.xlu0 %5082 }
 0x2d0   : > { %11185 = vst [vmem:[#allocation108_spill] sm:$0xff] %v9115_v13  ;;  %11186 = vst [vmem:[#allocation209_spill] sm:$0xff] %v9117_v46  ;;  %v11196_v46 = vcombine.high %v11139_v3, %v11140_v29  ;;  %v11203_v3 = vcombine.high %v11154_v32, %v11155_v56  ;;  %v11204_v29 = vld [vmem:[#allocation60_spill] sm:$0xff]  ;;  %v11209_v56 = vcombine.high %v11162_v22, %v11163_v12 }
 0x2d1   : > { %5280 = vrot.lane.b32.xlu1 %v11189_v59, %s6235_s3  ;;  %5326 = vrot.lane.b32.xlu0 %v11190_v15, %s6236_s4  ;;  %v11198_v15 = vcombine.high %v11143_v50, %v11144_v62  ;;  %v1830_v50 = vcombine.low %v11204_v29, %v11204_v29  ;;  %v11210_v32 = vld [vmem:[#allocation64_spill] sm:$0xff]  ;;  %v11215_v22 = vcombine.high %v11170_v49, %v11171_v33 }
 0x2d2   : > { %v11220_v49 = vcombine.high %v11175_v37, %v11176_v25  ;;  %v11225_v37 = vcombine.high %v11181_v42, %v11182_v34 }
 0x2d3   : > { %v9127_v9 = vpop.permute.xlu1 %5072  ;;  %v9129_v21 = vpop.permute.xlu0 %5086 }
 0x2d4   : > { %11191 = vst [vmem:[#allocation210_spill] sm:$0xff] %v9127_v9  ;;  %11192 = vst [vmem:[#allocation138_spill] sm:$0xff] %v9129_v21 }
 0x2d5   : > { %5284 = vrot.lane.b32.xlu1 %v11195_v47, %s6235_s3  ;;  %5330 = vrot.lane.b32.xlu0 %v11196_v46, %s6236_s4  ;;  %v11202_v46 = vcombine.high %v11151_v52, %v11152_v43  ;;  %v11208_v43 = vcombine.high %v11159_v60, %v11160_v18  ;;  %v2006_v52 = vcombine.low %v11210_v32, %v11210_v32  ;;  %v11216_v60 = vld [vmem:[#allocation83_spill] sm:$0xff] }
 0x2d6   : > { %v11214_v18 = vcombine.high %v11167_v20, %v11168_v63 }
 0x2d7   : > { %v9139_v59 = vpop.permute.xlu1 %5076  ;;  %v9141_v13 = vpop.permute.xlu0 %5090  ;;  %v9212_v20 = vrot.slane %v2006_v52, %v6439_v7 }
 0x2d8   : > { %11197 = vst [vmem:[#allocation139_spill] sm:$0xff] %v9139_v59 }
 0x2d9   : > { %5320 = vrot.lane.b32.xlu1 %v11198_v15, %s6236_s4  ;;  %5334 = vrot.lane.b32.xlu0 %v11199_v40, %s6236_s4  ;;  %v1798_v15 = vcombine.low %v11207_v36, %v11207_v36  ;;  %v11211_v40 = vld [vmem:[#allocation66_spill] sm:$0xff]  ;;  %v9188_v36 = vrot.slane %v1830_v50, %v6439_v7 }
 0x2db   : > { %v9151_v41 = vpop.permute.xlu1 %5080  ;;  %v9153_v47 = vpop.permute.xlu0 %5126  ;;  %v9199_v12 = vrot.slane %v1798_v15, %v6439_v7 }
 0x2dc   : > { %11200 = vst [vmem:[#allocation167_spill] sm:$0xff] %v9151_v41  ;;  %11201 = vst [vmem:[#allocation168_spill] sm:$0xff] %v9153_v47  ;;  %v11229_v41 = vld [vmem:[#allocation145_spill] sm:$0xff] }
 0x2dd   : > { %5324 = vrot.lane.b32.xlu1 %v11202_v46, %s6236_s4  ;;  %5338 = vrot.lane.b32.xlu0 %v11203_v3, %s6236_s4  ;;  %v2038_v46 = vcombine.low %v11211_v40, %v11211_v40  ;;  %v1850_v63 = vcombine.low %v9199_v12, %v9188_v36  ;;  %v3494_v59 = vcombine.low %v11229_v41, %v11229_v41 }
 0x2de   : > { %v11234_v41 = vcombine.high %v11187_v17, %v11188_v0 }
 0x2df   : > { %v9165_v62 = vpop.permute.xlu1 %5084  ;;  %v9167_v5 = vpop.permute.xlu0 %5130  ;;  %v9215_v33 = vrot.slane %v2038_v46, %v6439_v7 }
 0x2e0   : > { %11205 = vst [vmem:[#allocation196_spill] sm:$0xff] %v9165_v62  ;;  %11206 = vst [vmem:[#allocation197_spill] sm:$0xff] %v9167_v5 }
 0x2e1   : > { %5328 = vrot.lane.b32.xlu1 %v11208_v43, %s6236_s4  ;;  %5342 = vrot.lane.b32.xlu0 %v11209_v56, %s6236_s4  ;;  %v2630_v43 = vcombine.low %v11216_v60, %v11216_v60  ;;  %v11217_v56 = vld [vmem:[#allocation84_spill] sm:$0xff]  ;;  %v2058_v25 = vcombine.low %v9212_v20, %v9215_v33 }
 0x2e2   : > { %v2662_v50 = vcombine.low %v11217_v56, %v11217_v56  ;;  %v11222_v60 = vld [vmem:[#allocation116_spill] sm:$0xff] }
 0x2e3   : > { %v9183_v3 = vpop.permute.xlu1 %5088  ;;  %v9185_v29 = vpop.permute.xlu0 %5134  ;;  %v9223_v15 = vrot.slane %v2630_v43, %v6439_v7  ;;  %v2870_v46 = vcombine.low %v11222_v60, %v11222_v60  ;;  %v11226_v43 = vld [vmem:[#allocation96_spill] sm:$0xff] }
 0x2e4   : > { %11212 = vst [vmem:[#allocation218_spill] sm:$0xff] %v9183_v3  ;;  %11213 = vst [vmem:[#allocation220_spill] sm:$0xff] %v9185_v29  ;;  %v11228_v60 = vld [vmem:[#allocation144_spill] sm:$0xff]  ;;  %v11248_v29 = vld [vmem:[#allocation219_spill] sm:$0xff] }
 0x2e5   : > { %5332 = vrot.lane.b32.xlu1 %v11214_v18, %s6236_s4  ;;  %5346 = vrot.lane.b32.xlu0 %v11215_v22, %s6236_s4  ;;  %v9226_v18 = vrot.slane %v2662_v50, %v6439_v7  ;;  %v11221_v22 = vld [vmem:[#allocation115_spill] sm:$0xff]  ;;  %v1902_v50 = vcombine.low %v11226_v43, %v11226_v43  ;;  %v3462_v62 = vcombine.low %v11228_v60, %v11228_v60  ;;  %v11235_v60 = vld [vmem:[#allocation174_spill] sm:$0xff] }
 0x2e6   : > { %v2838_v52 = vcombine.low %v11221_v22, %v11221_v22  ;;  %v4534_v5 = vcombine.low %v11248_v29, %v11248_v29 }
 0x2e7   : > { %v9205_v32 = vpop.permute.xlu1 %5092  ;;  %v9207_v40 = vpop.permute.xlu0 %5138  ;;  %v2682_v22 = vcombine.low %v9223_v15, %v9226_v18  ;;  %v9289_v0 = vrot.slane %v3462_v62, %v6439_v7  ;;  %v11241_v62 = vld [vmem:[#allocation131_spill] sm:$0xff] }
 0x2e8   : > { %11218 = vst [vmem:[#allocation26_spill] sm:$0xff] %v9205_v32  ;;  %11219 = vst [vmem:[#allocation27_spill] sm:$0xff] %v9207_v40  ;;  %v9258_v42 = vrot.slane %v2838_v52, %v6439_v7  ;;  %v3670_v52 = vcombine.low %v11235_v60, %v11235_v60  ;;  %v9381_v23 = vrot.slane %v4534_v5, %v6439_v7 }
 0x2e9   : > { %5336 = vrot.lane.b32.xlu1 %v11220_v49, %s6236_s4  ;;  %5382 = vrot.lane.b32.xlu0 %v1850_v63, %s6237_s5  ;;  %v11227_v63 = vld [vmem:[#allocation97_spill] sm:$0xff] }
 0x2ea   : > { %v1934_v49 = vcombine.low %v11227_v63, %v11227_v63  ;;  %v11233_v63 = vld [vmem:[#allocation113_spill] sm:$0xff] }
 0x2eb   : > { %v9232_v56 = vpop.permute.xlu1 %5128  ;;  %v9234_v3 = vpop.permute.xlu0 %5142  ;;  %v2142_v9 = vcombine.low %v11233_v63, %v11233_v63 }
 0x2ec   : > { %11223 = vst [vmem:[#allocation39_spill] sm:$0xff] %v9232_v56  ;;  %11224 = vst [vmem:[#allocation40_spill] sm:$0xff] %v9234_v3  ;;  %v9286_v17 = vrot.slane %v1934_v49, %v6439_v7 }
 0x2ed   : > { %5340 = vrot.lane.b32.xlu1 %v11225_v37, %s6236_s4  ;;  %5386 = vrot.lane.b32.xlu0 %v2058_v25, %s6237_s5  ;;  %v9261_v25 = vrot.slane %v2870_v46, %v6439_v7  ;;  %v11232_v37 = vld [vmem:[#allocation112_spill] sm:$0xff]  ;;  %v9305_v49 = vrot.slane %v2142_v9, %v6439_v7 }
 0x2ee   : > { %v2110_v43 = vcombine.low %v11232_v37, %v11232_v37 }
 0x2ef   : > { %v9253_v21 = vpop.permute.xlu1 %5132  ;;  %v9255_v34 = vpop.permute.xlu0 %5146  ;;  %v2890_v63 = vcombine.low %v9258_v42, %v9261_v25 }
 0x2f0   : > { %11230 = vst [vmem:[#allocation67_spill] sm:$0xff] %v9253_v21  ;;  %11231 = vst [vmem:[#allocation68_spill] sm:$0xff] %v9255_v34  ;;  %v11236_v34 = vld [vmem:[#allocation175_spill] sm:$0xff]  ;;  %v9277_v21 = vrot.slane %v1902_v50, %v6439_v7  ;;  %v9302_v60 = vrot.slane %v2110_v43, %v6439_v7 }
 0x2f1   : > { %5344 = vrot.lane.b32.xlu1 %v11234_v41, %s6236_s4  ;;  %5390 = vrot.lane.b32.xlu0 %v2682_v22, %s6237_s5  ;;  %v3702_v46 = vcombine.low %v11236_v34, %v11236_v34  ;;  %v9292_v22 = vrot.slane %v3494_v59, %v6439_v7  ;;  %v11239_v34 = vld [vmem:[#allocation130_spill] sm:$0xff]  ;;  %v11240_v41 = vcombine.high %v11193_v14, %v11194_v39  ;;  %v11243_v39 = vld [vmem:[#allocation203_spill] sm:$0xff] }
 0x2f2   : > { %v2734_v50 = vcombine.low %v11239_v34, %v11239_v34  ;;  %v2766_v59 = vcombine.low %v11241_v62, %v11241_v62  ;;  %v1954_v9 = vcombine.low %v9277_v21, %v9286_v17  ;;  %v11245_v62 = vld [vmem:[#allocation156_spill] sm:$0xff] }
 0x2f3   : > { %v9279_v37 = vpop.permute.xlu1 %5136  ;;  %v9281_v3 = vpop.permute.xlu0 %5150  ;;  %v9313_v34 = vrot.slane %v3702_v46, %v6439_v7  ;;  %v2162_v46 = vcombine.low %v9302_v60, %v9305_v49 }
 0x2f4   : > { %11237 = vst [vmem:[#allocation101_spill] sm:$0xff] %v9279_v37  ;;  %11238 = vst [vmem:[#allocation102_spill] sm:$0xff] %v9281_v3  ;;  %v9310_v3 = vrot.slane %v3670_v52, %v6439_v7  ;;  %v11242_v37 = vld [vmem:[#allocation202_spill] sm:$0xff]  ;;  %v3514_v52 = vcombine.low %v9289_v0, %v9292_v22  ;;  %v9341_v32 = vrot.slane %v2766_v59, %v6439_v7 }
 0x2f5   : > { %5348 = vrot.lane.b32.xlu1 %v11240_v41, %s6236_s4  ;;  %5394 = vrot.lane.b32.xlu0 %v2890_v63, %s6237_s5  ;;  %v4294_v14 = vcombine.low %v11242_v37, %v11242_v37  ;;  %v4326_v63 = vcombine.low %v11243_v39, %v11243_v39  ;;  %v9332_v37 = vrot.slane %v2734_v50, %v6439_v7  ;;  %v11251_v59 = vld [vmem:[#allocation166_spill] sm:$0xff] }
 0x2f6   : > { %v2942_v39 = vcombine.low %v11245_v62, %v11245_v62  ;;  %v3722_v40 = vcombine.low %v9310_v3, %v9313_v34 }
 0x2f7   : > { %v9319_v43 = vpop.permute.xlu1 %5140  ;;  %v9321_v41 = vpop.permute.xlu0 %5154  ;;  %v9352_v62 = vrot.slane %v4294_v14, %v6439_v7  ;;  %v2786_v29 = vcombine.low %v9332_v37, %v9341_v32  ;;  %v11252_v14 = vld [vmem:[#allocation171_spill] sm:$0xff] }
 0x2f8   : > { %11244 = vst [vmem:[#allocation29_spill] sm:$0xff] %v9319_v43  ;;  %v11246_v43 = vld [vmem:[#allocation157_spill] sm:$0xff] }
 0x2f9   : > { %5384 = vrot.lane.b32.xlu1 %v1954_v9, %s6237_s5  ;;  %5398 = vrot.lane.b32.xlu0 %v3514_v52, %s6237_s5  ;;  %v2974_v56 = vcombine.low %v11246_v43, %v11246_v43  ;;  %v11247_v9 = vld [vmem:[#allocation35_spill] sm:$0xff]  ;;  %v9355_v43 = vrot.slane %v4326_v63, %v6439_v7  ;;  %v3598_v63 = vcombine.low %v11252_v14, %v11252_v14 }
 0x2fa   : > { %v4502_v52 = vcombine.low %v11247_v9, %v11247_v9  ;;  %v3566_v9 = vcombine.low %v11251_v59, %v11251_v59 }
 0x2fb   : > { %v9347_v50 = vpop.permute.xlu1 %5144  ;;  %v9349_v47 = vpop.permute.xlu0 %5190 }
 0x2fc   : > { %11249 = vst [vmem:[#allocation30_spill] sm:$0xff] %v9347_v50  ;;  %11250 = vst [vmem:[#allocation132_spill] sm:$0xff] %v9349_v47  ;;  %v9364_v50 = vrot.slane %v2942_v39, %v6439_v7  ;;  %v9367_v47 = vrot.slane %v2974_v56, %v6439_v7  ;;  %v9378_v59 = vrot.slane %v4502_v52, %v6439_v7 }
 0x2fd   : > { %5388 = vrot.lane.b32.xlu1 %v2162_v46, %s6237_s5  ;;  %5402 = vrot.lane.b32.xlu0 %v3722_v40, %s6237_s5  ;;  %v4346_v40 = vcombine.low %v9352_v62, %v9355_v43  ;;  %v3774_v56 = vcombine.low %v8137_v53, %v8137_v53  ;;  %v3806_v39 = vcombine.low %v8140_v54, %v8140_v54 }
 0x2fe   : > { %v2994_v52 = vcombine.low %v9364_v50, %v9367_v47  ;;  %v4554_v5 = vcombine.low %v9378_v59, %v9381_v23 }
 0x2ff   : > { %v9371_v1 = vpop.permute.xlu1 %5148  ;;  %v9373_v46 = vpop.permute.xlu0 %5194  ;;  %v9406_v53 = vrot.slane %v3774_v56, %v6439_v7  ;;  %v9409_v54 = vrot.slane %v3806_v39, %v6439_v7  ;;  %v1851_v56 = vcombine.high %v9199_v12, %v9188_v36  ;;  %v4606_v39 = vcombine.low %v8473_v26, %v8473_v26 }
 0x300   : > { %11253 = vst [vmem:[#allocation133_spill] sm:$0xff] %v9371_v1  ;;  %v2683_v26 = vcombine.high %v9223_v15, %v9226_v18 }
 0x301   : > { %5392 = vrot.lane.b32.xlu1 %v2786_v29, %s6237_s5  ;;  %5406 = vrot.lane.b32.xlu0 %v4346_v40, %s6237_s5  ;;  %v9398_v29 = vrot.slane %v3566_v9, %v6439_v7  ;;  %v9401_v40 = vrot.slane %v3598_v63, %v6439_v7  ;;  %v4430_v9 = vcombine.low %v8340_v19, %v8340_v19 }
 0x302   : > { %v2059_v19 = vcombine.high %v9212_v20, %v9215_v33  ;;  %v2891_v33 = vcombine.high %v9258_v42, %v9261_v25  ;;  %v9466_v18 = vrot.slane %v4606_v39, %v6439_v7  ;;  %v11257_v25 = vld [vmem:[#allocation211_spill] sm:$0xff] }
 0x303   : > { %v9389_v14 = vpop.permute.xlu1 %5152  ;;  %v9391_v1 = vpop.permute.xlu0 %5198 }
 0x304   : > { %11254 = vst [vmem:[#allocation51_spill] sm:$0xff] %v9389_v14  ;;  %11255 = vst [vmem:[#allocation52_spill] sm:$0xff] %v9391_v1  ;;  %v4398_v14 = vcombine.low %v8337_v30, %v8337_v30  ;;  %v3826_v30 = vcombine.low %v9406_v53, %v9409_v54 }
 0x305   : > { %5396 = vrot.lane.b32.xlu1 %v2994_v52, %s6237_s5  ;;  %5410 = vrot.lane.b32.xlu0 %v4554_v5, %s6237_s5  ;;  %v3618_v52 = vcombine.low %v9398_v29, %v9401_v40  ;;  %v4638_v5 = vcombine.low %v8476_v48, %v8476_v48 }
 0x306   : > { %v9438_v12 = vrot.slane %v4398_v14, %v6439_v7  ;;  %v3515_v14 = vcombine.high %v9289_v0, %v9292_v22  ;;  %v11258_v0 = vld [vmem:[#allocation212_spill] sm:$0xff] }
 0x307   : > { %v9415_v1 = vpop.permute.xlu1 %5156  ;;  %v9417_v63 = vpop.permute.xlu0 %5202  ;;  %v9469_v20 = vrot.slane %v4638_v5, %v6439_v7  ;;  %v11259_v22 = vcombine.low %v11257_v25, %v11258_v0  ;;  %v11260_v25 = vld [vmem:[#allocation11_spill] sm:$0xff]  ;;  %v11261_v0 = vld [vmem:[#allocation10_spill] sm:$0xff] }
 0x308   : > { %11256 = vst [vmem:[#allocation160_spill] sm:$0xff] %v9417_v63 }
 0x309   : > { %5400 = vrot.lane.b32.xlu1 %v3618_v52, %s6237_s5  ;;  %5446 = vrot.lane.b32.xlu0 %v1851_v56, %s6238_s12  ;;  %v9441_v52 = vrot.slane %v4430_v9, %v6439_v7  ;;  %v1955_v56 = vcombine.high %v9277_v21, %v9286_v17  ;;  %v5637_v9 = vsel %vm5622_vm0, %v11259_v22, %v8440_v28  ;;  %v11295_v21 = vld [vmem:[#allocation168_spill] sm:$0xff] }
 0x30a   : > { %v5654_v7 = vsel %vm5639_vm1, %v5637_v9, %v8549_v45  ;;  %v11262_v22 = vcombine.low %v11260_v25, %v11261_v0  ;;  %v11267_v0 = vld [vmem:[#allocation34_spill] sm:$0xff] }
 0x30b   : > { %v9433_v63 = vpop.permute.xlu1 %5192  ;;  %v9435_v36 = vpop.permute.xlu0 %5206  ;;  %v4450_v15 = vcombine.low %v9438_v12, %v9441_v52  ;;  %v5671_v45 = vsel %vm5656_vm2, %v5654_v7, %v8645_v31  ;;  %v4658_v31 = vcombine.low %v9466_v18, %v9469_v20  ;;  %v11266_v7 = vld [vmem:[#allocation36_spill] sm:$0xff] }
 0x30c   : > { %v5623_v42 = vsel %vm5622_vm0, %v11262_v22, %v8236_v55  ;;  %v5688_v28 = vsel %vm5673_vm3, %v5671_v45, %v8825_v24  ;;  %v11268_v22 = vcombine.low %v11266_v7, %v11267_v0  ;;  %v11270_v45 = vld [vmem:[#allocation46_spill] sm:$0xff] }
 0x30d   : > { %5404 = vrot.lane.b32.xlu1 %v3826_v30, %s6237_s5  ;;  %5450 = vrot.lane.b32.xlu0 %v2059_v19, %s6238_s12  ;;  %v5705_v24 = vsel %vm5690_vm4, %v5688_v28, %v8965_v16  ;;  %v11276_v28 = vld [vmem:[#allocation78_spill] sm:$0xff] }
 0x30e   : > { %v5625_v9 = vsel %vm5622_vm0, %v11268_v22, %v8278_v4  ;;  %v5722_v7 = vsel %vm5707_vm5, %v5705_v24, %v9045_v2  ;;  %v11272_v4 = vld [vmem:[#allocation61_spill] sm:$0xff] }
 0x30f   : > { %v9459_v30 = vpop.permute.xlu1 %5196  ;;  %v9461_v19 = vpop.permute.xlu0 %5210  ;;  %v11275_v2 = vld [vmem:[#allocation77_spill] sm:$0xff] }
 0x310   : > { %v11277_v0 = vcombine.low %v11275_v2, %v11276_v28  ;;  %v11291_v2 = vld [vmem:[#allocation154_spill] sm:$0xff]  ;;  %v11292_v28 = vld [vmem:[#allocation155_spill] sm:$0xff] }
 0x311   : > { %5408 = vrot.lane.b32.xlu1 %v4450_v15, %s6237_s5  ;;  %5454 = vrot.lane.b32.xlu0 %v2683_v26, %s6238_s12  ;;  %v11263_v26 = vld [vmem:[#allocation16_spill] sm:$0xff]  ;;  %v11264_v15 = vld [vmem:[#allocation17_spill] sm:$0xff] }
 0x312   : > { %v11265_v5 = vcombine.low %v11263_v26, %v11264_v15 }
 0x313   : > { %v9506_v25 = vpop.permute.xlu1 %5200  ;;  %v9508_v55 = vpop.permute.xlu0 %5214 }
 0x314   : > { %v5624_v39 = vsel %vm5622_vm0, %v11265_v5, %v8362_v11  ;;  %v5640_v11 = vsel %vm5639_vm1, %v5623_v42, %v8450_v38  ;;  %v11269_v5 = vld [vmem:[#allocation45_spill] sm:$0xff] }
 0x315   : > { %v11271_v26 = vcombine.low %v11269_v5, %v11270_v45  ;;  %v5657_v48 = vsel %vm5656_vm2, %v5640_v11, %v8561_v8  ;;  %5412 = vrot.lane.b32.xlu1 %v4658_v31, %s6237_s5  ;;  %5458 = vrot.lane.b32.xlu0 %v2891_v33, %s6238_s12  ;;  %v11273_v38 = vld [vmem:[#allocation57_spill] sm:$0xff]  ;;  %v5739_v8 = vsel %vm5724_vm6, %v5722_v7, %v9141_v13  ;;  %v11282_v45 = vld [vmem:[#allocation110_spill] sm:$0xff] }
 0x316   : > { %v11274_v16 = vcombine.low %v11272_v4, %v11273_v38  ;;  %v5628_v31 = vsel %vm5622_vm0, %v11277_v0, %v8426_v58  ;;  %v5756_v22 = vsel %vm5741_vm7, %v5739_v8, %v9321_v41  ;;  %v11279_v13 = vld [vmem:[#allocation93_spill] sm:$0xff]  ;;  %v5642_v5 = vsel %vm5639_vm1, %v5625_v9, %v8466_v35  ;;  %v11284_v4 = vld [vmem:[#allocation180_spill] sm:$0xff]  ;;  %v11288_v9 = vld [vmem:[#allocation126_spill] sm:$0xff] }
 0x317   : > { %v5626_v15 = vsel %vm5622_vm0, %v11271_v26, %v8399_v10  ;;  %v5674_v10 = vsel %vm5673_vm3, %v5657_v48, %v8657_v44  ;;  %v5219_v44 = vpop.permute.xlu0 %5218  ;;  %v11278_v48 = vld [vmem:[#allocation98_spill] sm:$0xff]  ;;  %v11281_v41 = vld [vmem:[#allocation109_spill] sm:$0xff]  ;;  %v5659_v38 = vsel %vm5656_vm2, %v5642_v5, %v11284_v4  ;;  %v11286_v35 = vld [vmem:[#allocation80_spill] sm:$0xff]  ;;  %v11293_v0 = vcombine.low %v11291_v2, %v11292_v28 }
 0x318   : > { %v5627_v42 = vsel %vm5622_vm0, %v11274_v16, %v8321_v27  ;;  %v5691_v33 = vsel %vm5690_vm4, %v5674_v10, %v8853_v6  ;;  %v9550_v27 = vpop.permute.xlu1 %5204  ;;  %v11280_v11 = vcombine.low %v11278_v48, %v11279_v13  ;;  %v9562_v6 = vsel %vm5758_vm8, %v5756_v22, %v5219_v44  ;;  %v11285_v16 = vld [vmem:[#allocation43_spill] sm:$0xff]  ;;  %v11294_v22 = vld [vmem:[#allocation14_spill] sm:$0xff]  ;;  %v11308_v28 = vld [vmem:[#allocation200_spill] sm:$0xff] }
 0x319   : > { %v5708_v58 = vsel %vm5707_vm5, %v5691_v33, %v8975_v57  ;;  %v11283_v26 = vcombine.low %v11281_v41, %v11282_v45  ;;  %5448 = vrot.lane.b32.xlu1 %v1955_v56, %s6238_s12  ;;  %5462 = vrot.lane.b32.xlu0 %v3515_v14, %s6238_s12  ;;  %v11287_v57 = vld [vmem:[#allocation127_spill] sm:$0xff]  ;;  %v5676_v44 = vsel %vm5673_vm3, %v5659_v38, %v11294_v22  ;;  %v11296_v56 = vld [vmem:[#allocation9_spill] sm:$0xff]  ;;  %v11297_v14 = vld [vmem:[#allocation186_spill] sm:$0xff] }
 0x31a   : > { %v5629_v24 = vsel %vm5622_vm0, %v11280_v11, %v8364_v61  ;;  %v5725_v61 = vsel %vm5724_vm6, %v5708_v58, %v11285_v16  ;;  %v11289_v10 = vcombine.low %v11287_v57, %v11288_v9  ;;  %v11290_v8 = vld [vmem:[#allocation79_spill] sm:$0xff]  ;;  %v11300_v5 = vld [vmem:[#allocation54_spill] sm:$0xff]  ;;  %v11301_v41 = vld [vmem:[#allocation49_spill] sm:$0xff] }
 0x31b   : > { %v5630_v7 = vsel %vm5622_vm0, %v11283_v26, %v8438_v51  ;;  %v5633_v33 = vsel %vm5622_vm0, %v11293_v0, %v11290_v8  ;;  %v5742_v17 = vsel %vm5741_vm7, %v5725_v61, %v11295_v21  ;;  %v11298_v48 = vld [vmem:[#allocation187_spill] sm:$0xff]  ;;  %v5644_v58 = vsel %vm5639_vm1, %v5627_v42, %v11300_v5  ;;  %v11302_v26 = vld [vmem:[#allocation132_spill] sm:$0xff]  ;;  %v5255_v38 = vpop.permute.xlu0 %5254  ;;  %v11304_v61 = vld [vmem:[#allocation58_spill] sm:$0xff] }
 0x31c   : > { %v5631_v51 = vsel %vm5622_vm0, %v11289_v10, %v11286_v35  ;;  %v11299_v13 = vcombine.low %v11297_v14, %v11298_v48  ;;  %v5693_v45 = vsel %vm5690_vm4, %v5676_v44, %v11301_v41  ;;  %v5759_v4 = vsel %vm5758_vm8, %v5742_v17, %v11302_v26  ;;  %v9603_v16 = vpop.permute.xlu1 %5208  ;;  %v11303_v35 = vld [vmem:[#allocation53_spill] sm:$0xff]  ;;  %v11305_v57 = vld [vmem:[#allocation59_spill] sm:$0xff]  ;;  %v11307_v8 = vld [vmem:[#allocation88_spill] sm:$0xff] }
 0x31d   : > { %v11306_v9 = vcombine.low %v11304_v61, %v11305_v57  ;;  %v5646_v2 = vsel %vm5639_vm1, %v5629_v24, %v11307_v8  ;;  %v5710_v42 = vsel %vm5707_vm5, %v5693_v45, %v11308_v28  ;;  %v9615_v0 = vsel %vm5775_vm9, %v5759_v4, %v5255_v38  ;;  %v11309_v22 = vld [vmem:[#allocation12_spill] sm:$0xff]  ;;  %v11310_v21 = vld [vmem:[#allocation105_spill] sm:$0xff] }
 0x31e   : > { %v5635_v11 = vsel %vm5622_vm0, %v11299_v13, %v11296_v56  ;;  %v5641_v44 = vsel %vm5639_vm1, %v5624_v39, %v11309_v22  ;;  %v5661_v17 = vsel %vm5656_vm2, %v5644_v58, %v11310_v21  ;;  %v11311_v56 = vld [vmem:[#allocation152_spill] sm:$0xff]  ;;  %v11312_v48 = vcombine.high %v9302_v60, %v9305_v49  ;;  %v11314_v13 = vld [vmem:[#allocation119_spill] sm:$0xff]  ;;  %v11315_v39 = vld [vmem:[#allocation42_spill] sm:$0xff] }
 0x31f   : > { %v5638_v10 = vsel %vm5622_vm0, %v11306_v9, %v11303_v35  ;;  %v5727_v14 = vsel %vm5724_vm6, %v5710_v42, %v11311_v56  ;;  %v11313_v24 = vcombine.high %v9310_v3, %v9313_v34  ;;  %v5648_v5 = vsel %vm5639_vm1, %v5631_v51, %v11314_v13  ;;  %v11316_v58 = vld [vmem:[#allocation37_spill] sm:$0xff]  ;;  %v11320_v3 = vld [vmem:[#allocation188_spill] sm:$0xff]  ;;  %v11324_v22 = vld [vmem:[#allocation194_spill] sm:$0xff] }
 0x320   : > { %5452 = vrot.lane.b32.xlu1 %v11312_v48, %s6238_s12  ;;  %v5643_v41 = vsel %vm5639_vm1, %v5626_v15, %v11315_v39  ;;  %v5678_v45 = vsel %vm5673_vm3, %v5661_v17, %v11316_v58  ;;  %v11317_v26 = vld [vmem:[#allocation197_spill] sm:$0xff]  ;;  %v9647_v61 = vpop.permute.xlu1 %5212  ;;  %v5259_v15 = vpop.permute.xlu0 %5258  ;;  %v11321_v57 = vld [vmem:[#allocation148_spill] sm:$0xff]  ;;  %v11326_v56 = vld [vmem:[#allocation75_spill] sm:$0xff] }
 0x321   : > { %5466 = vrot.lane.b32.xlu0 %v11313_v24, %s6238_s12  ;;  %v5744_v4 = vsel %vm5741_vm7, %v5727_v14, %v11317_v26  ;;  %v11318_v38 = vld [vmem:[#allocation149_spill] sm:$0xff]  ;;  %v5695_v34 = vsel %vm5690_vm4, %v5678_v45, %v11320_v3  ;;  %v9651_v9 = vsel %vm5639_vm1, %v5635_v11, %v11321_v57  ;;  %v11325_v21 = vld [vmem:[#allocation192_spill] sm:$0xff]  ;;  %v11328_v14 = vcombine.high %v9352_v62, %v9355_v43  ;;  %v11329_v48 = vld [vmem:[#allocation206_spill] sm:$0xff] }
 0x322   : > { %v5650_v60 = vsel %vm5639_vm1, %v5633_v33, %v11318_v38  ;;  %v11319_v49 = vld [vmem:[#allocation41_spill] sm:$0xff]  ;;  %v5761_v51 = vsel %vm5758_vm8, %v5744_v4, %v9373_v46  ;;  %v11323_v33 = vld [vmem:[#allocation19_spill] sm:$0xff]  ;;  %v5655_v46 = vsel %vm5639_vm1, %v5638_v10, %v11324_v22  ;;  %v5663_v17 = vsel %vm5656_vm2, %v5646_v2, %v11325_v21  ;;  %v11331_v2 = vld [vmem:[#allocation62_spill] sm:$0xff] }
 0x323   : > { %v5645_v35 = vsel %vm5639_vm1, %v5628_v31, %v11319_v49  ;;  %v11322_v8 = vld [vmem:[#allocation73_spill] sm:$0xff]  ;;  %v5712_v31 = vsel %vm5707_vm5, %v5695_v34, %v11323_v33  ;;  %v9660_v42 = vsel %vm5775_vm9, %v5761_v51, %v5259_v15  ;;  %v5658_v24 = vsel %vm5656_vm2, %v5641_v44, %v11329_v48  ;;  %v11332_v58 = vld [vmem:[#allocation220_spill] sm:$0xff]  ;;  %v11333_v26 = vld [vmem:[#allocation135_spill] sm:$0xff] }
 0x324   : > { %v9655_v28 = vsel %vm5639_vm1, %v5630_v7, %v11322_v8  ;;  %v5729_v11 = vsel %vm5724_vm6, %v5712_v31, %v11326_v56  ;;  %v11327_v7 = vcombine.high %v9332_v37, %v9341_v32  ;;  %v11330_v10 = vld [vmem:[#allocation65_spill] sm:$0xff]  ;;  %v5680_v39 = vsel %vm5673_vm3, %v5663_v17, %v11331_v2  ;;  %v11334_v37 = vld [vmem:[#allocation82_spill] sm:$0xff]  ;;  %v11336_v38 = vld [vmem:[#allocation52_spill] sm:$0xff]  ;;  %v9692_v49 = vpop.permute.xlu1 %5216  ;;  %v5263_v3 = vpop.permute.xlu0 %5262 }
 0x325   : > { %5470 = vrot.lane.b32.xlu0 %v11328_v14, %s6238_s12  ;;  %v5672_v13 = vsel %vm5656_vm2, %v5655_v46, %v11330_v10  ;;  %v5746_v45 = vsel %vm5741_vm7, %v5729_v11, %v11332_v58  ;;  %v5665_v32 = vsel %vm5656_vm2, %v5648_v5, %v11333_v26  ;;  %v11335_v62 = vld [vmem:[#allocation81_spill] sm:$0xff]  ;;  %v11337_v34 = vld [vmem:[#allocation134_spill] sm:$0xff]  ;;  %v11338_v15 = vld [vmem:[#allocation32_spill] sm:$0xff]  ;;  %v11344_v11 = vcombine.high %v9378_v59, %v9381_v23 }
 0x326   : > { %5456 = vrot.lane.b32.xlu1 %v11327_v7, %s6238_s12  ;;  %v5689_v4 = vsel %vm5673_vm3, %v5672_v13, %v11334_v37  ;;  %v5697_v43 = vsel %vm5690_vm4, %v5680_v39, %v11335_v62  ;;  %v5763_v44 = vsel %vm5758_vm8, %v5746_v45, %v11336_v38  ;;  %v5660_v51 = vsel %vm5656_vm2, %v5643_v41, %v11337_v34  ;;  %v11339_v8 = vld [vmem:[#allocation33_spill] sm:$0xff]  ;;  %v11341_v46 = vld [vmem:[#allocation76_spill] sm:$0xff]  ;;  %v11347_v10 = vld [vmem:[#allocation26_spill] sm:$0xff] }
 0x327   : > { %v5706_v57 = vsel %vm5690_vm4, %v5689_v4, %v11338_v15  ;;  %v5714_v5 = vsel %vm5707_vm5, %v5697_v43, %v11339_v8  ;;  %v9701_v33 = vsel %vm5775_vm9, %v5763_v44, %v5263_v3  ;;  %v11340_v31 = vld [vmem:[#allocation165_spill] sm:$0xff]  ;;  %v11342_v17 = vld [vmem:[#allocation184_spill] sm:$0xff]  ;;  %v11343_v41 = vcombine.high %v9364_v50, %v9367_v47  ;;  %v11348_v2 = vld [vmem:[#allocation27_spill] sm:$0xff] }
 0x328   : > { %v5667_v22 = vsel %vm5656_vm2, %v5650_v60, %v11340_v31  ;;  %v5723_v21 = vsel %vm5707_vm5, %v5706_v57, %v11341_v46  ;;  %v5731_v56 = vsel %vm5724_vm6, %v5714_v5, %v11342_v17  ;;  %v11345_v7 = vld [vmem:[#allocation100_spill] sm:$0xff]  ;;  %v11346_v60 = vld [vmem:[#allocation99_spill] sm:$0xff]  ;;  %v11349_v58 = vld [vmem:[#allocation214_spill] sm:$0xff]  ;;  %v5221_v26 = vpop.permute.xlu1 %5220  ;;  %v11357_v5 = vcombine.high %v9398_v29, %v9401_v40 }
 0x329   : > { %5474 = vrot.lane.b32.xlu0 %v11344_v11, %s6238_s12  ;;  %v5675_v14 = vsel %vm5673_vm3, %v5658_v24, %v11345_v7  ;;  %v5682_v48 = vsel %vm5673_vm3, %v5665_v32, %v11346_v60  ;;  %v5740_v13 = vsel %vm5724_vm6, %v5723_v21, %v11347_v10  ;;  %v5748_v39 = vsel %vm5741_vm7, %v5731_v56, %v11348_v2  ;;  %v11350_v50 = vld [vmem:[#allocation213_spill] sm:$0xff]  ;;  %v11351_v59 = vld [vmem:[#allocation160_spill] sm:$0xff]  ;;  %v5267_v32 = vpop.permute.xlu0 %5266  ;;  %v11352_v37 = vld [vmem:[#allocation55_spill] sm:$0xff] }
 0x32a   : > { %5460 = vrot.lane.b32.xlu1 %v11343_v41, %s6238_s12  ;;  %v5692_v47 = vsel %vm5690_vm4, %v5675_v14, %v11349_v58  ;;  %v5699_v45 = vsel %vm5690_vm4, %v5682_v48, %v11350_v50  ;;  %v5757_v23 = vsel %vm5741_vm7, %v5740_v13, %v9415_v1  ;;  %v5765_v24 = vsel %vm5758_vm8, %v5748_v39, %v11351_v59  ;;  %v11353_v62 = vld [vmem:[#allocation56_spill] sm:$0xff]  ;;  %v11355_v34 = vld [vmem:[#allocation185_spill] sm:$0xff]  ;;  %v11356_v57 = vld [vmem:[#allocation107_spill] sm:$0xff] }
 0x32b   : > { %v5709_v4 = vsel %vm5707_vm5, %v5692_v47, %v11352_v37  ;;  %v5716_v43 = vsel %vm5707_vm5, %v5699_v45, %v11353_v62  ;;  %v9738_v38 = vsel %vm5758_vm8, %v5757_v23, %v5221_v26  ;;  %v9741_v44 = vsel %vm5775_vm9, %v5765_v24, %v5267_v32  ;;  %v11354_v3 = vld [vmem:[#allocation164_spill] sm:$0xff]  ;;  %v11358_v31 = vld [vmem:[#allocation71_spill] sm:$0xff]  ;;  %v11359_v46 = vld [vmem:[#allocation69_spill] sm:$0xff] }
 0x32c   : > { %v5662_v1 = vsel %vm5656_vm2, %v5645_v35, %v11354_v3  ;;  %v5726_v15 = vsel %vm5724_vm6, %v5709_v4, %v11355_v34  ;;  %v5733_v8 = vsel %vm5724_vm6, %v5716_v43, %v11356_v57  ;;  %v11360_v21 = vcombine.low %v11358_v31, %v11359_v46  ;;  %v11361_v17 = vld [vmem:[#allocation129_spill] sm:$0xff]  ;;  %v11362_v56 = vld [vmem:[#allocation128_spill] sm:$0xff]  ;;  %v11363_v11 = vld [vmem:[#allocation39_spill] sm:$0xff]  ;;  %v5257_v2 = vpop.permute.xlu1 %5256 }
 0x32d   : > { %v5677_v35 = vsel %vm5673_vm3, %v5660_v51, %v11361_v17  ;;  %v5684_v41 = vsel %vm5673_vm3, %v5667_v22, %v11362_v56  ;;  %v5743_v7 = vsel %vm5741_vm7, %v5726_v15, %v11363_v11  ;;  %v11364_v14 = vld [vmem:[#allocation40_spill] sm:$0xff]  ;;  %v11365_v29 = vld [vmem:[#allocation114_spill] sm:$0xff]  ;;  %v11366_v48 = vld [vmem:[#allocation111_spill] sm:$0xff]  ;;  %v5271_v22 = vpop.permute.xlu0 %5270  ;;  %v11372_v37 = vcombine.high %v9406_v53, %v9409_v54 }
 0x32e   : > { %5464 = vrot.lane.b32.xlu1 %v11357_v5, %s6238_s12  ;;  %5510 = vrot.lane.b32.xlu0 %v11360_v21, %s6239_s13  ;;  %v5750_v60 = vsel %vm5741_vm7, %v5733_v8, %v11364_v14  ;;  %v5694_v40 = vsel %vm5690_vm4, %v5677_v35, %v11365_v29  ;;  %v5701_v10 = vsel %vm5690_vm4, %v5684_v41, %v11366_v48  ;;  %v11367_v39 = vld [vmem:[#allocation91_spill] sm:$0xff]  ;;  %v11368_v47 = vld [vmem:[#allocation92_spill] sm:$0xff]  ;;  %v11371_v26 = vld [vmem:[#allocation209_spill] sm:$0xff] }
 0x32f   : > { %v5760_v13 = vsel %vm5758_vm8, %v5743_v7, %v9433_v63  ;;  %v5767_v51 = vsel %vm5758_vm8, %v5750_v60, %v9435_v36  ;;  %v5711_v58 = vsel %vm5707_vm5, %v5694_v40, %v11367_v39  ;;  %v5718_v50 = vsel %vm5707_vm5, %v5701_v10, %v11368_v47  ;;  %v11369_v59 = vld [vmem:[#allocation195_spill] sm:$0xff]  ;;  %v11370_v24 = vld [vmem:[#allocation108_spill] sm:$0xff]  ;;  %v11374_v62 = vld [vmem:[#allocation74_spill] sm:$0xff] }
 0x330   : > { %v9778_v45 = vsel %vm5775_vm9, %v5760_v13, %v5257_v2  ;;  %v9781_v23 = vsel %vm5775_vm9, %v5767_v51, %v5271_v22  ;;  %v5669_v63 = vsel %vm5656_vm2, %v9651_v9, %v11369_v59  ;;  %v5728_v36 = vsel %vm5724_vm6, %v5711_v58, %v11370_v24  ;;  %v11373_v4 = vld [vmem:[#allocation72_spill] sm:$0xff]  ;;  %v11377_v9 = vld [vmem:[#allocation21_spill] sm:$0xff]  ;;  %v11378_v57 = vld [vmem:[#allocation67_spill] sm:$0xff]  ;;  %v5261_v41 = vpop.permute.xlu1 %5260 }
 0x331   : > { %v5735_v32 = vsel %vm5724_vm6, %v5718_v50, %v11371_v26  ;;  %v11375_v43 = vcombine.low %v11373_v4, %v11374_v62  ;;  %v11376_v3 = vld [vmem:[#allocation24_spill] sm:$0xff]  ;;  %v5686_v15 = vsel %vm5673_vm3, %v5669_v63, %v11377_v9  ;;  %v5745_v8 = vsel %vm5741_vm7, %v5728_v36, %v11378_v57  ;;  %v11380_v17 = vld [vmem:[#allocation143_spill] sm:$0xff]  ;;  %v11381_v54 = vld [vmem:[#allocation142_spill] sm:$0xff]  ;;  %v5275_v11 = vpop.permute.xlu0 %5274 }
 0x332   : > { %5468 = vrot.lane.b32.xlu1 %v11372_v37, %s6238_s12  ;;  %v5679_v34 = vsel %vm5673_vm3, %v5662_v1, %v11376_v3  ;;  %v11379_v5 = vld [vmem:[#allocation68_spill] sm:$0xff]  ;;  %v5703_v35 = vsel %vm5690_vm4, %v5686_v15, %v11381_v54  ;;  %v5762_v56 = vsel %vm5758_vm8, %v5745_v8, %v9459_v30  ;;  %v11382_v7 = vld [vmem:[#allocation23_spill] sm:$0xff]  ;;  %v11383_v60 = vld [vmem:[#allocation25_spill] sm:$0xff]  ;;  %v11387_v22 = vcombine.high %v9438_v12, %v9441_v52 }
 0x333   : > { %5514 = vrot.lane.b32.xlu0 %v11375_v43, %s6239_s13  ;;  %v5752_v21 = vsel %vm5741_vm7, %v5735_v32, %v11379_v5  ;;  %v5696_v53 = vsel %vm5690_vm4, %v5679_v34, %v11380_v17  ;;  %v5720_v29 = vsel %vm5707_vm5, %v5703_v35, %v11383_v60  ;;  %v9819_v40 = vsel %vm5775_vm9, %v5762_v56, %v5261_v41  ;;  %v11384_v10 = vld [vmem:[#allocation193_spill] sm:$0xff]  ;;  %v11385_v13 = vld [vmem:[#allocation210_spill] sm:$0xff]  ;;  %v11391_v50 = vld [vmem:[#allocation8_spill] sm:$0xff] }
 0x334   : > { %v5769_v1 = vsel %vm5758_vm8, %v5752_v21, %v9461_v19  ;;  %v5713_v14 = vsel %vm5707_vm5, %v5696_v53, %v11382_v7  ;;  %v5664_v30 = vsel %vm5656_vm2, %v9655_v28, %v11384_v10  ;;  %v11386_v51 = vld [vmem:[#allocation138_spill] sm:$0xff]  ;;  %v11388_v39 = vld [vmem:[#allocation89_spill] sm:$0xff]  ;;  %v11392_v59 = vld [vmem:[#allocation140_spill] sm:$0xff]  ;;  %v5265_v15 = vpop.permute.xlu1 %5264  ;;  %v4659_v8 = vcombine.high %v9466_v18, %v9469_v20 }
 0x335   : > { %v9822_v48 = vsel %vm5775_vm9, %v5769_v1, %v5275_v11  ;;  %v5730_v19 = vsel %vm5724_vm6, %v5713_v14, %v11385_v13  ;;  %v5737_v2 = vsel %vm5724_vm6, %v5720_v29, %v11386_v51  ;;  %v11389_v58 = vld [vmem:[#allocation90_spill] sm:$0xff]  ;;  %v11393_v63 = vld [vmem:[#allocation141_spill] sm:$0xff]  ;;  %v11395_v36 = vld [vmem:[#allocation159_spill] sm:$0xff]  ;;  %v5279_v57 = vpop.permute.xlu0 %5278 }
 0x336   : > { %5472 = vrot.lane.b32.xlu1 %v11387_v22, %s6238_s12  ;;  %v11390_v47 = vcombine.low %v11388_v39, %v11389_v58  ;;  %v11394_v28 = vcombine.low %v11392_v59, %v11393_v63  ;;  %v5681_v26 = vsel %vm5673_vm3, %v5664_v30, %v11395_v36  ;;  %v11396_v32 = vld [vmem:[#allocation101_spill] sm:$0xff]  ;;  %v11397_v43 = vld [vmem:[#allocation102_spill] sm:$0xff]  ;;  %v11400_v17 = vld [vmem:[#allocation124_spill] sm:$0xff] }
 0x337   : > { %v5747_v37 = vsel %vm5741_vm7, %v5730_v19, %v11396_v32  ;;  %v5754_v12 = vsel %vm5741_vm7, %v5737_v2, %v11397_v43  ;;  %v11398_v52 = vld [vmem:[#allocation173_spill] sm:$0xff]  ;;  %v11402_v56 = vld [vmem:[#allocation139_spill] sm:$0xff]  ;;  %v11403_v20 = vld [vmem:[#allocation122_spill] sm:$0xff] }
 0x338   : > { %5518 = vrot.lane.b32.xlu0 %v11390_v47, %s6239_s13  ;;  %v5632_v24 = vsel %vm5622_vm0, %v11394_v28, %v11391_v50  ;;  %v5698_v3 = vsel %vm5690_vm4, %v5681_v26, %v11398_v52  ;;  %v5764_v34 = vsel %vm5758_vm8, %v5747_v37, %v9506_v25  ;;  %v5771_v9 = vsel %vm5758_vm8, %v5754_v12, %v9508_v55  ;;  %v11399_v5 = vld [vmem:[#allocation181_spill] sm:$0xff]  ;;  %v11404_v18 = vld [vmem:[#allocation123_spill] sm:$0xff]  ;;  %v11406_v11 = vld [vmem:[#allocation158_spill] sm:$0xff]  ;;  %v5269_v47 = vpop.permute.xlu1 %5268 }
 0x339   : > { %v5649_v21 = vsel %vm5639_vm1, %v5632_v24, %v11399_v5  ;;  %v5715_v53 = vsel %vm5707_vm5, %v5698_v3, %v11400_v17  ;;  %v9863_v54 = vsel %vm5775_vm9, %v5764_v34, %v5265_v15  ;;  %v9866_v35 = vsel %vm5775_vm9, %v5771_v9, %v5279_v57  ;;  %v11401_v25 = vld [vmem:[#allocation217_spill] sm:$0xff]  ;;  %v11408_v29 = vld [vmem:[#allocation31_spill] sm:$0xff]  ;;  %v11410_v30 = vld [vmem:[#allocation170_spill] sm:$0xff]  ;;  %v5283_v50 = vpop.permute.xlu0 %5282 }
 0x33a   : > { %v5666_v55 = vsel %vm5656_vm2, %v5649_v21, %v11401_v25  ;;  %v5732_v1 = vsel %vm5724_vm6, %v5715_v53, %v11402_v56  ;;  %5476 = vrot.lane.b32.xlu1 %v4659_v8, %s6238_s12  ;;  %v11405_v41 = vcombine.low %v11403_v20, %v11404_v18  ;;  %v11407_v14 = vld [vmem:[#allocation29_spill] sm:$0xff]  ;;  %v11412_v51 = vld [vmem:[#allocation172_spill] sm:$0xff]  ;;  %v11413_v59 = vld [vmem:[#allocation70_spill] sm:$0xff]  ;;  %v9899_v26 = vsel %vm5775_vm9, %v9562_v6, %v5283_v50 }
 0x33b   : > { %v5683_v7 = vsel %vm5673_vm3, %v5666_v55, %v11406_v11  ;;  %v5749_v60 = vsel %vm5741_vm7, %v5732_v1, %v11407_v14  ;;  %v11409_v10 = vld [vmem:[#allocation169_spill] sm:$0xff]  ;;  %v11416_v43 = vld [vmem:[#allocation167_spill] sm:$0xff]  ;;  %v11418_v52 = vld [vmem:[#allocation104_spill] sm:$0xff] }
 0x33c   : > { %5522 = vrot.lane.b32.xlu0 %v11405_v41, %s6239_s13  ;;  %v11411_v13 = vcombine.low %v11409_v10, %v11410_v30  ;;  %v5700_v2 = vsel %vm5690_vm4, %v5683_v7, %v11412_v51  ;;  %v5766_v22 = vsel %vm5758_vm8, %v5749_v60, %v9550_v27  ;;  %v11414_v28 = vld [vmem:[#allocation125_spill] sm:$0xff]  ;;  %v11417_v12 = vld [vmem:[#allocation103_spill] sm:$0xff]  ;;  %v11420_v34 = vld [vmem:[#allocation150_spill] sm:$0xff]  ;;  %v5273_v11 = vpop.permute.xlu1 %5272 }
 0x33d   : > { %v5717_v24 = vsel %vm5707_vm5, %v5700_v2, %v11414_v28  ;;  %v9895_v36 = vsel %vm5775_vm9, %v5766_v22, %v5269_v47  ;;  %v11415_v32 = vld [vmem:[#allocation13_spill] sm:$0xff]  ;;  %v11419_v3 = vcombine.low %v11417_v12, %v11418_v52  ;;  %v11421_v9 = vld [vmem:[#allocation151_spill] sm:$0xff]  ;;  %v11423_v57 = vld [vmem:[#allocation50_spill] sm:$0xff]  ;;  %v5319_v7 = vpop.permute.xlu0 %5318 }
 0x33e   : > { %v5634_v19 = vsel %vm5622_vm0, %v11411_v13, %v11408_v29  ;;  %v5734_v27 = vsel %vm5724_vm6, %v5717_v24, %v11416_v43  ;;  %v11422_v15 = vcombine.low %v11420_v34, %v11421_v9  ;;  %v11424_v8 = vld [vmem:[#allocation30_spill] sm:$0xff]  ;;  %v11425_v21 = vld [vmem:[#allocation28_spill] sm:$0xff]  ;;  %v11427_v53 = vld [vmem:[#allocation199_spill] sm:$0xff]  ;;  %v5793_v13 = vsel %vm5792_vm10, %v9615_v0, %v5319_v7 }
 0x33f   : > { %v5651_v63 = vsel %vm5639_vm1, %v5634_v19, %v11413_v59  ;;  %5512 = vrot.lane.b32.xlu1 %v11419_v3, %s6239_s13  ;;  %v5751_v5 = vsel %vm5741_vm7, %v5734_v27, %v11424_v8  ;;  %v11426_v17 = vld [vmem:[#allocation198_spill] sm:$0xff]  ;;  %v11429_v56 = vld [vmem:[#allocation201_spill] sm:$0xff]  ;;  %v11431_v29 = vld [vmem:[#allocation44_spill] sm:$0xff] }
 0x340   : > { %v5668_v37 = vsel %vm5656_vm2, %v5651_v63, %v11415_v32  ;;  %5526 = vrot.lane.b32.xlu0 %v11422_v15, %s6239_s13  ;;  %v11428_v25 = vcombine.low %v11426_v17, %v11427_v53  ;;  %v5768_v41 = vsel %vm5758_vm8, %v5751_v5, %v9603_v16  ;;  %v11430_v14 = vld [vmem:[#allocation106_spill] sm:$0xff]  ;;  %v11433_v2 = vld [vmem:[#allocation196_spill] sm:$0xff]  ;;  %v11435_v47 = vld [vmem:[#allocation121_spill] sm:$0xff]  ;;  %v5277_v15 = vpop.permute.xlu1 %5276 }
 0x341   : > { %v5685_v6 = vsel %vm5673_vm3, %v5668_v37, %v11423_v57  ;;  %v5785_v30 = vsel %vm5775_vm9, %v5768_v41, %v5273_v11  ;;  %v11432_v19 = vld [vmem:[#allocation38_spill] sm:$0xff]  ;;  %v11434_v16 = vld [vmem:[#allocation120_spill] sm:$0xff]  ;;  %v11438_v63 = vld [vmem:[#allocation183_spill] sm:$0xff]  ;;  %v5323_v57 = vpop.permute.xlu0 %5322 }
 0x342   : > { %v5636_v55 = vsel %vm5622_vm0, %v11428_v25, %v11425_v21  ;;  %v5702_v1 = vsel %vm5690_vm4, %v5685_v6, %v11429_v56  ;;  %v11436_v50 = vcombine.low %v11434_v16, %v11435_v47  ;;  %v11437_v59 = vld [vmem:[#allocation182_spill] sm:$0xff]  ;;  %v11440_v24 = vld [vmem:[#allocation189_spill] sm:$0xff]  ;;  %v5795_v21 = vsel %vm5792_vm10, %v9660_v42, %v5323_v57  ;;  %v11445_v25 = vld [vmem:[#allocation136_spill] sm:$0xff] }
 0x343   : > { %v5653_v60 = vsel %vm5639_vm1, %v5636_v55, %v11430_v14  ;;  %v5719_v10 = vsel %vm5707_vm5, %v5702_v1, %v11431_v29  ;;  %v11439_v28 = vcombine.low %v11437_v59, %v11438_v63  ;;  %v11441_v0 = vld [vmem:[#allocation133_spill] sm:$0xff]  ;;  %v11442_v43 = vld [vmem:[#allocation22_spill] sm:$0xff]  ;;  %v11449_v1 = vld [vmem:[#allocation208_spill] sm:$0xff] }
 0x344   : > { %v5670_v51 = vsel %vm5656_vm2, %v5653_v60, %v11432_v19  ;;  %v5736_v22 = vsel %vm5724_vm6, %v5719_v10, %v11433_v2  ;;  %5516 = vrot.lane.b32.xlu1 %v11436_v50, %s6239_s13  ;;  %v11443_v6 = vld [vmem:[#allocation153_spill] sm:$0xff]  ;;  %v11444_v17 = vld [vmem:[#allocation218_spill] sm:$0xff]  ;;  %v11451_v11 = vld [vmem:[#allocation51_spill] sm:$0xff]  ;;  %v5281_v42 = vpop.permute.xlu1 %5280 }
 0x345   : > { %5530 = vrot.lane.b32.xlu0 %v11439_v28, %s6239_s13  ;;  %v5687_v32 = vsel %vm5673_vm3, %v5670_v51, %v11440_v24  ;;  %v5753_v37 = vsel %vm5741_vm7, %v5736_v22, %v11441_v0  ;;  %v11446_v55 = vld [vmem:[#allocation137_spill] sm:$0xff]  ;;  %v5327_v60 = vpop.permute.xlu0 %5326  ;;  %v11452_v19 = vld [vmem:[#allocation162_spill] sm:$0xff]  ;;  %v11453_v51 = vld [vmem:[#allocation163_spill] sm:$0xff] }
 0x346   : > { %v5704_v27 = vsel %vm5690_vm4, %v5687_v32, %v11442_v43  ;;  %v5770_v3 = vsel %vm5758_vm8, %v5753_v37, %v9647_v61  ;;  %v11447_v56 = vcombine.low %v11445_v25, %v11446_v55  ;;  %v11448_v61 = vld [vmem:[#allocation207_spill] sm:$0xff]  ;;  %v5797_v10 = vsel %vm5792_vm10, %v9701_v33, %v5327_v60  ;;  %v11456_v50 = vld [vmem:[#allocation222_spill] sm:$0xff] }
 0x347   : > { %v5721_v8 = vsel %vm5707_vm5, %v5704_v27, %v11443_v6  ;;  %v5787_v5 = vsel %vm5775_vm9, %v5770_v3, %v5277_v15  ;;  %v11450_v41 = vcombine.low %v11448_v61, %v11449_v1  ;;  %v11454_v2 = vcombine.low %v11452_v19, %v11453_v51  ;;  %v11455_v22 = vld [vmem:[#allocation95_spill] sm:$0xff]  ;;  %v11458_v33 = vld [vmem:[#allocation178_spill] sm:$0xff] }
 0x348   : > { %v5738_v53 = vsel %vm5724_vm6, %v5721_v8, %v11444_v17  ;;  %5520 = vrot.lane.b32.xlu1 %v11447_v56, %s6239_s13  ;;  %v11457_v28 = vcombine.low %v11455_v22, %v11456_v50  ;;  %v5285_v24 = vpop.permute.xlu1 %5284  ;;  %v11459_v37 = vld [vmem:[#allocation179_spill] sm:$0xff]  ;;  %v11461_v27 = vcombine.high %v11358_v31, %v11359_v46  ;;  %v11463_v6 = vld [vmem:[#allocation18_spill] sm:$0xff]  ;;  %v11465_v17 = vcombine.high %v11373_v4, %v11374_v62 }
 0x349   : > { %5534 = vrot.lane.b32.xlu0 %v11450_v41, %s6239_s13  ;;  %v5755_v7 = vsel %vm5741_vm7, %v5738_v53, %v11451_v11  ;;  %v5331_v32 = vpop.permute.xlu0 %5330  ;;  %v11460_v43 = vcombine.low %v11458_v33, %v11459_v37  ;;  %v11467_v56 = vld [vmem:[#allocation47_spill] sm:$0xff]  ;;  %v11469_v11 = vcombine.high %v11388_v39, %v11389_v58  ;;  %v11473_v60 = vcombine.high %v11403_v20, %v11404_v18 }
 0x34a   : > { %v5772_v14 = vsel %vm5758_vm8, %v5755_v7, %v9692_v49  ;;  %v5791_v49 = vsel %vm5775_vm9, %v9738_v38, %v5285_v24  ;;  %v5799_v0 = vsel %vm5792_vm10, %v9741_v44, %v5331_v32  ;;  %v11462_v44 = vld [vmem:[#allocation20_spill] sm:$0xff] }
 0x34b   : > { %v5789_v29 = vsel %vm5775_vm9, %v5772_v14, %v5281_v42  ;;  %v11464_v8 = vcombine.low %v11462_v44, %v11463_v6  ;;  %v11471_v14 = vld [vmem:[#allocation15_spill] sm:$0xff] }
 0x34c   : > { %5524 = vrot.lane.b32.xlu1 %v11454_v2, %s6239_s13  ;;  %v5321_v3 = vpop.permute.xlu1 %5320 }
 0x34d   : > { %5538 = vrot.lane.b32.xlu0 %v11457_v28, %s6239_s13  ;;  %v5335_v15 = vpop.permute.xlu0 %5334  ;;  %v5794_v57 = vsel %vm5792_vm10, %v9778_v45, %v5321_v3  ;;  %v11475_v28 = vcombine.high %v11420_v34, %v11421_v9 }
 0x34e   : > { %v5801_v38 = vsel %vm5792_vm10, %v9781_v23, %v5335_v15  ;;  %v11466_v23 = vld [vmem:[#allocation48_spill] sm:$0xff] }
 0x34f   : > { %v11468_v41 = vcombine.low %v11466_v23, %v11467_v56 }
 0x350   : > { %5528 = vrot.lane.b32.xlu1 %v11460_v43, %s6239_s13  ;;  %v5325_v31 = vpop.permute.xlu1 %5324 }
 0x351   : > { %5574 = vrot.lane.b32.xlu0 %v11461_v27, %s6240_s15  ;;  %v5339_v46 = vpop.permute.xlu0 %5338  ;;  %v5796_v53 = vsel %vm5792_vm10, %v9819_v40, %v5325_v31 }
 0x352   : > { %v5803_v45 = vsel %vm5792_vm10, %v9822_v48, %v5339_v46  ;;  %v11470_v48 = vld [vmem:[#allocation87_spill] sm:$0xff] }
 0x353   : > { %v11472_v42 = vcombine.low %v11470_v48, %v11471_v14 }
 0x354   : > { %5532 = vrot.lane.b32.xlu1 %v11464_v8, %s6239_s13  ;;  %v5329_v4 = vpop.permute.xlu1 %5328 }
 0x355   : > { %5578 = vrot.lane.b32.xlu0 %v11465_v17, %s6240_s15  ;;  %v5343_v62 = vpop.permute.xlu0 %5342  ;;  %v5798_v7 = vsel %vm5792_vm10, %v9863_v54, %v5329_v4 }
 0x356   : > { %v5805_v40 = vsel %vm5792_vm10, %v9866_v35, %v5343_v62  ;;  %v11474_v35 = vcombine.high %v11417_v12, %v11418_v52  ;;  %v11477_v12 = vcombine.high %v11437_v59, %v11438_v63 }
 0x358   : > { %5536 = vrot.lane.b32.xlu1 %v11468_v41, %s6239_s13  ;;  %v5333_v39 = vpop.permute.xlu1 %5332 }
 0x359   : > { %5582 = vrot.lane.b32.xlu0 %v11469_v11, %s6240_s15  ;;  %v5347_v58 = vpop.permute.xlu0 %5346  ;;  %v5800_v2 = vsel %vm5792_vm10, %v9895_v36, %v5333_v39 }
 0x35a   : > { %v5807_v54 = vsel %vm5792_vm10, %v9899_v26, %v5347_v58  ;;  %v11476_v26 = vcombine.high %v11434_v16, %v11435_v47 }
 0x35c   : > { %5540 = vrot.lane.b32.xlu1 %v11472_v42, %s6239_s13  ;;  %v5337_v20 = vpop.permute.xlu1 %5336 }
 0x35d   : > { %5586 = vrot.lane.b32.xlu0 %v11473_v60, %s6240_s15  ;;  %v5383_v18 = vpop.permute.xlu0 %5382  ;;  %v5802_v24 = vsel %vm5792_vm10, %v5785_v30, %v5337_v20  ;;  %v11478_v30 = vcombine.high %v11445_v25, %v11446_v55 }
 0x35e   : > { %v10045_v36 = vsel %vm5809_vm11, %v5793_v13, %v5383_v18  ;;  %v11479_v13 = vcombine.high %v11448_v61, %v11449_v1 }
 0x360   : > { %5576 = vrot.lane.b32.xlu1 %v11474_v35, %s6240_s15  ;;  %v5341_v52 = vpop.permute.xlu1 %5340 }
 0x361   : > { %5590 = vrot.lane.b32.xlu0 %v11475_v28, %s6240_s15  ;;  %v5387_v34 = vpop.permute.xlu0 %5386  ;;  %v5804_v9 = vsel %vm5792_vm10, %v5787_v5, %v5341_v52  ;;  %v11480_v5 = vcombine.high %v11452_v19, %v11453_v51 }
 0x362   : > { %v10057_v32 = vsel %vm5809_vm11, %v5795_v21, %v5387_v34  ;;  %v11481_v21 = vcombine.high %v11455_v22, %v11456_v50  ;;  %v11483_v50 = vcombine.high %v11462_v44, %v11463_v6 }
 0x364   : > { %5580 = vrot.lane.b32.xlu1 %v11476_v26, %s6240_s15  ;;  %v5345_v16 = vpop.permute.xlu1 %5344 }
 0x365   : > { %5594 = vrot.lane.b32.xlu0 %v11477_v12, %s6240_s15  ;;  %v5391_v47 = vpop.permute.xlu0 %5390  ;;  %v5806_v59 = vsel %vm5792_vm10, %v5789_v29, %v5345_v16  ;;  %v11482_v29 = vcombine.high %v11458_v33, %v11459_v37  ;;  %v11484_v37 = vcombine.high %v11466_v23, %v11467_v56 }
 0x366   : > { %v10069_v63 = vsel %vm5809_vm11, %v5797_v10, %v5391_v47 }
 0x368   : > { %5584 = vrot.lane.b32.xlu1 %v11478_v30, %s6240_s15  ;;  %v5349_v25 = vpop.permute.xlu1 %5348 }
 0x369   : > { %5598 = vrot.lane.b32.xlu0 %v11479_v13, %s6240_s15  ;;  %v5395_v55 = vpop.permute.xlu0 %5394  ;;  %v5808_v61 = vsel %vm5792_vm10, %v5791_v49, %v5349_v25 }
 0x36a   : > { %v10081_v1 = vsel %vm5809_vm11, %v5799_v0, %v5395_v55 }
 0x36c   : > { %5588 = vrot.lane.b32.xlu1 %v11480_v5, %s6240_s15  ;;  %v5385_v10 = vpop.permute.xlu1 %5384 }
 0x36d   : > { %5602 = vrot.lane.b32.xlu0 %v11481_v21, %s6240_s15  ;;  %v5399_v19 = vpop.permute.xlu0 %5398  ;;  %v10088_v51 = vsel %vm5809_vm11, %v5794_v57, %v5385_v10 }
 0x36e   : > { %v10091_v22 = vsel %vm5809_vm11, %v5801_v38, %v5399_v19  ;;  %v11485_v38 = vcombine.high %v11470_v48, %v11471_v14 }
 0x370   : > { %5592 = vrot.lane.b32.xlu1 %v11482_v29, %s6240_s15  ;;  %v5389_v49 = vpop.permute.xlu1 %5388 }
 0x371   : > { %v5403_v0 = vpop.permute.xlu0 %5402  ;;  %v10098_v43 = vsel %vm5809_vm11, %v5796_v53, %v5389_v49 }
 0x372   : > { %v10101_v33 = vsel %vm5809_vm11, %v5803_v45, %v5403_v0 }
 0x374   : > { %5596 = vrot.lane.b32.xlu1 %v11483_v50, %s6240_s15  ;;  %v5393_v27 = vpop.permute.xlu1 %5392 }
 0x375   : > { %v5407_v3 = vpop.permute.xlu0 %5406  ;;  %v10108_v15 = vsel %vm5809_vm11, %v5798_v7, %v5393_v27 }
 0x376   : > { %v10111_v57 = vsel %vm5809_vm11, %v5805_v40, %v5407_v3 }
 0x378   : > { %5600 = vrot.lane.b32.xlu1 %v11484_v37, %s6240_s15  ;;  %v5397_v44 = vpop.permute.xlu1 %5396 }
 0x379   : > { %v5411_v6 = vpop.permute.xlu0 %5410  ;;  %v10118_v8 = vsel %vm5809_vm11, %v5800_v2, %v5397_v44 }
 0x37a   : > { %v10121_v17 = vsel %vm5809_vm11, %v5807_v54, %v5411_v6 }
 0x37c   : > { %5604 = vrot.lane.b32.xlu1 %v11485_v38, %s6240_s15  ;;  %v5401_v31 = vpop.permute.xlu1 %5400 }
 0x37d   : > { %v5447_v46 = vpop.permute.xlu0 %5446  ;;  %v10124_v53 = vsel %vm5809_vm11, %v5802_v24, %v5401_v31 }
 0x37e   : > { %v5827_v21 = vsel %vm5826_vm12, %v10045_v36, %v5447_v46 }
 0x380   : > { %v5405_v45 = vpop.permute.xlu1 %5404 }
 0x381   : > { %v5451_v23 = vpop.permute.xlu0 %5450  ;;  %v10127_v56 = vsel %vm5809_vm11, %v5804_v9, %v5405_v45 }
 0x382   : > { %v5829_v10 = vsel %vm5826_vm12, %v10057_v32, %v5451_v23 }
 0x384   : > { %v5409_v41 = vpop.permute.xlu1 %5408 }
 0x385   : > { %v5455_v11 = vpop.permute.xlu0 %5454  ;;  %v10130_v4 = vsel %vm5809_vm11, %v5806_v59, %v5409_v41 }
 0x386   : > { %v5831_v0 = vsel %vm5826_vm12, %v10069_v63, %v5455_v11 }
 0x388   : > { %v5413_v62 = vpop.permute.xlu1 %5412 }
 0x389   : > { %v5459_v7 = vpop.permute.xlu0 %5458  ;;  %v10133_v40 = vsel %vm5809_vm11, %v5808_v61, %v5413_v62 }
 0x38a   : > { %v5833_v32 = vsel %vm5826_vm12, %v10081_v1, %v5459_v7 }
 0x38c   : > { %v5449_v48 = vpop.permute.xlu1 %5448 }
 0x38d   : > { %v5463_v14 = vpop.permute.xlu0 %5462  ;;  %v5828_v46 = vsel %vm5826_vm12, %v10088_v51, %v5449_v48 }
 0x38e   : > { %v5835_v45 = vsel %vm5826_vm12, %v10091_v22, %v5463_v14 }
 0x392   : > { %v10135_v42 = vpop.permute.xlu1 %5452 }
 0x393   : > { %v10137_v60 = vpop.permute.xlu0 %5466  ;;  %v5830_v51 = vsel %vm5826_vm12, %v10098_v43, %v10135_v42 }
 0x394   : > { %v5837_v22 = vsel %vm5826_vm12, %v10101_v33, %v10137_v60 }
 0x397   : > { %v10141_v58 = vpop.permute.xlu0 %5470 }
 0x398   : > { %v10139_v39 = vpop.permute.xlu1 %5456  ;;  %v5839_v33 = vsel %vm5826_vm12, %v10111_v57, %v10141_v58 }
 0x399   : > { %v5832_v43 = vsel %vm5826_vm12, %v10108_v15, %v10139_v39 }
 0x39b   : > { %v10145_v54 = vpop.permute.xlu0 %5474 }
 0x39c   : > { %v10143_v2 = vpop.permute.xlu1 %5460  ;;  %v5841_v57 = vsel %vm5826_vm12, %v10121_v17, %v10145_v54 }
 0x39d   : > { %v5834_v15 = vsel %vm5826_vm12, %v10118_v8, %v10143_v2 }
 0x3a0   : > { %v10147_v35 = vpop.permute.xlu1 %5464  ;;  %v5511_v28 = vpop.permute.xlu0 %5510 }
 0x3a1   : > { %v5844_v25 = vsel %vm5843_vm13, %v5827_v21, %v5511_v28  ;;  %v5836_v8 = vsel %vm5826_vm12, %v10124_v53, %v10147_v35 }
 0x3a4   : > { %v10149_v20 = vpop.permute.xlu1 %5468 }
 0x3a5   : > { %v5515_v18 = vpop.permute.xlu0 %5514 }
 0x3a6   : > { %v5846_v36 = vsel %vm5843_vm13, %v5829_v10, %v5515_v18 }
 0x3a8   : > { %v10151_v24 = vpop.permute.xlu1 %5472 }
 0x3a9   : > { %v5840_v35 = vsel %vm5826_vm12, %v10130_v4, %v10151_v24 }
 0x3aa   : > { %v5519_v26 = vpop.permute.xlu0 %5518 }
 0x3ab   : > { %v5848_v37 = vsel %vm5843_vm13, %v5831_v0, %v5519_v26 }
 0x3ac   : > { %v10153_v12 = vpop.permute.xlu1 %5476 }
 0x3ae   : > { %v5523_v52 = vpop.permute.xlu0 %5522 }
 0x3af   : > { %v5850_v44 = vsel %vm5843_vm13, %v5833_v32, %v5523_v52 }
 0x3b1   : > { %v5513_v34 = vpop.permute.xlu1 %5512 }
 0x3b2   : > { %v5527_v9 = vpop.permute.xlu0 %5526  ;;  %v5845_v23 = vsel %vm5843_vm13, %v5828_v46, %v5513_v34 }
 0x3b3   : > { %v5852_v1 = vsel %vm5843_vm13, %v5835_v45, %v5527_v9 }
 0x3b6   : > { %v5517_v30 = vpop.permute.xlu1 %5516 }
 0x3b7   : > { %v5531_v13 = vpop.permute.xlu0 %5530  ;;  %v5847_v48 = vsel %vm5843_vm13, %v5830_v51, %v5517_v30 }
 0x3b8   : > { %v5854_v14 = vsel %vm5843_vm13, %v5837_v22, %v5531_v13 }
 0x3ba   : > { %v5521_v16 = vpop.permute.xlu1 %5520 }
 0x3bb   : > { %v5535_v47 = vpop.permute.xlu0 %5534  ;;  %v5849_v42 = vsel %vm5843_vm13, %v5832_v43, %v5521_v16 }
 0x3bc   : > { %v5856_v60 = vsel %vm5843_vm13, %v5839_v33, %v5535_v47 }
 0x3be   : > { %v10155_v59 = vpop.permute.xlu1 %5524 }
 0x3bf   : > { %v10157_v5 = vpop.permute.xlu0 %5538  ;;  %v5851_v39 = vsel %vm5843_vm13, %v5834_v15, %v10155_v59  ;;  %v5838_v59 = vsel %vm5826_vm12, %v10127_v56, %v10149_v20  ;;  %v5842_v20 = vsel %vm5826_vm12, %v10133_v40, %v10153_v12 }
 0x3c0   : > { %v5858_v58 = vsel %vm5843_vm13, %v5841_v57, %v10157_v5 }
 0x3c2   : > { %v10163_v55 = vpop.permute.xlu1 %5528 }
 0x3c3   : > { %v5575_v61 = vpop.permute.xlu0 %5574  ;;  %v5853_v17 = vsel %vm5843_vm13, %v5836_v8, %v10163_v55 }
 0x3c4   : > { %v5861_v29 = vsel %vm5860_vm14, %v5844_v25, %v5575_v61 }
 0x3c5   : > { %5878 = vst.msk [vmem:[%s10166_s22] sm:$0xff] %vm5877_vm15, %v5861_v29 }
 0x3c6   : > { %v10173_v19 = vpop.permute.xlu1 %5532 }
 0x3c7   : > { %v5579_v50 = vpop.permute.xlu0 %5578  ;;  %v5855_v5 = vsel %vm5843_vm13, %v5838_v59, %v10173_v19 }
 0x3c8   : > { %v5863_v49 = vsel %vm5860_vm14, %v5846_v36, %v5579_v50 }
 0x3c9   : > { %5880 = vst.msk [vmem:[%s10166_s22 + $0x10] sm:$0xff] %vm5877_vm15, %v5863_v49 }
 0x3ca   : > { %v5537_v27 = vpop.permute.xlu1 %5536 }
 0x3cb   : > { %v5583_v3 = vpop.permute.xlu0 %5582  ;;  %v5857_v55 = vsel %vm5843_vm13, %v5840_v35, %v5537_v27 }
 0x3cc   : > { %v5865_v38 = vsel %vm5860_vm14, %v5848_v37, %v5583_v3 }
 0x3cd   : > { %5882 = vst.msk [vmem:[%s10166_s22 + $0x20] sm:$0xff] %vm5877_vm15, %v5865_v38 }
 0x3ce   : > { %v10187_v6 = vpop.permute.xlu1 %5540 }
 0x3cf   : > { %v5587_v31 = vpop.permute.xlu0 %5586  ;;  %v5859_v4 = vsel %vm5843_vm13, %v5842_v20, %v10187_v6 }
 0x3d0   : > { %v5867_v63 = vsel %vm5860_vm14, %v5850_v44, %v5587_v31 }
 0x3d1   : > { %5884 = vst.msk [vmem:[%s10166_s22 + $0x30] sm:$0xff] %vm5877_vm15, %v5867_v63 }
 0x3d2   : > { %v5577_v41 = vpop.permute.xlu1 %5576 }
 0x3d3   : > { %v5591_v11 = vpop.permute.xlu0 %5590  ;;  %v5862_v62 = vsel %vm5860_vm14, %v5845_v23, %v5577_v41 }
 0x3d4   : > { %v5869_v7 = vsel %vm5860_vm14, %v5852_v1, %v5591_v11  ;;  %5879 = vst.msk [vmem:[%s10166_s22 + $0x8] sm:$0xff] %vm5877_vm15, %v5862_v62 }
 0x3d5   : > { %5886 = vst.msk [vmem:[%s10166_s22 + $0x40] sm:$0xff] %vm5877_vm15, %v5869_v7 }
 0x3d6   : > { %v5581_v28 = vpop.permute.xlu1 %5580 }
 0x3d7   : > { %v5595_v18 = vpop.permute.xlu0 %5594  ;;  %v5864_v26 = vsel %vm5860_vm14, %v5847_v48, %v5581_v28 }
 0x3d8   : > { %v5871_v52 = vsel %vm5860_vm14, %v5854_v14, %v5595_v18  ;;  %5881 = vst.msk [vmem:[%s10166_s22 + $0x18] sm:$0xff] %vm5877_vm15, %v5864_v26 }
 0x3d9   : > { %5888 = vst.msk [vmem:[%s10166_s22 + $0x50] sm:$0xff] %vm5877_vm15, %v5871_v52 }
 0x3da   : > { %v5585_v34 = vpop.permute.xlu1 %5584 }
 0x3db   : > { %v5599_v9 = vpop.permute.xlu0 %5598  ;;  %v5866_v30 = vsel %vm5860_vm14, %v5849_v42, %v5585_v34 }
 0x3dc   : > { %v5873_v13 = vsel %vm5860_vm14, %v5856_v60, %v5599_v9  ;;  %5883 = vst.msk [vmem:[%s10166_s22 + $0x28] sm:$0xff] %vm5877_vm15, %v5866_v30 }
 0x3dd   : > { %5890 = vst.msk [vmem:[%s10166_s22 + $0x60] sm:$0xff] %vm5877_vm15, %v5873_v13 }
 0x3de   : > { %v5589_v16 = vpop.permute.xlu1 %5588 }
 0x3df   : > { %v5603_v47 = vpop.permute.xlu0 %5602  ;;  %v5868_v21 = vsel %vm5860_vm14, %v5851_v39, %v5589_v16 }
 0x3e0   : > { %v5875_v25 = vsel %vm5860_vm14, %v5858_v58, %v5603_v47  ;;  %5885 = vst.msk [vmem:[%s10166_s22 + $0x38] sm:$0xff] %vm5877_vm15, %v5868_v21 }
 0x3e1   : > { %5892 = vst.msk [vmem:[%s10166_s22 + $0x70] sm:$0xff] %vm5877_vm15, %v5875_v25 }
 0x3e2   : > { %v5593_v2 = vpop.permute.xlu1 %5592 }
 0x3e3   : > { %v5870_v54 = vsel %vm5860_vm14, %v5853_v17, %v5593_v2 }
 0x3e4   : > { %5887 = vst.msk [vmem:[%s10166_s22 + $0x48] sm:$0xff] %vm5877_vm15, %v5870_v54 }
 0x3e6   : > { %v5597_v61 = vpop.permute.xlu1 %5596 }
 0x3e7   : > { %v5872_v53 = vsel %vm5860_vm14, %v5855_v5, %v5597_v61 }
 0x3e8   : > { %5889 = vst.msk [vmem:[%s10166_s22 + $0x58] sm:$0xff] %vm5877_vm15, %v5872_v53 }
 0x3ea   : > { %v5601_v29 = vpop.permute.xlu1 %5600 }
 0x3eb   : > { %v5874_v56 = vsel %vm5860_vm14, %v5857_v55, %v5601_v29 }
 0x3ec   : > { %5891 = vst.msk [vmem:[%s10166_s22 + $0x68] sm:$0xff] %vm5877_vm15, %v5874_v56 }
 0x3ee   : > { %v5605_v24 = vpop.permute.xlu1 %5604 }
 0x3ef   : > { %v5876_v10 = vsel %vm5860_vm14, %v5859_v4, %v5605_v24 }
 0x3f0   : > { %5893 = vst.msk [vmem:[%s10166_s22 + $0x78] sm:$0xff] %vm5877_vm15, %v5876_v10 }
 0x3f1   : > { %6151 = shalt.err (!%p6148_p6)
}
 0x3f2   : > { %s6152_s3 = scalar_lea.hbm %s10279_s27, 2048  ;;  %s6156_s12 = scalar_lea.hbm %s10336_s1, 4096 }
 0x3f3   : > { %p6153_p7 = scmp.ne.s32.totalorder %s10279_s27, %s6152_s3  ;;  %p6157_p13 = scmp.lt.s32.totalorder %s10279_s27, %s10336_s1 }
 0x3f4   : > { %p6158_p2 = scmp.lt.s32.totalorder %s6156_s12, %s6152_s3 }
 0x3f5   : > { %p6154_p10 = pnand %p6153_p7, %p6304_p9 }
 0x3f6   : > { %p6159_p8 = por %p6158_p2, %p6157_p13 }
 0x3f7   : > { %p6155_p4 = pneg %p6154_p10 }
 0x3f9   : > { %p6160_p12 = pnand %p6159_p8, %p6155_p4 }
 0x3fb   : > { %6163 = shalt.err (!%p6160_p12)
}
 0x3fc   : > { %s6242_s17 = smov 128  }
 0x3fd   : > { %6021 = dma.vmem_to_hbm [thread:$0]  (%p6304_p9), %s10283_s18, 2048, %s10279_s27, %s5895_s9, %s6242_s17, %s6242_s17, %s6229_s26  }
 0x3fe PF: > { %s5926_s22 = sand.u32 1, %s6198_s6   ;;  %p11486_p0 = scmp.ge.s32.totalorder %s6218_s11, 2 }
 0x3ff   : > { %s5927_s23 = scalar_lea.sflag [#allocation4], %s5926_s22 }
 0x400   : > { %p6028_p1 = pnand %p11486_p0, %p6311_p11 }
 0x402   : > { %p6029_p3 = pneg %p6028_p1 }
 0x404   : > { %6193 = dma.done.wait (%p6029_p3), %s5927_s23, 2048  }
 0x405   : > { %6195 = vsyncadd (%p6029_p3), %s5927_s23, 4294965248  ;;  %s17_s11 = sadd.s32 1, %s6218_s11   ;;  %s11487_s6 = smov %s6202_s7 }
 0x406   : > { %p14_p5 = scmp.ge.s32.totalorder %s17_s11, 4   ;;  %s11488_s7 = smov %s6206_s8 }
 0x407   : > { %s11489_s8 = smov %s6309_s20  ;;  %s11490_s9 = smov %s6214_s10 }
 0x408   : > { %s11491_s10 = smov %s11493_s14  ;;  %16 = sbr.rel (!%p14_p5) target bundleno = 6 (0x6), region = 69 }
 0x40d   :  { %5932 = vsyncpa [#allocation3], 1 }
 0x40e   :  { %5934 = vsyncpa [#allocation3 + $0x1], 1 }
 0x40f   :  { %5935 = vsyncpa [#allocation4], 1 }
 0x410   :  { %5937 = vsyncpa [#allocation4 + $0x1], 1 }

</bundles_post_ra>
